<compile_context>
chip_gen: v6e
topology: v6e:2x2x1
jax: 0.10.0
libtpu: 0.0.40
codegen_flags: <defaults>
</compile_context>

<pallas_src>
import functools

import jax
import jax.numpy as jnp
from jax.experimental import pallas as pl
from jax.experimental.pallas import tpu as pltpu

EPS = 1e-5  # norm_epsilon of nn.LayerNorm in the reference module


# ----------------------------------------------------------------------------
# Tiling helpers
# ----------------------------------------------------------------------------
def _row_plan(m, tile):
    """Return (padded_rows, row_tile) with row_tile | padded_rows and row_tile % 8 == 0."""
    if m >= tile:
        mp = ((m + tile - 1) // tile) * tile
        return mp, tile
    mp = max(8, ((m + 7) // 8) * 8)
    return mp, mp


def _pad_rows(x, mp):
    m = x.shape[0]
    if m == mp:
        return x
    return jnp.pad(x, ((0, mp - m), (0, 0)))


def _col_tile(n, max_tile=2048):
    """Largest multiple-of-128 tile <= max_tile dividing n (or n itself)."""
    if n <= max_tile or n % 128 != 0:
        return n
    for t in range(max_tile - (max_tile % 128), 127, -128):
        if n % t == 0:
            return t
    return n


# ----------------------------------------------------------------------------
# Pallas kernels
# ----------------------------------------------------------------------------
def _block_kernel(h_ref, r_ref, lnw_ref, lnb_ref, winz_ref, wout_ref, bout_ref,
                  out_ref, newres_ref, y_sc, *, d_state):
    """Fused Block: residual += hidden; xn = LN(residual); y = gate(xn); out = y @ w_out.

    Grid is (row_tiles, n_tiles).  The add/LN/gate stage runs only at n_tile == 0;
    its result (y) is cached in VMEM scratch and reused for every N tile of w_out,
    so LayerNorm stats and the newres write are not redone per output tile.
    """
    n_idx = pl.program_id(1)

    @pl.when(n_idx == 0)
    def _():
        h = h_ref[...].astype(jnp.float32)
        r = r_ref[...].astype(jnp.float32)
        res = r + h
        newres_ref[...] = res                       # residual stream stays f32
        mean = jnp.mean(res, axis=-1, keepdims=True)
        cent = res - mean
        var = jnp.mean(cent * cent, axis=-1, keepdims=True)
        xn = cent * jax.lax.rsqrt(var + EPS)
        xn = xn * lnw_ref[...] + lnb_ref[...]
        # fused in-projection + gate (single MXU push for w_in||w_gate)
        uz = jnp.dot(xn.astype(jnp.bfloat16), winz_ref[...],
                     preferred_element_type=jnp.float32)
        u = uz[:, :d_state]
        z = uz[:, d_state:]
        y_sc[...] = (u * (z * jax.nn.sigmoid(z))).astype(jnp.bfloat16)

    out_ref[...] = (jnp.dot(y_sc[...], wout_ref[...],
                            preferred_element_type=jnp.float32)
                    + bout_ref[...])


def _addnorm_kernel(h_ref, r_ref, w_ref, b_ref, hout_ref, rout_ref):
    """norm_f: residual = residual + hidden; hidden = LayerNorm(residual)."""
    res = r_ref[...].astype(jnp.float32) + h_ref[...].astype(jnp.float32)
    rout_ref[...] = res
    mean = jnp.mean(res, axis=-1, keepdims=True)
    cent = res - mean
    var = jnp.mean(cent * cent, axis=-1, keepdims=True)
    hout_ref[...] = (cent * jax.lax.rsqrt(var + EPS)) * w_ref[...] + b_ref[...]


def _conv1x1_add_gelu_kernel(x_ref, w_ref, b_ref, skip_ref, o_ref):
    y = (jnp.dot(x_ref[...].astype(jnp.bfloat16), w_ref[...],
                 preferred_element_type=jnp.float32)
         + b_ref[...] + skip_ref[...].astype(jnp.float32))
    o_ref[...] = jax.nn.gelu(y)


def _head_kernel(x_ref, w1_ref, b1_ref, w2_ref, b2_ref, o_ref):
    """Fused FNO projection head: gelu(x @ W1 + b1) @ w2 + b2 (no HBM round trip)."""
    h = (jnp.dot(x_ref[...].astype(jnp.bfloat16), w1_ref[...],
                 preferred_element_type=jnp.float32) + b1_ref[...])
    h = jax.nn.gelu(h)
    # TODO(synk): output lane-width is 1 (masked stores), but its traffic is tiny
    #             relative to the (tm, width) input reads.
    o_ref[...] = (jnp.dot(h.astype(jnp.bfloat16), w2_ref[...],
                          preferred_element_type=jnp.float32) + b2_ref[...])


# ----------------------------------------------------------------------------
# Pallas wrappers
# ----------------------------------------------------------------------------
def mamba_block(hidden, residual, p, *, row_tile=256, col_tile_max=2048):
    """One Block / finalBlock: fused add + LayerNorm + gated mixer projection."""
    m, d = hidden.shape
    d_state2 = p["w_inz"].shape[1]
    d_state = d_state2 // 2
    d_out = p["w_out"].shape[1]

    mp, tm = _row_plan(m, row_tile)
    tn = _col_tile(d_out, col_tile_max)
    h = _pad_rows(hidden, mp)
    r = _pad_rows(residual, mp)

    out, new_res = pl.pallas_call(
        functools.partial(_block_kernel, d_state=d_state),
        out_shape=(jax.ShapeDtypeStruct((mp, d_out), jnp.float32),
                   jax.ShapeDtypeStruct((mp, d), jnp.float32)),
        grid=(mp // tm, d_out // tn),
        in_specs=[
            pl.BlockSpec((tm, d), lambda i, n: (i, 0)),           # hidden
            pl.BlockSpec((tm, d), lambda i, n: (i, 0)),           # residual
            pl.BlockSpec((1, d), lambda i, n: (0, 0)),            # ln weight
            pl.BlockSpec((1, d), lambda i, n: (0, 0)),            # ln bias
            pl.BlockSpec((d, d_state2), lambda i, n: (0, 0)),     # fused w_in||w_gate
            pl.BlockSpec((d_state, tn), lambda i, n: (0, n)),     # w_out (N-tiled)
            pl.BlockSpec((1, tn), lambda i, n: (0, n)),           # b_out (N-tiled)
        ],
        out_specs=(pl.BlockSpec((tm, tn), lambda i, n: (i, n)),   # mixer output
                   pl.BlockSpec((tm, d), lambda i, n: (i, 0))),   # new residual
        scratch_shapes=[pltpu.VMEM((tm, d_state), jnp.bfloat16)],
        compiler_params=pltpu.CompilerParams(
            dimension_semantics=("parallel", "arbitrary")),
    )(h, r, p["ln_w"], p["ln_b"], p["w_inz"], p["w_out"], p["b_out"])
    return out[:m], new_res[:m]


def add_layernorm(hidden, residual, w, b, *, row_tile=256):
    m, d = hidden.shape
    mp, tm = _row_plan(m, row_tile)
    h = _pad_rows(hidden, mp)
    r = _pad_rows(residual, mp)
    hid, res = pl.pallas_call(
        _addnorm_kernel,
        out_shape=(jax.ShapeDtypeStruct((mp, d), jnp.float32),
                   jax.ShapeDtypeStruct((mp, d), jnp.float32)),
        grid=(mp // tm,),
        in_specs=[pl.BlockSpec((tm, d), lambda i: (i, 0)),
                  pl.BlockSpec((tm, d), lambda i: (i, 0)),
                  pl.BlockSpec((1, d), lambda i: (0, 0)),
                  pl.BlockSpec((1, d), lambda i: (0, 0))],
        out_specs=(pl.BlockSpec((tm, d), lambda i: (i, 0)),
                   pl.BlockSpec((tm, d), lambda i: (i, 0))),
        compiler_params=pltpu.CompilerParams(dimension_semantics=("parallel",)),
    )(h, r, w, b)
    return hid[:m], res[:m]


def conv1x1_add_gelu(x, w, b, skip, *, row_tile=512):
    m, k = x.shape
    n = w.shape[1]
    mp, tm = _row_plan(m, row_tile)
    xp = _pad_rows(x, mp)
    sp = _pad_rows(skip, mp)
    out = pl.pallas_call(
        _conv1x1_add_gelu_kernel,
        out_shape=jax.ShapeDtypeStruct((mp, n), jnp.float32),
        grid=(mp // tm,),
        in_specs=[pl.BlockSpec((tm, k), lambda i: (i, 0)),
                  pl.BlockSpec((k, n), lambda i: (0, 0)),
                  pl.BlockSpec((1, n), lambda i: (0, 0)),
                  pl.BlockSpec((tm, n), lambda i: (i, 0))],
        out_specs=pl.BlockSpec((tm, n), lambda i: (i, 0)),
        compiler_params=pltpu.CompilerParams(dimension_semantics=("parallel",)),
    )(xp, w, b, sp)
    return out[:m]


def fno_head(x, w1, b1, w2, b2, *, row_tile=512):
    m, k = x.shape
    hdim = w1.shape[1]
    mp, tm = _row_plan(m, row_tile)
    xp = _pad_rows(x, mp)
    out = pl.pallas_call(
        _head_kernel,
        out_shape=jax.ShapeDtypeStruct((mp, 1), jnp.float32),
        grid=(mp // tm,),
        in_specs=[pl.BlockSpec((tm, k), lambda i: (i, 0)),
                  pl.BlockSpec((k, hdim), lambda i: (0, 0)),
                  pl.BlockSpec((1, hdim), lambda i: (0, 0)),
                  pl.BlockSpec((hdim, 1), lambda i: (0, 0)),
                  pl.BlockSpec((1, 1), lambda i: (0, 0))],
        out_specs=pl.BlockSpec((tm, 1), lambda i: (i, 0)),
        compiler_params=pltpu.CompilerParams(dimension_semantics=("parallel",)),
    )(xp, w1, b1, w2, b2)
    return out[:m]


# ----------------------------------------------------------------------------
# FNO2d (synthesized) — spectral conv FFT / complex einsum stays in JAX glue
# ----------------------------------------------------------------------------
def spectral_conv2d_nhwc(x, w1, w2, modes1, modes2):
    # x: (N, H, W, C) f32 channel-last; w1/w2: (Cin, Cout, modes1, modes2) complex64
    n, h, w, c = x.shape
    xft = jnp.fft.rfft2(x, axes=(1, 2))                     # (N, H, W//2+1, C)
    out_ft = jnp.zeros((n, h, w // 2 + 1, c), dtype=jnp.complex64)
    out_ft = out_ft.at[:, :modes1, :modes2, :].set(
        jnp.einsum("bxyi,ioxy->bxyo", xft[:, :modes1, :modes2, :], w1))
    out_ft = out_ft.at[:, -modes1:, :modes2, :].set(
        jnp.einsum("bxyi,ioxy->bxyo", xft[:, -modes1:, :modes2, :], w2))
    return jnp.fft.irfft2(out_ft, s=(h, w), axes=(1, 2)).astype(jnp.float32)


def fno2d(x, p, modes1, modes2):
    # x: (N, H, W, 1) -> (N, H, W, 1), all N = B*L timestep images batched.
    n, h, w, _ = x.shape
    width = p["fc0_w"].shape[1]
    # fc0 lifting (in-channel = 1): broadcast multiply in plain JAX (XLA-fused,
    # avoids lane-width-1 Pallas loads).
    v = x * p["fc0_w"].reshape(1, 1, 1, width) + p["fc0_b"].reshape(1, 1, 1, width)
    # Fourier layer: spectral conv (channel-last, no transposes) + fused 1x1 conv
    # + skip add + GELU (Pallas).
    x1 = spectral_conv2d_nhwc(v, p["sc_w1"], p["sc_w2"], modes1, modes2)
    v = conv1x1_add_gelu(v.reshape(n * h * w, width),
                         p["wc_w"], p["wc_b"],
                         x1.reshape(n * h * w, width))
    # fused projection head fc1(gelu) + fc2
    out = fno_head(v, p["fc1_w"], p["fc1_b"], p["fc2_w"], p["fc2_b"])
    return out.reshape(n, h, w, 1)


# ----------------------------------------------------------------------------
# Full model forward (mirrors MambaPOD_time_FNO.forward)
# ----------------------------------------------------------------------------
def mamba_pod_time_fno_forward(x, params, *, hf, wf, modes1, modes2):
    bsz, seq, d = x.shape
    hidden = x.reshape(bsz * seq, d).astype(jnp.float32)
    residual = jnp.zeros_like(hidden)          # residual is None for the first Block
    for lp in params["layers"]:
        hidden, residual = mamba_block(hidden, residual, lp)
    # norm_f: residual = residual + hidden; hidden = LayerNorm(residual)
    hidden, residual = add_layernorm(hidden, residual,
                                     params["norm_f_w"], params["norm_f_b"])
    # finalBlock (mixer projects to d_model_out = Hf * Wf)
    out, _ = mamba_block(hidden, residual, params["final_block"])
    # The reference loops FNO2d over the L timestep slices of (B, Hf, Wf, L);
    # that is identical to batching L into the leading dim: (B*L, Hf, Wf, 1).
    x_fno = out.reshape(bsz * seq, hf, wf, 1)
    y = fno2d(x_fno, params["fno"], modes1, modes2)        # (B*L, Hf, Wf, 1)
    return y.reshape(bsz, seq, hf * wf)                    # == permute+flatten(2)


# ----------------------------------------------------------------------------
# Deterministic parameter init
# ----------------------------------------------------------------------------
def init_params(key, d_model, d_state, num_blocks, hf, wf, width):
    keys = iter(jax.random.split(key, 64))

    def dense(shape, fan_in, dtype=jnp.bfloat16):
        return ((1.0 / jnp.sqrt(fan_in)) *
                jax.random.normal(next(keys), shape)).astype(dtype)

    def mixer_params(d_out):
        return dict(
            ln_w=jnp.ones((1, d_model), jnp.float32),
            ln_b=jnp.zeros((1, d_model), jnp.float32),
            # fused [w_in || w_gate]  (bf16 MXU operands)
            w_inz=dense((d_model, 2 * d_state), d_model),
            w_out=dense((d_state, d_out), d_state),
            b_out=jnp.zeros((1, d_out), jnp.float32),
        )

    layers = [mixer_params(d_model) for _ in range(num_blocks - 1)]
    final_block = mixer_params(hf * wf)

    def cplx(shape, scale):
        re = jax.random.normal(next(keys), shape, jnp.float32)
        im = jax.random.normal(next(keys), shape, jnp.float32)
        return (scale * (re + 1j * im)).astype(jnp.complex64)

    sc_scale = 1.0 / (width * width)
    fno = dict(
        fc0_w=dense((1, width), 1, jnp.float32),
        fc0_b=jnp.zeros((1, width), jnp.float32),
        sc_w1=cplx((width, width, 6, 3), sc_scale),   # modes set at call site
        sc_w2=cplx((width, width, 6, 3), sc_scale),
        wc_w=dense((width, width), width),
        wc_b=jnp.zeros((1, width), jnp.float32),
        fc1_w=dense((width, 32), width),
        fc1_b=jnp.zeros((1, 32), jnp.float32),
        fc2_w=dense((32, 1), 32),
        fc2_b=jnp.zeros((1, 1), jnp.float32),
    )
    return dict(
        layers=layers,
        final_block=final_block,
        norm_f_w=jnp.ones((1, d_model), jnp.float32),
        norm_f_b=jnp.zeros((1, d_model), jnp.float32),
        fno=fno,
    )


if __name__ == "__main__":
    # Small shapes consistent with the module's forward:
    #   x: (B, L, d_model); finalBlock projects to d_model_out = Hf * Wf, reshaped
    #   onto the (Hf, Wf) POD grid (384 x 199 in the original, scaled down here).
    B, L, D_MODEL = 2, 8, 16
    D_STATE = 32
    NUM_BLOCKS = 3            # 2 intermediate Blocks + 1 finalBlock
    HF, WF = 16, 8            # stand-in for the hard-coded 384 x 199 grid
    WIDTH, MODES1, MODES2 = 12, 6, 3

    key = jax.random.PRNGKey(0)
    kx, kp = jax.random.split(key)
    x = jax.random.normal(kx, (B, L, D_MODEL), jnp.float32)
    params = init_params(kp, D_MODEL, D_STATE, NUM_BLOCKS, HF, WF, WIDTH)

    fwd = jax.jit(functools.partial(mamba_pod_time_fno_forward,
                                    hf=HF, wf=WF, modes1=MODES1, modes2=MODES2))
    out = fwd(x, params)
    out = jax.block_until_ready(out)
    assert out.shape == (B, L, HF * WF), out.shape
    assert bool(jnp.all(jnp.isfinite(out)))
    print("KERNEL_OK")
</pallas_src>

<mosaic_0001>
module attributes {stable_mosaic.version = 11 : i64} {
  func.func @_block_kernel(%arg0: i32, %arg1: i32, %arg2: memref<16x16xf32, #tpu.memory_space<vmem>>, %arg3: memref<16x16xf32, #tpu.memory_space<vmem>>, %arg4: memref<1x16xf32, #tpu.memory_space<vmem>>, %arg5: memref<1x16xf32, #tpu.memory_space<vmem>>, %arg6: memref<16x64xbf16, #tpu.memory_space<vmem>>, %arg7: memref<32x16xbf16, #tpu.memory_space<vmem>>, %arg8: memref<1x16xf32, #tpu.memory_space<vmem>>, %arg9: memref<16x16xf32, #tpu.memory_space<vmem>>, %arg10: memref<16x16xf32, #tpu.memory_space<vmem>>, %arg11: memref<16x32xbf16, #tpu.memory_space<vmem>>) attributes {dimension_semantics = [#tpu.dimension_semantics<parallel>, #tpu.dimension_semantics<arbitrary>], iteration_bounds = array<i64: 1, 1>, scalar_prefetch = 0 : i64, scratch_operands = 1 : i64, tpu.core_type = #tpu.core_type<tc>, window_params = [{transform_indices = @transform_0, window_bounds = array<i64: 16, 16>}, {transform_indices = @transform_1, window_bounds = array<i64: 16, 16>}, {pipeline_mode = #tpu.pipeline_mode<synchronous>, transform_indices = @transform_2, window_bounds = array<i64: 1, 16>}, {pipeline_mode = #tpu.pipeline_mode<synchronous>, transform_indices = @transform_3, window_bounds = array<i64: 1, 16>}, {pipeline_mode = #tpu.pipeline_mode<synchronous>, transform_indices = @transform_4, window_bounds = array<i64: 16, 64>}, {transform_indices = @transform_5, window_bounds = array<i64: 32, 16>}, {transform_indices = @transform_6, window_bounds = array<i64: 1, 16>}, {transform_indices = @transform_7, window_bounds = array<i64: 16, 16>}, {transform_indices = @transform_8, window_bounds = array<i64: 16, 16>}]} {
    %c0_i32 = arith.constant 0 : i32
    %0 = arith.cmpi eq, %arg1, %c0_i32 : i32
    %1 = arith.extui %0 : i1 to i32
    %c0_i32_0 = arith.constant 0 : i32
    %2 = arith.cmpi ne, %1, %c0_i32_0 : i32
    scf.if %2 {
      %c0_8 = arith.constant 0 : index
      %c0_9 = arith.constant 0 : index
      %10 = vector.load %arg2[%c0_8, %c0_9] : memref<16x16xf32, #tpu.memory_space<vmem>>, vector<16x16xf32>
      %c0_10 = arith.constant 0 : index
      %c0_11 = arith.constant 0 : index
      %11 = vector.load %arg3[%c0_10, %c0_11] : memref<16x16xf32, #tpu.memory_space<vmem>>, vector<16x16xf32>
      %12 = arith.addf %11, %10 : vector<16x16xf32>
      %c0_12 = arith.constant 0 : index
      %c0_13 = arith.constant 0 : index
      %13 = vector.load %arg10[%c0_12, %c0_13] : memref<16x16xf32, #tpu.memory_space<vmem>>, vector<16x16xf32>
      tpu.vector_store %arg10[%c0_12, %c0_13], %12 {strides = array<i32>} : memref<16x16xf32, #tpu.memory_space<vmem>>, vector<16x16xf32>,
      %cst_14 = arith.constant dense<0.000000e+00> : vector<16xf32>
      %14 = vector.multi_reduction <add>, %12, %cst_14 [1] : vector<16x16xf32> to vector<16xf32>
      %15 = vector.shape_cast %14 : vector<16xf32> to vector<16x1xf32>
      %cst_15 = arith.constant 1.600000e+01 : f32
      %16 = vector.broadcast %cst_15 : f32 to vector<16x1xf32>
      %17 = arith.divf %15, %16 : vector<16x1xf32>
      %18 = vector.broadcast %17 : vector<16x1xf32> to vector<16x16xf32>
      %19 = arith.subf %12, %18 : vector<16x16xf32>
      %20 = arith.mulf %19, %19 : vector<16x16xf32>
      %cst_16 = arith.constant dense<0.000000e+00> : vector<16xf32>
      %21 = vector.multi_reduction <add>, %20, %cst_16 [1] : vector<16x16xf32> to vector<16xf32>
      %22 = vector.shape_cast %21 : vector<16xf32> to vector<16x1xf32>
      %cst_17 = arith.constant 1.600000e+01 : f32
      %23 = vector.broadcast %cst_17 : f32 to vector<16x1xf32>
      %24 = arith.divf %22, %23 : vector<16x1xf32>
      %cst_18 = arith.constant 9.99999974E-6 : f32
      %25 = vector.broadcast %cst_18 : f32 to vector<16x1xf32>
      %26 = arith.addf %24, %25 : vector<16x1xf32>
      %27 = math.rsqrt %26 : vector<16x1xf32>
      %28 = vector.broadcast %27 : vector<16x1xf32> to vector<16x16xf32>
      %29 = arith.mulf %19, %28 : vector<16x16xf32>
      %c0_19 = arith.constant 0 : index
      %c0_20 = arith.constant 0 : index
      %30 = vector.load %arg4[%c0_19, %c0_20] : memref<1x16xf32, #tpu.memory_space<vmem>>, vector<1x16xf32>
      %31 = vector.broadcast %30 : vector<1x16xf32> to vector<16x16xf32>
      %32 = arith.mulf %29, %31 : vector<16x16xf32>
      %c0_21 = arith.constant 0 : index
      %c0_22 = arith.constant 0 : index
      %33 = vector.load %arg5[%c0_21, %c0_22] : memref<1x16xf32, #tpu.memory_space<vmem>>, vector<1x16xf32>
      %34 = vector.broadcast %33 : vector<1x16xf32> to vector<16x16xf32>
      %35 = arith.addf %32, %34 : vector<16x16xf32>
      %36 = arith.truncf %35 : vector<16x16xf32> to vector<16x16xbf16>
      %c0_23 = arith.constant 0 : index
      %c0_24 = arith.constant 0 : index
      %37 = vector.load %arg6[%c0_23, %c0_24] : memref<16x64xbf16, #tpu.memory_space<vmem>>, vector<16x64xbf16>
      %cst_25 = arith.constant dense<0.000000e+00> : vector<16x64xf32>
      %38 = tpu.matmul %36, %37, %cst_25 {dimension_numbers = #tpu.dot_dimension_numbers<[1], [0], [0], [1], [0, 0, 1, 1], [], []>} : vector<16x16xbf16>, vector<16x64xbf16>, vector<16x64xf32> -> vector<16x64xf32>
      %39 = vector.extract_strided_slice %38 {offsets = [0, 0], sizes = [16, 32], strides = [1, 1]} : vector<16x64xf32> to vector<16x32xf32>
      %40 = vector.extract_strided_slice %38 {offsets = [0, 32], sizes = [16, 32], strides = [1, 1]} : vector<16x64xf32> to vector<16x32xf32>
      %41 = arith.negf %40 : vector<16x32xf32>
      %42 = math.exp %41 : vector<16x32xf32>
      %cst_26 = arith.constant 1.000000e+00 : f32
      %43 = vector.broadcast %cst_26 : f32 to vector<16x32xf32>
      %44 = arith.addf %43, %42 : vector<16x32xf32>
      %45 = arith.divf %43, %44 : vector<16x32xf32>
      %46 = arith.mulf %40, %45 : vector<16x32xf32>
      %47 = arith.mulf %39, %46 : vector<16x32xf32>
      %48 = arith.truncf %47 : vector<16x32xf32> to vector<16x32xbf16>
      %c0_27 = arith.constant 0 : index
      %c0_28 = arith.constant 0 : index
      %49 = vector.load %arg11[%c0_27, %c0_28] : memref<16x32xbf16, #tpu.memory_space<vmem>>, vector<16x32xbf16>
      tpu.vector_store %arg11[%c0_27, %c0_28], %48 {strides = array<i32>} : memref<16x32xbf16, #tpu.memory_space<vmem>>, vector<16x32xbf16>,
    } else {
    }
    %c0 = arith.constant 0 : index
    %c0_1 = arith.constant 0 : index
    %3 = vector.load %arg11[%c0, %c0_1] : memref<16x32xbf16, #tpu.memory_space<vmem>>, vector<16x32xbf16>
    %c0_2 = arith.constant 0 : index
    %c0_3 = arith.constant 0 : index
    %4 = vector.load %arg7[%c0_2, %c0_3] : memref<32x16xbf16, #tpu.memory_space<vmem>>, vector<32x16xbf16>
    %cst = arith.constant dense<0.000000e+00> : vector<16x16xf32>
    %5 = tpu.matmul %3, %4, %cst {dimension_numbers = #tpu.dot_dimension_numbers<[1], [0], [0], [1], [0, 0, 1, 1], [], []>} : vector<16x32xbf16>, vector<32x16xbf16>, vector<16x16xf32> -> vector<16x16xf32>
    %c0_4 = arith.constant 0 : index
    %c0_5 = arith.constant 0 : index
    %6 = vector.load %arg8[%c0_4, %c0_5] : memref<1x16xf32, #tpu.memory_space<vmem>>, vector<1x16xf32>
    %7 = vector.broadcast %6 : vector<1x16xf32> to vector<16x16xf32>
    %8 = arith.addf %5, %7 : vector<16x16xf32>
    %c0_6 = arith.constant 0 : index
    %c0_7 = arith.constant 0 : index
    %9 = vector.load %arg9[%c0_6, %c0_7] : memref<16x16xf32, #tpu.memory_space<vmem>>, vector<16x16xf32>
    tpu.vector_store %arg9[%c0_6, %c0_7], %8 {strides = array<i32>} : memref<16x16xf32, #tpu.memory_space<vmem>>, vector<16x16xf32>,
    return
  }
  func.func @transform_0(%arg0: i32, %arg1: i32) -> (i32, i32) {
    %c0_i32 = arith.constant 0 : i32
    %c0_i32_0 = arith.constant 0 : i32
    return %arg0, %c0_i32 : i32, i32
  }
  func.func @transform_1(%arg0: i32, %arg1: i32) -> (i32, i32) {
    %c0_i32 = arith.constant 0 : i32
    %c0_i32_0 = arith.constant 0 : i32
    return %arg0, %c0_i32 : i32, i32
  }
  func.func @transform_2(%arg0: i32, %arg1: i32) -> (i32, i32) {
    %c0_i32 = arith.constant 0 : i32
    %c0_i32_0 = arith.constant 0 : i32
    %c0_i32_1 = arith.constant 0 : i32
    return %c0_i32, %c0_i32_0 : i32, i32
  }
  func.func @transform_3(%arg0: i32, %arg1: i32) -> (i32, i32) {
    %c0_i32 = arith.constant 0 : i32
    %c0_i32_0 = arith.constant 0 : i32
    %c0_i32_1 = arith.constant 0 : i32
    return %c0_i32, %c0_i32_0 : i32, i32
  }
  func.func @transform_4(%arg0: i32, %arg1: i32) -> (i32, i32) {
    %c0_i32 = arith.constant 0 : i32
    %c0_i32_0 = arith.constant 0 : i32
    %c0_i32_1 = arith.constant 0 : i32
    return %c0_i32, %c0_i32_0 : i32, i32
  }
  func.func @transform_5(%arg0: i32, %arg1: i32) -> (i32, i32) {
    %c0_i32 = arith.constant 0 : i32
    %c0_i32_0 = arith.constant 0 : i32
    return %c0_i32, %arg1 : i32, i32
  }
  func.func @transform_6(%arg0: i32, %arg1: i32) -> (i32, i32) {
    %c0_i32 = arith.constant 0 : i32
    %c0_i32_0 = arith.constant 0 : i32
    return %c0_i32, %arg1 : i32, i32
  }
  func.func @transform_7(%arg0: i32, %arg1: i32) -> (i32, i32) {
    %c0_i32 = arith.constant 0 : i32
    return %arg0, %arg1 : i32, i32
  }
  func.func @transform_8(%arg0: i32, %arg1: i32) -> (i32, i32) {
    %c0_i32 = arith.constant 0 : i32
    %c0_i32_0 = arith.constant 0 : i32
    return %arg0, %c0_i32 : i32, i32
  }
}

module attributes {stable_mosaic.version = 11 : i64} {
  func.func @_addnorm_kernel(%arg0: i32, %arg1: memref<16x16xf32, #tpu.memory_space<vmem>>, %arg2: memref<16x16xf32, #tpu.memory_space<vmem>>, %arg3: memref<1x16xf32, #tpu.memory_space<vmem>>, %arg4: memref<1x16xf32, #tpu.memory_space<vmem>>, %arg5: memref<16x16xf32, #tpu.memory_space<vmem>>, %arg6: memref<16x16xf32, #tpu.memory_space<vmem>>) attributes {dimension_semantics = [#tpu.dimension_semantics<parallel>], iteration_bounds = array<i64: 1>, scalar_prefetch = 0 : i64, scratch_operands = 0 : i64, tpu.core_type = #tpu.core_type<tc>, window_params = [{transform_indices = @transform_0, window_bounds = array<i64: 16, 16>}, {transform_indices = @transform_1, window_bounds = array<i64: 16, 16>}, {pipeline_mode = #tpu.pipeline_mode<synchronous>, transform_indices = @transform_2, window_bounds = array<i64: 1, 16>}, {pipeline_mode = #tpu.pipeline_mode<synchronous>, transform_indices = @transform_3, window_bounds = array<i64: 1, 16>}, {transform_indices = @transform_4, window_bounds = array<i64: 16, 16>}, {transform_indices = @transform_5, window_bounds = array<i64: 16, 16>}]} {
    %c0 = arith.constant 0 : index
    %c0_0 = arith.constant 0 : index
    %0 = vector.load %arg2[%c0, %c0_0] : memref<16x16xf32, #tpu.memory_space<vmem>>, vector<16x16xf32>
    %c0_1 = arith.constant 0 : index
    %c0_2 = arith.constant 0 : index
    %1 = vector.load %arg1[%c0_1, %c0_2] : memref<16x16xf32, #tpu.memory_space<vmem>>, vector<16x16xf32>
    %2 = arith.addf %0, %1 : vector<16x16xf32>
    %c0_3 = arith.constant 0 : index
    %c0_4 = arith.constant 0 : index
    %3 = vector.load %arg6[%c0_3, %c0_4] : memref<16x16xf32, #tpu.memory_space<vmem>>, vector<16x16xf32>
    tpu.vector_store %arg6[%c0_3, %c0_4], %2 {strides = array<i32>} : memref<16x16xf32, #tpu.memory_space<vmem>>, vector<16x16xf32>,
    %cst = arith.constant dense<0.000000e+00> : vector<16xf32>
    %4 = vector.multi_reduction <add>, %2, %cst [1] : vector<16x16xf32> to vector<16xf32>
    %5 = vector.shape_cast %4 : vector<16xf32> to vector<16x1xf32>
    %cst_5 = arith.constant 1.600000e+01 : f32
    %6 = vector.broadcast %cst_5 : f32 to vector<16x1xf32>
    %7 = arith.divf %5, %6 : vector<16x1xf32>
    %8 = vector.broadcast %7 : vector<16x1xf32> to vector<16x16xf32>
    %9 = arith.subf %2, %8 : vector<16x16xf32>
    %10 = arith.mulf %9, %9 : vector<16x16xf32>
    %cst_6 = arith.constant dense<0.000000e+00> : vector<16xf32>
    %11 = vector.multi_reduction <add>, %10, %cst_6 [1] : vector<16x16xf32> to vector<16xf32>
    %12 = vector.shape_cast %11 : vector<16xf32> to vector<16x1xf32>
    %cst_7 = arith.constant 1.600000e+01 : f32
    %13 = vector.broadcast %cst_7 : f32 to vector<16x1xf32>
    %14 = arith.divf %12, %13 : vector<16x1xf32>
    %cst_8 = arith.constant 9.99999974E-6 : f32
    %15 = vector.broadcast %cst_8 : f32 to vector<16x1xf32>
    %16 = arith.addf %14, %15 : vector<16x1xf32>
    %17 = math.rsqrt %16 : vector<16x1xf32>
    %18 = vector.broadcast %17 : vector<16x1xf32> to vector<16x16xf32>
    %19 = arith.mulf %9, %18 : vector<16x16xf32>
    %c0_9 = arith.constant 0 : index
    %c0_10 = arith.constant 0 : index
    %20 = vector.load %arg3[%c0_9, %c0_10] : memref<1x16xf32, #tpu.memory_space<vmem>>, vector<1x16xf32>
    %21 = vector.broadcast %20 : vector<1x16xf32> to vector<16x16xf32>
    %22 = arith.mulf %19, %21 : vector<16x16xf32>
    %c0_11 = arith.constant 0 : index
    %c0_12 = arith.constant 0 : index
    %23 = vector.load %arg4[%c0_11, %c0_12] : memref<1x16xf32, #tpu.memory_space<vmem>>, vector<1x16xf32>
    %24 = vector.broadcast %23 : vector<1x16xf32> to vector<16x16xf32>
    %25 = arith.addf %22, %24 : vector<16x16xf32>
    %c0_13 = arith.constant 0 : index
    %c0_14 = arith.constant 0 : index
    %26 = vector.load %arg5[%c0_13, %c0_14] : memref<16x16xf32, #tpu.memory_space<vmem>>, vector<16x16xf32>
    tpu.vector_store %arg5[%c0_13, %c0_14], %25 {strides = array<i32>} : memref<16x16xf32, #tpu.memory_space<vmem>>, vector<16x16xf32>,
    return
  }
  func.func @transform_0(%arg0: i32) -> (i32, i32) {
    %c0_i32 = arith.constant 0 : i32
    %c0_i32_0 = arith.constant 0 : i32
    return %arg0, %c0_i32 : i32, i32
  }
  func.func @transform_1(%arg0: i32) -> (i32, i32) {
    %c0_i32 = arith.constant 0 : i32
    %c0_i32_0 = arith.constant 0 : i32
    return %arg0, %c0_i32 : i32, i32
  }
  func.func @transform_2(%arg0: i32) -> (i32, i32) {
    %c0_i32 = arith.constant 0 : i32
    %c0_i32_0 = arith.constant 0 : i32
    %c0_i32_1 = arith.constant 0 : i32
    return %c0_i32, %c0_i32_0 : i32, i32
  }
  func.func @transform_3(%arg0: i32) -> (i32, i32) {
    %c0_i32 = arith.constant 0 : i32
    %c0_i32_0 = arith.constant 0 : i32
    %c0_i32_1 = arith.constant 0 : i32
    return %c0_i32, %c0_i32_0 : i32, i32
  }
  func.func @transform_4(%arg0: i32) -> (i32, i32) {
    %c0_i32 = arith.constant 0 : i32
    %c0_i32_0 = arith.constant 0 : i32
    return %arg0, %c0_i32 : i32, i32
  }
  func.func @transform_5(%arg0: i32) -> (i32, i32) {
    %c0_i32 = arith.constant 0 : i32
    %c0_i32_0 = arith.constant 0 : i32
    return %arg0, %c0_i32 : i32, i32
  }
}

module attributes {stable_mosaic.version = 11 : i64} {
  func.func @_block_kernel(%arg0: i32, %arg1: i32, %arg2: memref<16x16xf32, #tpu.memory_space<vmem>>, %arg3: memref<16x16xf32, #tpu.memory_space<vmem>>, %arg4: memref<1x16xf32, #tpu.memory_space<vmem>>, %arg5: memref<1x16xf32, #tpu.memory_space<vmem>>, %arg6: memref<16x64xbf16, #tpu.memory_space<vmem>>, %arg7: memref<32x128xbf16, #tpu.memory_space<vmem>>, %arg8: memref<1x128xf32, #tpu.memory_space<vmem>>, %arg9: memref<16x128xf32, #tpu.memory_space<vmem>>, %arg10: memref<16x16xf32, #tpu.memory_space<vmem>>, %arg11: memref<16x32xbf16, #tpu.memory_space<vmem>>) attributes {dimension_semantics = [#tpu.dimension_semantics<parallel>, #tpu.dimension_semantics<arbitrary>], iteration_bounds = array<i64: 1, 1>, scalar_prefetch = 0 : i64, scratch_operands = 1 : i64, tpu.core_type = #tpu.core_type<tc>, window_params = [{transform_indices = @transform_0, window_bounds = array<i64: 16, 16>}, {transform_indices = @transform_1, window_bounds = array<i64: 16, 16>}, {pipeline_mode = #tpu.pipeline_mode<synchronous>, transform_indices = @transform_2, window_bounds = array<i64: 1, 16>}, {pipeline_mode = #tpu.pipeline_mode<synchronous>, transform_indices = @transform_3, window_bounds = array<i64: 1, 16>}, {pipeline_mode = #tpu.pipeline_mode<synchronous>, transform_indices = @transform_4, window_bounds = array<i64: 16, 64>}, {transform_indices = @transform_5, window_bounds = array<i64: 32, 128>}, {transform_indices = @transform_6, window_bounds = array<i64: 1, 128>}, {transform_indices = @transform_7, window_bounds = array<i64: 16, 128>}, {transform_indices = @transform_8, window_bounds = array<i64: 16, 16>}]} {
    %c0_i32 = arith.constant 0 : i32
    %0 = arith.cmpi eq, %arg1, %c0_i32 : i32
    %1 = arith.extui %0 : i1 to i32
    %c0_i32_0 = arith.constant 0 : i32
    %2 = arith.cmpi ne, %1, %c0_i32_0 : i32
    scf.if %2 {
      %c0_8 = arith.constant 0 : index
      %c0_9 = arith.constant 0 : index
      %10 = vector.load %arg2[%c0_8, %c0_9] : memref<16x16xf32, #tpu.memory_space<vmem>>, vector<16x16xf32>
      %c0_10 = arith.constant 0 : index
      %c0_11 = arith.constant 0 : index
      %11 = vector.load %arg3[%c0_10, %c0_11] : memref<16x16xf32, #tpu.memory_space<vmem>>, vector<16x16xf32>
      %12 = arith.addf %11, %10 : vector<16x16xf32>
      %c0_12 = arith.constant 0 : index
      %c0_13 = arith.constant 0 : index
      %13 = vector.load %arg10[%c0_12, %c0_13] : memref<16x16xf32, #tpu.memory_space<vmem>>, vector<16x16xf32>
      tpu.vector_store %arg10[%c0_12, %c0_13], %12 {strides = array<i32>} : memref<16x16xf32, #tpu.memory_space<vmem>>, vector<16x16xf32>,
      %cst_14 = arith.constant dense<0.000000e+00> : vector<16xf32>
      %14 = vector.multi_reduction <add>, %12, %cst_14 [1] : vector<16x16xf32> to vector<16xf32>
      %15 = vector.shape_cast %14 : vector<16xf32> to vector<16x1xf32>
      %cst_15 = arith.constant 1.600000e+01 : f32
      %16 = vector.broadcast %cst_15 : f32 to vector<16x1xf32>
      %17 = arith.divf %15, %16 : vector<16x1xf32>
      %18 = vector.broadcast %17 : vector<16x1xf32> to vector<16x16xf32>
      %19 = arith.subf %12, %18 : vector<16x16xf32>
      %20 = arith.mulf %19, %19 : vector<16x16xf32>
      %cst_16 = arith.constant dense<0.000000e+00> : vector<16xf32>
      %21 = vector.multi_reduction <add>, %20, %cst_16 [1] : vector<16x16xf32> to vector<16xf32>
      %22 = vector.shape_cast %21 : vector<16xf32> to vector<16x1xf32>
      %cst_17 = arith.constant 1.600000e+01 : f32
      %23 = vector.broadcast %cst_17 : f32 to vector<16x1xf32>
      %24 = arith.divf %22, %23 : vector<16x1xf32>
      %cst_18 = arith.constant 9.99999974E-6 : f32
      %25 = vector.broadcast %cst_18 : f32 to vector<16x1xf32>
      %26 = arith.addf %24, %25 : vector<16x1xf32>
      %27 = math.rsqrt %26 : vector<16x1xf32>
      %28 = vector.broadcast %27 : vector<16x1xf32> to vector<16x16xf32>
      %29 = arith.mulf %19, %28 : vector<16x16xf32>
      %c0_19 = arith.constant 0 : index
      %c0_20 = arith.constant 0 : index
      %30 = vector.load %arg4[%c0_19, %c0_20] : memref<1x16xf32, #tpu.memory_space<vmem>>, vector<1x16xf32>
      %31 = vector.broadcast %30 : vector<1x16xf32> to vector<16x16xf32>
      %32 = arith.mulf %29, %31 : vector<16x16xf32>
      %c0_21 = arith.constant 0 : index
      %c0_22 = arith.constant 0 : index
      %33 = vector.load %arg5[%c0_21, %c0_22] : memref<1x16xf32, #tpu.memory_space<vmem>>, vector<1x16xf32>
      %34 = vector.broadcast %33 : vector<1x16xf32> to vector<16x16xf32>
      %35 = arith.addf %32, %34 : vector<16x16xf32>
      %36 = arith.truncf %35 : vector<16x16xf32> to vector<16x16xbf16>
      %c0_23 = arith.constant 0 : index
      %c0_24 = arith.constant 0 : index
      %37 = vector.load %arg6[%c0_23, %c0_24] : memref<16x64xbf16, #tpu.memory_space<vmem>>, vector<16x64xbf16>
      %cst_25 = arith.constant dense<0.000000e+00> : vector<16x64xf32>
      %38 = tpu.matmul %36, %37, %cst_25 {dimension_numbers = #tpu.dot_dimension_numbers<[1], [0], [0], [1], [0, 0, 1, 1], [], []>} : vector<16x16xbf16>, vector<16x64xbf16>, vector<16x64xf32> -> vector<16x64xf32>
      %39 = vector.extract_strided_slice %38 {offsets = [0, 0], sizes = [16, 32], strides = [1, 1]} : vector<16x64xf32> to vector<16x32xf32>
      %40 = vector.extract_strided_slice %38 {offsets = [0, 32], sizes = [16, 32], strides = [1, 1]} : vector<16x64xf32> to vector<16x32xf32>
      %41 = arith.negf %40 : vector<16x32xf32>
      %42 = math.exp %41 : vector<16x32xf32>
      %cst_26 = arith.constant 1.000000e+00 : f32
      %43 = vector.broadcast %cst_26 : f32 to vector<16x32xf32>
      %44 = arith.addf %43, %42 : vector<16x32xf32>
      %45 = arith.divf %43, %44 : vector<16x32xf32>
      %46 = arith.mulf %40, %45 : vector<16x32xf32>
      %47 = arith.mulf %39, %46 : vector<16x32xf32>
      %48 = arith.truncf %47 : vector<16x32xf32> to vector<16x32xbf16>
      %c0_27 = arith.constant 0 : index
      %c0_28 = arith.constant 0 : index
      %49 = vector.load %arg11[%c0_27, %c0_28] : memref<16x32xbf16, #tpu.memory_space<vmem>>, vector<16x32xbf16>
      tpu.vector_store %arg11[%c0_27, %c0_28], %48 {strides = array<i32>} : memref<16x32xbf16, #tpu.memory_space<vmem>>, vector<16x32xbf16>,
    } else {
    }
    %c0 = arith.constant 0 : index
    %c0_1 = arith.constant 0 : index
    %3 = vector.load %arg11[%c0, %c0_1] : memref<16x32xbf16, #tpu.memory_space<vmem>>, vector<16x32xbf16>
    %c0_2 = arith.constant 0 : index
    %c0_3 = arith.constant 0 : index
    %4 = vector.load %arg7[%c0_2, %c0_3] : memref<32x128xbf16, #tpu.memory_space<vmem>>, vector<32x128xbf16>
    %cst = arith.constant dense<0.000000e+00> : vector<16x128xf32>
    %5 = tpu.matmul %3, %4, %cst {dimension_numbers = #tpu.dot_dimension_numbers<[1], [0], [0], [1], [0, 0, 1, 1], [], []>} : vector<16x32xbf16>, vector<32x128xbf16>, vector<16x128xf32> -> vector<16x128xf32>
    %c0_4 = arith.constant 0 : index
    %c0_5 = arith.constant 0 : index
    %6 = vector.load %arg8[%c0_4, %c0_5] : memref<1x128xf32, #tpu.memory_space<vmem>>, vector<1x128xf32>
    %7 = vector.broadcast %6 : vector<1x128xf32> to vector<16x128xf32>
    %8 = arith.addf %5, %7 : vector<16x128xf32>
    %c0_6 = arith.constant 0 : index
    %c0_7 = arith.constant 0 : index
    %9 = vector.load %arg9[%c0_6, %c0_7] : memref<16x128xf32, #tpu.memory_space<vmem>>, vector<16x128xf32>
    tpu.vector_store %arg9[%c0_6, %c0_7], %8 {strides = array<i32>} : memref<16x128xf32, #tpu.memory_space<vmem>>, vector<16x128xf32>,
    return
  }
  func.func @transform_0(%arg0: i32, %arg1: i32) -> (i32, i32) {
    %c0_i32 = arith.constant 0 : i32
    %c0_i32_0 = arith.constant 0 : i32
    return %arg0, %c0_i32 : i32, i32
  }
  func.func @transform_1(%arg0: i32, %arg1: i32) -> (i32, i32) {
    %c0_i32 = arith.constant 0 : i32
    %c0_i32_0 = arith.constant 0 : i32
    return %arg0, %c0_i32 : i32, i32
  }
  func.func @transform_2(%arg0: i32, %arg1: i32) -> (i32, i32) {
    %c0_i32 = arith.constant 0 : i32
    %c0_i32_0 = arith.constant 0 : i32
    %c0_i32_1 = arith.constant 0 : i32
    return %c0_i32, %c0_i32_0 : i32, i32
  }
  func.func @transform_3(%arg0: i32, %arg1: i32) -> (i32, i32) {
    %c0_i32 = arith.constant 0 : i32
    %c0_i32_0 = arith.constant 0 : i32
    %c0_i32_1 = arith.constant 0 : i32
    return %c0_i32, %c0_i32_0 : i32, i32
  }
  func.func @transform_4(%arg0: i32, %arg1: i32) -> (i32, i32) {
    %c0_i32 = arith.constant 0 : i32
    %c0_i32_0 = arith.constant 0 : i32
    %c0_i32_1 = arith.constant 0 : i32
    return %c0_i32, %c0_i32_0 : i32, i32
  }
  func.func @transform_5(%arg0: i32, %arg1: i32) -> (i32, i32) {
    %c0_i32 = arith.constant 0 : i32
    %c0_i32_0 = arith.constant 0 : i32
    return %c0_i32, %arg1 : i32, i32
  }
  func.func @transform_6(%arg0: i32, %arg1: i32) -> (i32, i32) {
    %c0_i32 = arith.constant 0 : i32
    %c0_i32_0 = arith.constant 0 : i32
    return %c0_i32, %arg1 : i32, i32
  }
  func.func @transform_7(%arg0: i32, %arg1: i32) -> (i32, i32) {
    %c0_i32 = arith.constant 0 : i32
    return %arg0, %arg1 : i32, i32
  }
  func.func @transform_8(%arg0: i32, %arg1: i32) -> (i32, i32) {
    %c0_i32 = arith.constant 0 : i32
    %c0_i32_0 = arith.constant 0 : i32
    return %arg0, %c0_i32 : i32, i32
  }
}

module attributes {stable_mosaic.version = 11 : i64} {
  func.func @_conv1x1_add_gelu_kernel(%arg0: i32, %arg1: memref<512x12xf32, #tpu.memory_space<vmem>>, %arg2: memref<12x12xbf16, #tpu.memory_space<vmem>>, %arg3: memref<1x12xf32, #tpu.memory_space<vmem>>, %arg4: memref<512x12xf32, #tpu.memory_space<vmem>>, %arg5: memref<512x12xf32, #tpu.memory_space<vmem>>) attributes {dimension_semantics = [#tpu.dimension_semantics<parallel>], iteration_bounds = array<i64: 4>, scalar_prefetch = 0 : i64, scratch_operands = 0 : i64, tpu.core_type = #tpu.core_type<tc>, window_params = [{transform_indices = @transform_0, window_bounds = array<i64: 512, 12>}, {pipeline_mode = #tpu.pipeline_mode<synchronous>, transform_indices = @transform_1, window_bounds = array<i64: 12, 12>}, {pipeline_mode = #tpu.pipeline_mode<synchronous>, transform_indices = @transform_2, window_bounds = array<i64: 1, 12>}, {transform_indices = @transform_3, window_bounds = array<i64: 512, 12>}, {transform_indices = @transform_4, window_bounds = array<i64: 512, 12>}]} {
    %c0 = arith.constant 0 : index
    %c0_0 = arith.constant 0 : index
    %0 = vector.load %arg1[%c0, %c0_0] : memref<512x12xf32, #tpu.memory_space<vmem>>, vector<512x12xf32>
    %1 = arith.truncf %0 : vector<512x12xf32> to vector<512x12xbf16>
    %c0_1 = arith.constant 0 : index
    %c0_2 = arith.constant 0 : index
    %2 = vector.load %arg2[%c0_1, %c0_2] : memref<12x12xbf16, #tpu.memory_space<vmem>>, vector<12x12xbf16>
    %cst = arith.constant dense<0.000000e+00> : vector<512x12xf32>
    %3 = tpu.matmul %1, %2, %cst {dimension_numbers = #tpu.dot_dimension_numbers<[1], [0], [0], [1], [0, 0, 1, 1], [], []>} : vector<512x12xbf16>, vector<12x12xbf16>, vector<512x12xf32> -> vector<512x12xf32>
    %c0_3 = arith.constant 0 : index
    %c0_4 = arith.constant 0 : index
    %4 = vector.load %arg3[%c0_3, %c0_4] : memref<1x12xf32, #tpu.memory_space<vmem>>, vector<1x12xf32>
    %5 = vector.broadcast %4 : vector<1x12xf32> to vector<512x12xf32>
    %6 = arith.addf %3, %5 : vector<512x12xf32>
    %c0_5 = arith.constant 0 : index
    %c0_6 = arith.constant 0 : index
    %7 = vector.load %arg4[%c0_5, %c0_6] : memref<512x12xf32, #tpu.memory_space<vmem>>, vector<512x12xf32>
    %8 = arith.addf %6, %7 : vector<512x12xf32>
    %9 = arith.mulf %8, %8 : vector<512x12xf32>
    %10 = arith.mulf %8, %9 : vector<512x12xf32>
    %cst_7 = arith.constant 4.471500e-02 : f32
    %11 = vector.broadcast %cst_7 : f32 to vector<512x12xf32>
    %12 = arith.mulf %11, %10 : vector<512x12xf32>
    %13 = arith.addf %8, %12 : vector<512x12xf32>
    %cst_8 = arith.constant 0.797884583 : f32
    %14 = vector.broadcast %cst_8 : f32 to vector<512x12xf32>
    %15 = arith.mulf %14, %13 : vector<512x12xf32>
    %16 = math.tanh %15 : vector<512x12xf32>
    %cst_9 = arith.constant 1.000000e+00 : f32
    %17 = vector.broadcast %cst_9 : f32 to vector<512x12xf32>
    %18 = arith.addf %17, %16 : vector<512x12xf32>
    %cst_10 = arith.constant 5.000000e-01 : f32
    %19 = vector.broadcast %cst_10 : f32 to vector<512x12xf32>
    %20 = arith.mulf %19, %18 : vector<512x12xf32>
    %21 = arith.mulf %8, %20 : vector<512x12xf32>
    %c0_11 = arith.constant 0 : index
    %c0_12 = arith.constant 0 : index
    %22 = vector.load %arg5[%c0_11, %c0_12] : memref<512x12xf32, #tpu.memory_space<vmem>>, vector<512x12xf32>
    tpu.vector_store %arg5[%c0_11, %c0_12], %21 {strides = array<i32>} : memref<512x12xf32, #tpu.memory_space<vmem>>, vector<512x12xf32>,
    return
  }
  func.func @transform_0(%arg0: i32) -> (i32, i32) {
    %c0_i32 = arith.constant 0 : i32
    %c0_i32_0 = arith.constant 0 : i32
    return %arg0, %c0_i32 : i32, i32
  }
  func.func @transform_1(%arg0: i32) -> (i32, i32) {
    %c0_i32 = arith.constant 0 : i32
    %c0_i32_0 = arith.constant 0 : i32
    %c0_i32_1 = arith.constant 0 : i32
    return %c0_i32, %c0_i32_0 : i32, i32
  }
  func.func @transform_2(%arg0: i32) -> (i32, i32) {
    %c0_i32 = arith.constant 0 : i32
    %c0_i32_0 = arith.constant 0 : i32
    %c0_i32_1 = arith.constant 0 : i32
    return %c0_i32, %c0_i32_0 : i32, i32
  }
  func.func @transform_3(%arg0: i32) -> (i32, i32) {
    %c0_i32 = arith.constant 0 : i32
    %c0_i32_0 = arith.constant 0 : i32
    return %arg0, %c0_i32 : i32, i32
  }
  func.func @transform_4(%arg0: i32) -> (i32, i32) {
    %c0_i32 = arith.constant 0 : i32
    %c0_i32_0 = arith.constant 0 : i32
    return %arg0, %c0_i32 : i32, i32
  }
}

module attributes {stable_mosaic.version = 11 : i64} {
  func.func @_head_kernel(%arg0: i32, %arg1: memref<512x12xf32, #tpu.memory_space<vmem>>, %arg2: memref<12x32xbf16, #tpu.memory_space<vmem>>, %arg3: memref<1x32xf32, #tpu.memory_space<vmem>>, %arg4: memref<32x1xbf16, #tpu.memory_space<vmem>>, %arg5: memref<1x1xf32, #tpu.memory_space<vmem>>, %arg6: memref<512x1xf32, #tpu.memory_space<vmem>>) attributes {dimension_semantics = [#tpu.dimension_semantics<parallel>], iteration_bounds = array<i64: 4>, scalar_prefetch = 0 : i64, scratch_operands = 0 : i64, tpu.core_type = #tpu.core_type<tc>, window_params = [{transform_indices = @transform_0, window_bounds = array<i64: 512, 12>}, {pipeline_mode = #tpu.pipeline_mode<synchronous>, transform_indices = @transform_1, window_bounds = array<i64: 12, 32>}, {pipeline_mode = #tpu.pipeline_mode<synchronous>, transform_indices = @transform_2, window_bounds = array<i64: 1, 32>}, {pipeline_mode = #tpu.pipeline_mode<synchronous>, transform_indices = @transform_3, window_bounds = array<i64: 32, 1>}, {pipeline_mode = #tpu.pipeline_mode<synchronous>, transform_indices = @transform_4, window_bounds = array<i64: 1, 1>}, {transform_indices = @transform_5, window_bounds = array<i64: 512, 1>}]} {
    %c0 = arith.constant 0 : index
    %c0_0 = arith.constant 0 : index
    %0 = vector.load %arg1[%c0, %c0_0] : memref<512x12xf32, #tpu.memory_space<vmem>>, vector<512x12xf32>
    %1 = arith.truncf %0 : vector<512x12xf32> to vector<512x12xbf16>
    %c0_1 = arith.constant 0 : index
    %c0_2 = arith.constant 0 : index
    %2 = vector.load %arg2[%c0_1, %c0_2] : memref<12x32xbf16, #tpu.memory_space<vmem>>, vector<12x32xbf16>
    %cst = arith.constant dense<0.000000e+00> : vector<512x32xf32>
    %3 = tpu.matmul %1, %2, %cst {dimension_numbers = #tpu.dot_dimension_numbers<[1], [0], [0], [1], [0, 0, 1, 1], [], []>} : vector<512x12xbf16>, vector<12x32xbf16>, vector<512x32xf32> -> vector<512x32xf32>
    %c0_3 = arith.constant 0 : index
    %c0_4 = arith.constant 0 : index
    %4 = vector.load %arg3[%c0_3, %c0_4] : memref<1x32xf32, #tpu.memory_space<vmem>>, vector<1x32xf32>
    %5 = vector.broadcast %4 : vector<1x32xf32> to vector<512x32xf32>
    %6 = arith.addf %3, %5 : vector<512x32xf32>
    %7 = arith.mulf %6, %6 : vector<512x32xf32>
    %8 = arith.mulf %6, %7 : vector<512x32xf32>
    %cst_5 = arith.constant 4.471500e-02 : f32
    %9 = vector.broadcast %cst_5 : f32 to vector<512x32xf32>
    %10 = arith.mulf %9, %8 : vector<512x32xf32>
    %11 = arith.addf %6, %10 : vector<512x32xf32>
    %cst_6 = arith.constant 0.797884583 : f32
    %12 = vector.broadcast %cst_6 : f32 to vector<512x32xf32>
    %13 = arith.mulf %12, %11 : vector<512x32xf32>
    %14 = math.tanh %13 : vector<512x32xf32>
    %cst_7 = arith.constant 1.000000e+00 : f32
    %15 = vector.broadcast %cst_7 : f32 to vector<512x32xf32>
    %16 = arith.addf %15, %14 : vector<512x32xf32>
    %cst_8 = arith.constant 5.000000e-01 : f32
    %17 = vector.broadcast %cst_8 : f32 to vector<512x32xf32>
    %18 = arith.mulf %17, %16 : vector<512x32xf32>
    %19 = arith.mulf %6, %18 : vector<512x32xf32>
    %20 = arith.truncf %19 : vector<512x32xf32> to vector<512x32xbf16>
    %c0_9 = arith.constant 0 : index
    %c0_10 = arith.constant 0 : index
    %21 = vector.load %arg4[%c0_9, %c0_10] : memref<32x1xbf16, #tpu.memory_space<vmem>>, vector<32x1xbf16>
    %cst_11 = arith.constant dense<0.000000e+00> : vector<512x1xf32>
    %22 = tpu.matmul %20, %21, %cst_11 {dimension_numbers = #tpu.dot_dimension_numbers<[1], [0], [0], [1], [0, 0, 1, 1], [], []>} : vector<512x32xbf16>, vector<32x1xbf16>, vector<512x1xf32> -> vector<512x1xf32>
    %c0_12 = arith.constant 0 : index
    %c0_13 = arith.constant 0 : index
    %23 = vector.load %arg5[%c0_12, %c0_13] : memref<1x1xf32, #tpu.memory_space<vmem>>, vector<1x1xf32>
    %24 = vector.broadcast %23 : vector<1x1xf32> to vector<512x1xf32>
    %25 = arith.addf %22, %24 : vector<512x1xf32>
    %c0_14 = arith.constant 0 : index
    %c0_15 = arith.constant 0 : index
    %26 = vector.load %arg6[%c0_14, %c0_15] : memref<512x1xf32, #tpu.memory_space<vmem>>, vector<512x1xf32>
    tpu.vector_store %arg6[%c0_14, %c0_15], %25 {strides = array<i32>} : memref<512x1xf32, #tpu.memory_space<vmem>>, vector<512x1xf32>,
    return
  }
  func.func @transform_0(%arg0: i32) -> (i32, i32) {
    %c0_i32 = arith.constant 0 : i32
    %c0_i32_0 = arith.constant 0 : i32
    return %arg0, %c0_i32 : i32, i32
  }
  func.func @transform_1(%arg0: i32) -> (i32, i32) {
    %c0_i32 = arith.constant 0 : i32
    %c0_i32_0 = arith.constant 0 : i32
    %c0_i32_1 = arith.constant 0 : i32
    return %c0_i32, %c0_i32_0 : i32, i32
  }
  func.func @transform_2(%arg0: i32) -> (i32, i32) {
    %c0_i32 = arith.constant 0 : i32
    %c0_i32_0 = arith.constant 0 : i32
    %c0_i32_1 = arith.constant 0 : i32
    return %c0_i32, %c0_i32_0 : i32, i32
  }
  func.func @transform_3(%arg0: i32) -> (i32, i32) {
    %c0_i32 = arith.constant 0 : i32
    %c0_i32_0 = arith.constant 0 : i32
    %c0_i32_1 = arith.constant 0 : i32
    return %c0_i32, %c0_i32_0 : i32, i32
  }
  func.func @transform_4(%arg0: i32) -> (i32, i32) {
    %c0_i32 = arith.constant 0 : i32
    %c0_i32_0 = arith.constant 0 : i32
    %c0_i32_1 = arith.constant 0 : i32
    return %c0_i32, %c0_i32_0 : i32, i32
  }
  func.func @transform_5(%arg0: i32) -> (i32, i32) {
    %c0_i32 = arith.constant 0 : i32
    %c0_i32_0 = arith.constant 0 : i32
    return %arg0, %c0_i32 : i32, i32
  }
}

</mosaic_0001>

<bundles_post_ra>
// kernel: mamba_pod_time_fno_forward.8
= control target key start
LH: loop header
LB: loop body
LE: loop exit
PB: predicated region body
PF: predicated region fallthrough
CT: control target
= control target key end

     0   :  { %vm25_vm0 = vcmask 130048   ;;  %s157_s0 = inlined_call_operand.vmem [shape: f32[16,16], index: 0, kind: input, shape index: {}]   ;;  %s158_s1 = inlined_call_operand.vmem [shape: f32[16,16], index: 1, kind: input, shape index: {}]   ;;  %s159_s5 = inlined_call_operand.vmem [shape: f32[16,16], index: 5, kind: output, shape index: {1}]   ;;  %s160_s2 = inlined_call_operand.vmem [shape: f32[1,16], index: 2, kind: input, shape index: {}]   ;;  %s161_s3 = inlined_call_operand.vmem [shape: f32[1,16], index: 3, kind: input, shape index: {}]   ;;  %s162_s4 = inlined_call_operand.vmem [shape: f32[16,16], index: 4, kind: output, shape index: {0}]  }
   0x1   :  { %v19_v0 = vld [vmem:[%s158_s1] sm:$0xff]  ;;  %v20_v2 = vld [vmem:[%s158_s1 + $0x8] sm:$0xff] }
   0x2   :  { %v21_v1 = vld [vmem:[%s157_s0] sm:$0xff]  ;;  %v22_v4 = vld [vmem:[%s157_s0 + $0x8] sm:$0xff] }
   0x3   :  { %v23_v3 = vadd.f32 %v21_v1, %v19_v0  ;;  %v24_v5 = vadd.f32 %v22_v4, %v20_v2  ;;  %v83_v25 = vld [vmem:[%s160_s2] ss:$0 sm:$0xff] }
   0x4   :  { %v84_v27 = vld [vmem:[%s161_s3] ss:$0 sm:$0xff] }
   0x5   :  { %v28_v6 = vsel %vm25_vm0, %v23_v3, 0.0  ;;  %26 = vst.msk [vmem:[%s159_s5] sm:$0xff] %vm25_vm0, %v23_v3  ;;  %27 = vst.msk [vmem:[%s159_s5 + $0x8] sm:$0xff] %vm25_vm0, %v24_v5  ;;  %v31_v7 = vsel %vm25_vm0, %v24_v5, 0.0 }
   0x6   :  { %29 = vadd.xlane.f32.xlu0 %v28_v6 }
   0xa   :  { %32 = vadd.xlane.f32.xlu0 %v31_v7 }
  0x8f   :  { %v30_v8 = vpop.xlane.xlu0 %29 }
  0x90   :  { %v35_v9 = vmul.f32 0.0625, %v30_v8 }
  0x92   :  { %v37_v10 = vsub.f32 %v23_v3, %v35_v9 }
  0x93   :  { %v33_v11 = vpop.xlane.xlu0 %32 }
  0x94   :  { %v36_v12 = vmul.f32 0.0625, %v33_v11  ;;  %v39_v13 = vmul.f32 %v37_v10, %v37_v10 }
  0x96   :  { %v38_v14 = vsub.f32 %v24_v5, %v36_v12  ;;  %v41_v15 = vsel %vm25_vm0, %v39_v13, 0.0 }
  0x97   :  { %42 = vadd.xlane.f32.xlu1 %v41_v15 }
  0x98   :  { %v40_v16 = vmul.f32 %v38_v14, %v38_v14 }
  0x9a   :  { %v44_v17 = vsel %vm25_vm0, %v40_v16, 0.0 }
  0x9b   :  { %45 = vadd.xlane.f32.xlu1 %v44_v17 }
 0x120   :  { %v43_v18 = vpop.xlane.xlu1 %42 }
 0x121   :  { %v47_v19 = vmul.f32 0.0625, %v43_v18 }
 0x123   :  { %v49_v20 = vadd.f32 1e-05, %v47_v19 }
 0x124   :  { %v46_v21 = vpop.xlane.xlu1 %45 }
 0x125   :  { %85 = vrsqrt.f32 %v49_v20  ;;  %v48_v22 = vmul.f32 0.0625, %v46_v21 }
 0x127   :  { %v50_v23 = vadd.f32 1e-05, %v48_v22 }
 0x129   :  { %87 = vrsqrt.f32 %v50_v23 }
 0x132   :  { %v86_v24 = vpop.eup %85 }
 0x133   :  { %v53_v26 = vmul.f32 %v86_v24, %v37_v10 }
 0x135   :  { %v62_v28 = vmul.f32 %v83_v25, %v53_v26 }
 0x136   :  { %v88_v29 = vpop.eup %87 }
 0x137   :  { %v71_v30 = vadd.f32 %v84_v27, %v62_v28  ;;  %v54_v31 = vmul.f32 %v88_v29, %v38_v14 }
 0x139   :  { %73 = vst.msk [vmem:[%s162_s4] sm:$0xff] %vm25_vm0, %v71_v30  ;;  %v63_v32 = vmul.f32 %v83_v25, %v54_v31 }
 0x13b   :  { %v72_v33 = vadd.f32 %v84_v27, %v63_v32 }
 0x13d   :  { %74 = vst.msk [vmem:[%s162_s4 + $0x8] sm:$0xff] %vm25_vm0, %v72_v33 }

// kernel: mamba_pod_time_fno_forward.6
= control target key start
LH: loop header
LB: loop body
LE: loop exit
PB: predicated region body
PF: predicated region fallthrough
CT: control target
= control target key end

     0   :  { %vm39_vm0 = vcmask 130048   ;;  %v314_v18 = vmov 0.0   ;;  %vm315_vm1 = vmmov 0   ;;  %s316_s21 = smov 96   ;;  %vm172_vm2 = vcmask 257024   ;;  %s413_s0 = inlined_call_operand.vmem [shape: f32[16,16], index: 0, kind: input, shape index: {}]   ;;  %s414_s1 = inlined_call_operand.vmem [shape: f32[16,16], index: 1, kind: input, shape index: {}]   ;;  %s415_s8 = inlined_call_operand.vmem [shape: f32[16,16], index: 8, kind: output, shape index: {1}]   ;;  %s416_s4 = inlined_call_operand.vmem [shape: bf16[16,64], index: 4, kind: input, shape index: {}]   ;;  %s417_s2 = inlined_call_operand.vmem [shape: f32[1,16], index: 2, kind: input, shape index: {}]   ;;  %s418_s3 = inlined_call_operand.vmem [shape: f32[1,16], index: 3, kind: input, shape index: {}]   ;;  %s419_s5 = inlined_call_operand.vmem [shape: bf16[32,16], index: 5, kind: input, shape index: {}]   ;;  %s420_s6 = inlined_call_operand.vmem [shape: f32[1,16], index: 6, kind: input, shape index: {}]   ;;  %s421_s7 = inlined_call_operand.vmem [shape: f32[16,16], index: 7, kind: output, shape index: {0}]  }
   0x1   :  { %v33_v0 = vld [vmem:[%s413_s0] sm:$0xff]  ;;  %v34_v2 = vld [vmem:[%s413_s0 + $0x8] sm:$0xff]  ;;  %281 = vmatprep.subr.bf16.mxu0 %v314_v18  ;;  %283 = vmatprep.mubr.msk.bf16.mxu0 %vm315_vm1, %v314_v18  ;;  %vm205_vm3 = vcmask 261120  }
   0x2   :  { %v35_v1 = vld [vmem:[%s414_s1] sm:$0xff]  ;;  %v36_v4 = vld [vmem:[%s414_s1 + $0x8] sm:$0xff]  ;;  %287 = vmatprep.subr.bf16.mxu1 %v314_v18  ;;  %291 = vmatprep.mubr.msk.bf16.mxu1 %vm315_vm1, %v314_v18 }
   0x3   :  { %v37_v3 = vadd.f32 %v35_v1, %v33_v0  ;;  %v38_v5 = vadd.f32 %v36_v4, %v34_v2  ;;  %v298_v19 = vld [vmem:[%s416_s4] sm:$0xff]   ;;  %v299_v47 = vld [vmem:[%s419_s5 + $0x8] sm:$0xff]  }
   0x4   :  { %282 = vmatpush3.bf16.msra.mxu0 %v298_v19  ;;  %v261_v28 = vld [vmem:[%s417_s2] ss:$0 sm:$0xff]  ;;  %288 = vmatpush3.bf16.msra.mxu1 %v299_v47 }
   0x5   :  { %v42_v6 = vsel %vm39_vm0, %v37_v3, 0.0  ;;  %40 = vst.msk [vmem:[%s415_s8] sm:$0xff] %vm39_vm0, %v37_v3  ;;  %41 = vst.msk [vmem:[%s415_s8 + $0x8] sm:$0xff] %vm39_vm0, %v38_v5  ;;  %v45_v7 = vsel %vm39_vm0, %v38_v5, 0.0  ;;  %v262_v32 = vld [vmem:[%s418_s3] ss:$0 sm:$0xff]  ;;  %289 = vmatprep.subr.bf16.mxu1 %v314_v18 }
   0x6   :  { %43 = vadd.xlane.f32.xlu0 %v42_v6  ;;  %v300_v49 = vld [vmem:[%s419_s5] sm:$0xff]  }
   0x7   :  { %v269_v60 = vld [vmem:[%s420_s6] ss:$0 sm:$0xff] }
   0x8   :  { %290 = vmatpush3.bf16.msra.mxu1 %v300_v49 }
   0xa   :  { %46 = vadd.xlane.f32.xlu0 %v45_v7 }
  0x8f   :  { %v44_v8 = vpop.xlane.xlu0 %43 }
  0x90   :  { %v49_v9 = vmul.f32 0.0625, %v44_v8 }
  0x92   :  { %v51_v10 = vsub.f32 %v37_v3, %v49_v9 }
  0x93   :  { %v47_v11 = vpop.xlane.xlu0 %46 }
  0x94   :  { %v50_v12 = vmul.f32 0.0625, %v47_v11  ;;  %v53_v13 = vmul.f32 %v51_v10, %v51_v10 }
  0x96   :  { %v52_v14 = vsub.f32 %v38_v5, %v50_v12  ;;  %v55_v15 = vsel %vm39_vm0, %v53_v13, 0.0 }
  0x97   :  { %56 = vadd.xlane.f32.xlu1 %v55_v15 }
  0x98   :  { %v54_v16 = vmul.f32 %v52_v14, %v52_v14 }
  0x9a   :  { %v58_v17 = vsel %vm39_vm0, %v54_v16, 0.0 }
  0x9b   :  { %59 = vadd.xlane.f32.xlu1 %v58_v17 }
 0x120   :  { %v57_v20 = vpop.xlane.xlu1 %56 }
 0x121   :  { %v61_v21 = vmul.f32 0.0625, %v57_v20 }
 0x123   :  { %v63_v22 = vadd.f32 1e-05, %v61_v21 }
 0x124   :  { %v60_v23 = vpop.xlane.xlu1 %59 }
 0x125   :  { %302 = vrsqrt.f32 %v63_v22  ;;  %v62_v24 = vmul.f32 0.0625, %v60_v23 }
 0x127   :  { %v64_v25 = vadd.f32 1e-05, %v62_v24 }
 0x129   :  { %304 = vrsqrt.f32 %v64_v25 }
 0x132   :  { %v303_v26 = vpop.eup %302 }
 0x133   :  { %v67_v27 = vmul.f32 %v303_v26, %v51_v10 }
 0x135   :  { %v76_v31 = vmul.f32 %v261_v28, %v67_v27 }
 0x136   :  { %v305_v29 = vpop.eup %304 }
 0x137   :  { %v68_v30 = vmul.f32 %v305_v29, %v52_v14  ;;  %v85_v34 = vadd.f32 %v262_v32, %v76_v31 }
 0x139   :  { %v77_v33 = vmul.f32 %v261_v28, %v68_v30 }
 0x13b   :  { %v86_v35 = vadd.f32 %v262_v32, %v77_v33 }
 0x13d   :  { %v87_v36 = vpack.c.bf16 %v86_v35, %v85_v34 }
 0x13f   :  { %284 = vmatmul.mubr.msk.bf16.vlgmr.msra.gmra.mxu0 %vm39_vm0, %v87_v36 }
 0x1ff   :  { %v133_v37 = vpop.f32.mrf.mxu0 }
 0x200   :  { %v265_v38 = vmul.f32 -1.442695, %v133_v37 }
 0x201   :  { %v285_v39 = vpop.f32.mrf.mxu0 }
 0x202   :  { %306 = vpow2.f32 %v265_v38 }
 0x203   :  { %v136_v40 = vpop.f32.mrf.mxu0 }
 0x204   :  { %v266_v41 = vmul.f32 -1.442695, %v136_v40 }
 0x205   :  { %v286_v42 = vpop.f32.mrf.mxu0 }
 0x206   :  { %308 = vpow2.f32 %v266_v41 }
 0x20f   :  { %v307_v43 = vpop.eup %306 }
 0x210   :  { %v146_v44 = vadd.f32 1.0, %v307_v43 }
 0x212   :  { %310 = vrcp.f32 %v146_v44 }
 0x213   :  { %v309_v45 = vpop.eup %308 }
 0x214   :  { %v147_v46 = vadd.f32 1.0, %v309_v45 }
 0x216   :  { %312 = vrcp.f32 %v147_v46 }
 0x21f   :  { %v311_v48 = vpop.eup %310 }
 0x220   :  { %v152_v50 = vmul.f32 %v311_v48, %v133_v37 }
 0x222   :  { %156 = vrot.lane.b32.xlu0 %v152_v50, %s316_s21 }
 0x223   :  { %v313_v51 = vpop.eup %312 }
 0x224   :  { %v153_v52 = vmul.f32 %v313_v51, %v136_v40 }
 0x226   :  { %158 = vrot.lane.b32.xlu1 %v153_v52, %s316_s21 }
 0x294   :  { %v157_v53 = vpop.permute.xlu0 %156 }
 0x295   :  { %v162_v54 = vmul.f32 %v157_v53, %v133_v37 }
 0x297   :  { %v274_v55 = vpack.c.bf16 %v162_v54, %v162_v54 }
 0x298   :  { %v159_v56 = vpop.permute.xlu1 %158 }
 0x299   :  { %173 = vst.msk [vmem:[#allocation2] sm:$0xf] %vm172_vm2, %v274_v55  ;;  %v163_v57 = vmul.f32 %v159_v56, %v136_v40 }
 0x29b   :  { %v275_v58 = vpack.c.bf16 %v163_v57, %v163_v57 }
 0x29d   :  { %174 = vst.msk [vmem:[#allocation2 + $0x4] sm:$0xf] %vm172_vm2, %v275_v58 }
 0x2a4   :  { %v301_v59 = vld [vmem:[#allocation2] sm:$0xff]  }
 0x2a5   :  { %292 = vmatmul.mubr.msk.bf16.vlgmr.msra.gmra.mxu1 %vm205_vm3, %v301_v59 }
 0x365   :  { %v243_v61 = vpop.f32.mrf.mxu1 }
 0x366   :  { %v244_v62 = vadd.f32 %v269_v60, %v243_v61 }
 0x367   :  { %v293_v63 = vpop.f32.mrf.mxu1 }
 0x368   :  { %251 = vst.msk [vmem:[%s421_s7] sm:$0xff] %vm39_vm0, %v244_v62 }
 0x369   :  { %v246_v0 = vpop.f32.mrf.mxu1 }
 0x36a   :  { %v247_v1 = vadd.f32 %v269_v60, %v246_v0 }
 0x36b   :  { %v294_v2 = vpop.f32.mrf.mxu1 }
 0x36c   :  { %252 = vst.msk [vmem:[%s421_s7 + $0x8] sm:$0xff] %vm39_vm0, %v247_v1 }

// kernel: mamba_pod_time_fno_forward.9
= control target key start
LH: loop header
LB: loop body
LE: loop exit
PB: predicated region body
PF: predicated region fallthrough
CT: control target
= control target key end

     0   :  { %vm40_vm0 = vcmask 130048   ;;  %s448_s0 = inlined_call_operand.vmem [shape: f32[16,16], index: 0, kind: input, shape index: {}]   ;;  %s449_s1 = inlined_call_operand.vmem [shape: f32[16,16], index: 1, kind: input, shape index: {}]   ;;  %s450_s2 = inlined_call_operand.vmem [shape: f32[1,16], index: 2, kind: input, shape index: {}]   ;;  %s451_s3 = inlined_call_operand.vmem [shape: f32[1,16], index: 3, kind: input, shape index: {}]   ;;  %s452_s4 = inlined_call_operand.vmem [shape: bf16[16,64], index: 4, kind: input, shape index: {}]   ;;  %s453_s5 = inlined_call_operand.vmem [shape: bf16[32,128], index: 5, kind: input, shape index: {}]   ;;  %s454_s6 = inlined_call_operand.vmem [shape: f32[1,128], index: 6, kind: input, shape index: {}]   ;;  %s455_s7 = inlined_call_operand.vmem [shape: f32[16,128], index: 7, kind: output, shape index: {0}]   ;;  %s456_s8 = inlined_call_operand.hbm [shape: f32[16,16], index: 8, kind: output, shape index: {1}]  }
   0x1   :  { %v34_v0 = vld [vmem:[%s448_s0] sm:$0xff]  ;;  %v35_v2 = vld [vmem:[%s448_s0 + $0x8] sm:$0xff] }
   0x2   :  { %v36_v1 = vld [vmem:[%s449_s1] sm:$0xff]  ;;  %v37_v4 = vld [vmem:[%s449_s1 + $0x8] sm:$0xff] }
   0x3   :  { %v38_v3 = vadd.f32 %v36_v1, %v34_v0  ;;  %v39_v5 = vadd.f32 %v37_v4, %v35_v2 }
   0x5   :  { %v43_v6 = vsel %vm40_vm0, %v38_v3, 0.0  ;;  %41 = vst.msk [vmem:[#allocation3] sm:$0xff] %vm40_vm0, %v38_v3 }
   0x6   :  { %14 = vsyncpa [#allocation4], 0  ;;  %44 = vadd.xlane.f32.xlu0 %v43_v6  ;;  %42 = vst.msk [vmem:[#allocation3 + $0x8] sm:$0xff] %vm40_vm0, %v39_v5  ;;  %v46_v7 = vsel %vm40_vm0, %v39_v5, 0.0  ;;  %v313_v18 = vld [vmem:[%s452_s4] sm:$0xff]   ;;  %v351_v19 = vmov 0.0  }
   0x7   :  { %293 = vmatprep.subr.bf16.mxu0 %v351_v19  ;;  %vm352_vm1 = vmmov 0   ;;  %299 = vmatprep.subr.bf16.mxu1 %v351_v19  ;;  %v273_v28 = vld [vmem:[%s450_s2] ss:$0 sm:$0xff]  ;;  %v314_v47 = vld [vmem:[%s453_s5 + $0x8] sm:$0xff]   ;;  %s353_s18 = smov 96   ;;  %vm173_vm2 = vcmask 257024  }
   0x8   :  { %295 = vmatprep.mubr.msk.bf16.mxu0 %vm352_vm1, %v351_v19  ;;  %294 = vmatpush3.bf16.msra.mxu0 %v313_v18  ;;  %v274_v32 = vld [vmem:[%s451_s3] ss:$0 sm:$0xff]  ;;  %vm206_vm3 = vcmask 261120  }
   0x9   :  { %303 = vmatprep.mubr.msk.bf16.mxu1 %vm352_vm1, %v351_v19  ;;  %300 = vmatpush3.bf16.msra.mxu1 %v314_v47  ;;  %v315_v49 = vld [vmem:[%s453_s5] sm:$0xff]   ;;  %s354_s5 = smov [#allocation3]  }
   0xa   :  { %47 = vadd.xlane.f32.xlu0 %v46_v7  ;;  %301 = vmatprep.subr.bf16.mxu1 %v351_v19  ;;  %s260_s19 = sshll.u32 %s354_s5, 4  ;;  %s261_s19 = int_to_ptr.vmem [resolvable:$true] %s260_s19 }
   0xb   :  { %s329_s20 = scalar_lea.vmem %s261_s19, 256  ;;  %p334_p1 = scmp.lt.s32.totalorder %s261_s19, %s261_s19 }
   0xc   :  { %p330_p0 = scmp.ne.s32.totalorder %s261_s19, %s329_s20  ;;  %p335_p2 = scmp.lt.s32.totalorder %s329_s20, %s329_s20 }
   0xd   :  { %302 = vmatpush3.bf16.msra.mxu1 %v315_v49 }
   0xe   :  { %p336_p3 = por %p335_p2, %p334_p1 }
  0x10   :  { %p337_p4 = pnand %p336_p3, %p330_p0 }
  0x8f   :  { %v45_v8 = vpop.xlane.xlu0 %44 }
  0x90   :  { %v50_v9 = vmul.f32 0.0625, %v45_v8 }
  0x92   :  { %v52_v10 = vsub.f32 %v38_v3, %v50_v9 }
  0x93   :  { %v48_v11 = vpop.xlane.xlu0 %47 }
  0x94   :  { %v51_v12 = vmul.f32 0.0625, %v48_v11  ;;  %v54_v13 = vmul.f32 %v52_v10, %v52_v10 }
  0x96   :  { %v53_v14 = vsub.f32 %v39_v5, %v51_v12  ;;  %v56_v15 = vsel %vm40_vm0, %v54_v13, 0.0 }
  0x97   :  { %57 = vadd.xlane.f32.xlu1 %v56_v15 }
  0x98   :  { %v55_v16 = vmul.f32 %v53_v14, %v53_v14 }
  0x9a   :  { %v59_v17 = vsel %vm40_vm0, %v55_v16, 0.0 }
  0x9b   :  { %60 = vadd.xlane.f32.xlu1 %v59_v17 }
 0x120   :  { %v58_v20 = vpop.xlane.xlu1 %57 }
 0x121   :  { %v62_v21 = vmul.f32 0.0625, %v58_v20 }
 0x123   :  { %v64_v22 = vadd.f32 1e-05, %v62_v21 }
 0x124   :  { %v61_v23 = vpop.xlane.xlu1 %60 }
 0x125   :  { %317 = vrsqrt.f32 %v64_v22  ;;  %v63_v24 = vmul.f32 0.0625, %v61_v23 }
 0x127   :  { %v65_v25 = vadd.f32 1e-05, %v63_v24 }
 0x129   :  { %319 = vrsqrt.f32 %v65_v25 }
 0x132   :  { %v318_v26 = vpop.eup %317 }
 0x133   :  { %v68_v27 = vmul.f32 %v318_v26, %v52_v10 }
 0x135   :  { %v77_v31 = vmul.f32 %v273_v28, %v68_v27 }
 0x136   :  { %v320_v29 = vpop.eup %319 }
 0x137   :  { %v69_v30 = vmul.f32 %v320_v29, %v53_v14  ;;  %v86_v34 = vadd.f32 %v274_v32, %v77_v31 }
 0x139   :  { %v78_v33 = vmul.f32 %v273_v28, %v69_v30 }
 0x13b   :  { %v87_v35 = vadd.f32 %v274_v32, %v78_v33 }
 0x13d   :  { %v88_v36 = vpack.c.bf16 %v87_v35, %v86_v34 }
 0x13f   :  { %296 = vmatmul.mubr.msk.bf16.vlgmr.msra.gmra.mxu0 %vm40_vm0, %v88_v36 }
 0x1ff   :  { %v134_v37 = vpop.f32.mrf.mxu0 }
 0x200   :  { %v277_v38 = vmul.f32 -1.442695, %v134_v37 }
 0x201   :  { %v297_v39 = vpop.f32.mrf.mxu0 }
 0x202   :  { %321 = vpow2.f32 %v277_v38 }
 0x203   :  { %v137_v40 = vpop.f32.mrf.mxu0 }
 0x204   :  { %v278_v41 = vmul.f32 -1.442695, %v137_v40 }
 0x205   :  { %v298_v42 = vpop.f32.mrf.mxu0 }
 0x206   :  { %323 = vpow2.f32 %v278_v41 }
 0x20f   :  { %v322_v43 = vpop.eup %321 }
 0x210   :  { %v147_v44 = vadd.f32 1.0, %v322_v43 }
 0x212   :  { %325 = vrcp.f32 %v147_v44 }
 0x213   :  { %v324_v45 = vpop.eup %323 }
 0x214   :  { %v148_v46 = vadd.f32 1.0, %v324_v45 }
 0x216   :  { %327 = vrcp.f32 %v148_v46 }
 0x21f   :  { %v326_v48 = vpop.eup %325 }
 0x220   :  { %v153_v50 = vmul.f32 %v326_v48, %v134_v37 }
 0x222   :  { %157 = vrot.lane.b32.xlu0 %v153_v50, %s353_s18 }
 0x223   :  { %v328_v51 = vpop.eup %327 }
 0x224   :  { %v154_v52 = vmul.f32 %v328_v51, %v137_v40 }
 0x226   :  { %159 = vrot.lane.b32.xlu1 %v154_v52, %s353_s18 }
 0x294   :  { %v158_v53 = vpop.permute.xlu0 %157 }
 0x295   :  { %v163_v54 = vmul.f32 %v158_v53, %v134_v37 }
 0x297   :  { %v286_v55 = vpack.c.bf16 %v163_v54, %v163_v54 }
 0x298   :  { %v160_v56 = vpop.permute.xlu1 %159 }
 0x299   :  { %174 = vst.msk [vmem:[#allocation2] sm:$0xf] %vm173_vm2, %v286_v55  ;;  %v164_v57 = vmul.f32 %v160_v56, %v137_v40 }
 0x29b   :  { %v287_v58 = vpack.c.bf16 %v164_v57, %v164_v57 }
 0x29d   :  { %175 = vst.msk [vmem:[#allocation2 + $0x4] sm:$0xf] %vm173_vm2, %v287_v58 }
 0x2a4   :  { %v316_v59 = vld [vmem:[#allocation2] sm:$0xff]  }
 0x2a5   :  { %304 = vmatmul.mubr.msk.bf16.vlgmr.msra.gmra.mxu1 %vm206_vm3, %v316_v59 }
 0x2a6   :  { %340 = shalt.err (!%p337_p4)
}
 0x2a7   :  { %s355_s21 = smov 128   ;;  %s356_s22 = smov 8   ;;  %v281_v60 = vld [vmem:[%s454_s6] ss:$0 sm:$0xff] }
 0x2a8   :  { %266 = dma.vmem_to_hbm [thread:$0]  %s261_s19, 256, %s456_s8, [#allocation4], %s355_s21, %s355_s21, %s356_s22  }
 0x365   :  { %v244_v61 = vpop.f32.mrf.mxu1 }
 0x366   :  { %v245_v62 = vadd.f32 %v281_v60, %v244_v61 }
 0x367   :  { %v305_v63 = vpop.f32.mrf.mxu1 }
 0x368   :  { %251 = vst [vmem:[%s455_s7] sm:$0xff] %v245_v62 }
 0x369   :  { %v247_v0 = vpop.f32.mrf.mxu1 }
 0x36a   :  { %v248_v1 = vadd.f32 %v281_v60, %v247_v0 }
 0x36b   :  { %v306_v2 = vpop.f32.mrf.mxu1 }
 0x36c   :  { %252 = vst [vmem:[%s455_s7 + $0x8] sm:$0xff] %v248_v1 }
 0x36d   :  { %349 = dma.done.wait [#allocation4], 256  }
 0x36e   :  { %350 = vsyncadd [#allocation4], 4294967040 }
 0x36f   :  { %272 = vsyncpa [#allocation4], 1 }

// kernel: custom-call
= control target key start
LH: loop header
LB: loop body
LE: loop exit
PB: predicated region body
PF: predicated region fallthrough
CT: control target
= control target key end

     0   :  { %2 = vsyncpa [#allocation0], 0  ;;  %s47_s0 = inlined_call_operand.hbm [shape: c64[12,12,6,3], index: 0, kind: input, shape index: {}]   ;;  %s48_s1 = inlined_call_operand.vmem [shape: f32[12,12,6,3], index: 1, kind: output, shape index: {}]  }
   0x1   :  { %s3_s8 = sshll.u32 %s48_s1, 4  ;;  %s4_s8 = int_to_ptr.vmem [resolvable:$true] %s3_s8 }
   0x2   :  { %s17_s9 = scalar_lea.vmem %s4_s8, 4608  ;;  %p22_p1 = scmp.lt.s32.totalorder %s4_s8, %s4_s8 }
   0x3   :  { %p18_p0 = scmp.ne.s32.totalorder %s4_s8, %s17_s9  ;;  %p23_p2 = scmp.lt.s32.totalorder %s17_s9, %s17_s9 }
   0x5   :  { %p24_p3 = por %p23_p2, %p22_p1 }
   0x7   :  { %p25_p4 = pnand %p24_p3, %p18_p0 }
   0x9   :  { %28 = shalt.err (!%p25_p4)  }
   0xa   :  { %6 = dma.hbm_to_vmem [thread:$0]  %s47_s0, 4608, %s4_s8, [#allocation0] }
   0xb   :  { %29 = dma.done.wait [#allocation0], 4608  }
   0xc   :  { %30 = vsyncadd [#allocation0], 4294962688 }
   0xd   :  { %8 = vsyncpa [#allocation0], 1 }

// kernel: custom-call.1
= control target key start
LH: loop header
LB: loop body
LE: loop exit
PB: predicated region body
PF: predicated region fallthrough
CT: control target
= control target key end

     0   :  { %s51_s0 = inlined_call_operand.hbm [shape: c64[12,12,6,3], index: 0, kind: input, shape index: {}]   ;;  %s52_s1 = inlined_call_operand.vmem [shape: f32[12,12,6,3], index: 1, kind: output, shape index: {}]  }
   0x1   :  { %s2_s8 = scalar_lea.hbm %s51_s0, 4608 }
   0x2   :  { %3 = vsyncpa [#allocation0], 0  ;;  %s4_s11 = sshll.u32 %s52_s1, 4  ;;  %s5_s11 = int_to_ptr.vmem [resolvable:$true] %s4_s11 }
   0x3   :  { %s20_s12 = scalar_lea.vmem %s5_s11, 4608  ;;  %p25_p1 = scmp.lt.s32.totalorder %s5_s11, %s5_s11 }
   0x4   :  { %p21_p0 = scmp.ne.s32.totalorder %s5_s11, %s20_s12  ;;  %p26_p2 = scmp.lt.s32.totalorder %s20_s12, %s20_s12 }
   0x6   :  { %p27_p3 = por %p26_p2, %p25_p1 }
   0x8   :  { %p28_p4 = pnand %p27_p3, %p21_p0 }
   0xa   :  { %31 = shalt.err (!%p28_p4)  }
   0xb   :  { %7 = dma.hbm_to_vmem [thread:$0]  %s2_s8, 4608, %s5_s11, [#allocation0] }
   0xc   :  { %33 = dma.done.wait [#allocation0], 4608  }
   0xd   :  { %34 = vsyncadd [#allocation0], 4294962688 }
   0xe   :  { %9 = vsyncpa [#allocation0], 1 }

// kernel: reverse.1
= control target key start
LH: loop header
LB: loop body
LE: loop exit
PB: predicated region body
PF: predicated region fallthrough
CT: control target
= control target key end

     0   :  { %s872_s0 = inlined_call_operand.vmem [shape: f32[16,12,16,3], index: 0, kind: input, shape index: {}]   ;;  %s873_s1 = inlined_call_operand.vmem [shape: f32[16,12,16,3], index: 1, kind: output, shape index: {}]  }
   0x1   :  { %v288_v0 = vld [vmem:[%s872_s0 + $0x20] sm:$0xff]  ;;  %v289_v1 = vld [vmem:[%s872_s0 + $0x50] sm:$0xff]  ;;  %v358_v36 = vld [vmem:[%s872_s0 + $0x28] sm:$0xff] }
   0x2   :  { %v291_v2 = vld [vmem:[%s872_s0 + $0x80] sm:$0xff]  ;;  %4 = vst [vmem:[%s873_s1] sm:$0xff] %v288_v0  ;;  %290 = vst [vmem:[%s873_s1 + $0x30] sm:$0xff] %v289_v1  ;;  %v293_v3 = vld [vmem:[%s872_s0 + $0xb0] sm:$0xff] }
   0x3   :  { %292 = vst [vmem:[%s873_s1 + $0x60] sm:$0xff] %v291_v2  ;;  %v295_v4 = vld [vmem:[%s872_s0 + $0xe0] sm:$0xff]  ;;  %v297_v5 = vld [vmem:[%s872_s0 + $0x110] sm:$0xff]  ;;  %294 = vst [vmem:[%s873_s1 + $0x90] sm:$0xff] %v293_v3 }
   0x4   :  { %296 = vst [vmem:[%s873_s1 + $0xc0] sm:$0xff] %v295_v4  ;;  %298 = vst [vmem:[%s873_s1 + $0xf0] sm:$0xff] %v297_v5  ;;  %v299_v6 = vld [vmem:[%s872_s0 + $0x140] sm:$0xff]  ;;  %v301_v7 = vld [vmem:[%s872_s0 + $0x170] sm:$0xff] }
   0x5   :  { %v303_v8 = vld [vmem:[%s872_s0 + $0x1a0] sm:$0xff]  ;;  %300 = vst [vmem:[%s873_s1 + $0x120] sm:$0xff] %v299_v6  ;;  %302 = vst [vmem:[%s873_s1 + $0x150] sm:$0xff] %v301_v7  ;;  %v305_v9 = vld [vmem:[%s872_s0 + $0x1d0] sm:$0xff] }
   0x6   :  { %304 = vst [vmem:[%s873_s1 + $0x180] sm:$0xff] %v303_v8  ;;  %v307_v10 = vld [vmem:[%s872_s0 + $0x200] sm:$0xff]  ;;  %v309_v11 = vld [vmem:[%s872_s0 + $0x230] sm:$0xff]  ;;  %306 = vst [vmem:[%s873_s1 + $0x1b0] sm:$0xff] %v305_v9 }
   0x7   :  { %308 = vst [vmem:[%s873_s1 + $0x1e0] sm:$0xff] %v307_v10  ;;  %310 = vst [vmem:[%s873_s1 + $0x210] sm:$0xff] %v309_v11  ;;  %v311_v12 = vld [vmem:[%s872_s0 + $0x10] sm:$0xff]  ;;  %v313_v13 = vld [vmem:[%s872_s0 + $0x40] sm:$0xff] }
   0x8   :  { %v315_v14 = vld [vmem:[%s872_s0 + $0x70] sm:$0xff]  ;;  %312 = vst [vmem:[%s873_s1 + $0x10] sm:$0xff] %v311_v12  ;;  %314 = vst [vmem:[%s873_s1 + $0x40] sm:$0xff] %v313_v13  ;;  %v317_v15 = vld [vmem:[%s872_s0 + $0xa0] sm:$0xff] }
   0x9   :  { %316 = vst [vmem:[%s873_s1 + $0x70] sm:$0xff] %v315_v14  ;;  %v319_v16 = vld [vmem:[%s872_s0 + $0xd0] sm:$0xff]  ;;  %v321_v17 = vld [vmem:[%s872_s0 + $0x100] sm:$0xff]  ;;  %318 = vst [vmem:[%s873_s1 + $0xa0] sm:$0xff] %v317_v15 }
   0xa   :  { %320 = vst [vmem:[%s873_s1 + $0xd0] sm:$0xff] %v319_v16  ;;  %322 = vst [vmem:[%s873_s1 + $0x100] sm:$0xff] %v321_v17  ;;  %v323_v18 = vld [vmem:[%s872_s0 + $0x130] sm:$0xff]  ;;  %v325_v19 = vld [vmem:[%s872_s0 + $0x160] sm:$0xff] }
   0xb   :  { %v327_v20 = vld [vmem:[%s872_s0 + $0x190] sm:$0xff]  ;;  %324 = vst [vmem:[%s873_s1 + $0x130] sm:$0xff] %v323_v18  ;;  %326 = vst [vmem:[%s873_s1 + $0x160] sm:$0xff] %v325_v19  ;;  %v329_v21 = vld [vmem:[%s872_s0 + $0x1c0] sm:$0xff] }
   0xc   :  { %328 = vst [vmem:[%s873_s1 + $0x190] sm:$0xff] %v327_v20  ;;  %v331_v22 = vld [vmem:[%s872_s0 + $0x1f0] sm:$0xff]  ;;  %v333_v23 = vld [vmem:[%s872_s0 + $0x220] sm:$0xff]  ;;  %330 = vst [vmem:[%s873_s1 + $0x1c0] sm:$0xff] %v329_v21 }
   0xd   :  { %332 = vst [vmem:[%s873_s1 + $0x1f0] sm:$0xff] %v331_v22  ;;  %334 = vst [vmem:[%s873_s1 + $0x220] sm:$0xff] %v333_v23  ;;  %v97_v24 = vld [vmem:[%s872_s0] sm:$0xff]  ;;  %v336_v25 = vld [vmem:[%s872_s0 + $0x30] sm:$0xff] }
   0xe   :  { %v338_v26 = vld [vmem:[%s872_s0 + $0x60] sm:$0xff]  ;;  %335 = vst [vmem:[%s873_s1 + $0x20] sm:$0xff] %v97_v24  ;;  %337 = vst [vmem:[%s873_s1 + $0x50] sm:$0xff] %v336_v25  ;;  %v340_v27 = vld [vmem:[%s872_s0 + $0x90] sm:$0xff] }
   0xf   :  { %339 = vst [vmem:[%s873_s1 + $0x80] sm:$0xff] %v338_v26  ;;  %v342_v28 = vld [vmem:[%s872_s0 + $0xc0] sm:$0xff]  ;;  %v344_v29 = vld [vmem:[%s872_s0 + $0xf0] sm:$0xff]  ;;  %341 = vst [vmem:[%s873_s1 + $0xb0] sm:$0xff] %v340_v27 }
  0x10   :  { %343 = vst [vmem:[%s873_s1 + $0xe0] sm:$0xff] %v342_v28  ;;  %345 = vst [vmem:[%s873_s1 + $0x110] sm:$0xff] %v344_v29  ;;  %v346_v30 = vld [vmem:[%s872_s0 + $0x120] sm:$0xff]  ;;  %v348_v31 = vld [vmem:[%s872_s0 + $0x150] sm:$0xff] }
  0x11   :  { %v350_v32 = vld [vmem:[%s872_s0 + $0x180] sm:$0xff]  ;;  %347 = vst [vmem:[%s873_s1 + $0x140] sm:$0xff] %v346_v30  ;;  %349 = vst [vmem:[%s873_s1 + $0x170] sm:$0xff] %v348_v31  ;;  %v352_v33 = vld [vmem:[%s872_s0 + $0x1b0] sm:$0xff] }
  0x12   :  { %351 = vst [vmem:[%s873_s1 + $0x1a0] sm:$0xff] %v350_v32  ;;  %v354_v34 = vld [vmem:[%s872_s0 + $0x1e0] sm:$0xff]  ;;  %v356_v35 = vld [vmem:[%s872_s0 + $0x210] sm:$0xff]  ;;  %353 = vst [vmem:[%s873_s1 + $0x1d0] sm:$0xff] %v352_v33 }
  0x13   :  { %355 = vst [vmem:[%s873_s1 + $0x200] sm:$0xff] %v354_v34  ;;  %357 = vst [vmem:[%s873_s1 + $0x230] sm:$0xff] %v356_v35  ;;  %v360_v37 = vld [vmem:[%s872_s0 + $0x58] sm:$0xff]  ;;  %v362_v38 = vld [vmem:[%s872_s0 + $0x88] sm:$0xff] }
  0x14   :  { %359 = vst [vmem:[%s873_s1 + $0x8] sm:$0xff] %v358_v36  ;;  %361 = vst [vmem:[%s873_s1 + $0x38] sm:$0xff] %v360_v37  ;;  %v364_v39 = vld [vmem:[%s872_s0 + $0xb8] sm:$0xff]  ;;  %v366_v40 = vld [vmem:[%s872_s0 + $0xe8] sm:$0xff] }
  0x15   :  { %363 = vst [vmem:[%s873_s1 + $0x68] sm:$0xff] %v362_v38  ;;  %v368_v41 = vld [vmem:[%s872_s0 + $0x118] sm:$0xff]  ;;  %365 = vst [vmem:[%s873_s1 + $0x98] sm:$0xff] %v364_v39  ;;  %v370_v42 = vld [vmem:[%s872_s0 + $0x148] sm:$0xff] }
  0x16   :  { %367 = vst [vmem:[%s873_s1 + $0xc8] sm:$0xff] %v366_v40  ;;  %369 = vst [vmem:[%s873_s1 + $0xf8] sm:$0xff] %v368_v41  ;;  %v372_v43 = vld [vmem:[%s872_s0 + $0x178] sm:$0xff]  ;;  %v374_v44 = vld [vmem:[%s872_s0 + $0x1a8] sm:$0xff] }
  0x17   :  { %371 = vst [vmem:[%s873_s1 + $0x128] sm:$0xff] %v370_v42  ;;  %373 = vst [vmem:[%s873_s1 + $0x158] sm:$0xff] %v372_v43  ;;  %v376_v45 = vld [vmem:[%s872_s0 + $0x1d8] sm:$0xff]  ;;  %v378_v46 = vld [vmem:[%s872_s0 + $0x208] sm:$0xff] }
  0x18   :  { %375 = vst [vmem:[%s873_s1 + $0x188] sm:$0xff] %v374_v44  ;;  %v380_v47 = vld [vmem:[%s872_s0 + $0x238] sm:$0xff]  ;;  %377 = vst [vmem:[%s873_s1 + $0x1b8] sm:$0xff] %v376_v45  ;;  %v384_v49 = vld [vmem:[%s872_s0 + $0x48] sm:$0xff] }
  0x19   :  { %379 = vst [vmem:[%s873_s1 + $0x1e8] sm:$0xff] %v378_v46  ;;  %381 = vst [vmem:[%s873_s1 + $0x218] sm:$0xff] %v380_v47  ;;  %v382_v48 = vld [vmem:[%s872_s0 + $0x18] sm:$0xff]  ;;  %v388_v51 = vld [vmem:[%s872_s0 + $0xa8] sm:$0xff] }
  0x1a   :  { %v386_v50 = vld [vmem:[%s872_s0 + $0x78] sm:$0xff]  ;;  %383 = vst [vmem:[%s873_s1 + $0x18] sm:$0xff] %v382_v48  ;;  %385 = vst [vmem:[%s873_s1 + $0x48] sm:$0xff] %v384_v49  ;;  %v392_v53 = vld [vmem:[%s872_s0 + $0x108] sm:$0xff] }
  0x1b   :  { %387 = vst [vmem:[%s873_s1 + $0x78] sm:$0xff] %v386_v50  ;;  %v390_v52 = vld [vmem:[%s872_s0 + $0xd8] sm:$0xff]  ;;  %389 = vst [vmem:[%s873_s1 + $0xa8] sm:$0xff] %v388_v51  ;;  %v396_v55 = vld [vmem:[%s872_s0 + $0x168] sm:$0xff] }
  0x1c   :  { %391 = vst [vmem:[%s873_s1 + $0xd8] sm:$0xff] %v390_v52  ;;  %393 = vst [vmem:[%s873_s1 + $0x108] sm:$0xff] %v392_v53  ;;  %v394_v54 = vld [vmem:[%s872_s0 + $0x138] sm:$0xff]  ;;  %v400_v57 = vld [vmem:[%s872_s0 + $0x1c8] sm:$0xff] }
  0x1d   :  { %v398_v56 = vld [vmem:[%s872_s0 + $0x198] sm:$0xff]  ;;  %395 = vst [vmem:[%s873_s1 + $0x138] sm:$0xff] %v394_v54  ;;  %397 = vst [vmem:[%s873_s1 + $0x168] sm:$0xff] %v396_v55  ;;  %v404_v59 = vld [vmem:[%s872_s0 + $0x228] sm:$0xff] }
  0x1e   :  { %399 = vst [vmem:[%s873_s1 + $0x198] sm:$0xff] %v398_v56  ;;  %v402_v58 = vld [vmem:[%s872_s0 + $0x1f8] sm:$0xff]  ;;  %401 = vst [vmem:[%s873_s1 + $0x1c8] sm:$0xff] %v400_v57  ;;  %v406_v60 = vld [vmem:[%s872_s0 + $0x8] sm:$0xff] }
  0x1f   :  { %403 = vst [vmem:[%s873_s1 + $0x1f8] sm:$0xff] %v402_v58  ;;  %405 = vst [vmem:[%s873_s1 + $0x228] sm:$0xff] %v404_v59  ;;  %v408_v61 = vld [vmem:[%s872_s0 + $0x38] sm:$0xff]  ;;  %v410_v62 = vld [vmem:[%s872_s0 + $0x68] sm:$0xff] }
  0x20   :  { %407 = vst [vmem:[%s873_s1 + $0x28] sm:$0xff] %v406_v60  ;;  %409 = vst [vmem:[%s873_s1 + $0x58] sm:$0xff] %v408_v61  ;;  %v412_v63 = vld [vmem:[%s872_s0 + $0x98] sm:$0xff]  ;;  %v414_v0 = vld [vmem:[%s872_s0 + $0xc8] sm:$0xff] }
  0x21   :  { %411 = vst [vmem:[%s873_s1 + $0x88] sm:$0xff] %v410_v62  ;;  %v416_v1 = vld [vmem:[%s872_s0 + $0xf8] sm:$0xff]  ;;  %413 = vst [vmem:[%s873_s1 + $0xb8] sm:$0xff] %v412_v63  ;;  %v418_v2 = vld [vmem:[%s872_s0 + $0x128] sm:$0xff] }
  0x22   :  { %415 = vst [vmem:[%s873_s1 + $0xe8] sm:$0xff] %v414_v0  ;;  %417 = vst [vmem:[%s873_s1 + $0x118] sm:$0xff] %v416_v1  ;;  %v420_v3 = vld [vmem:[%s872_s0 + $0x158] sm:$0xff]  ;;  %v422_v4 = vld [vmem:[%s872_s0 + $0x188] sm:$0xff] }
  0x23   :  { %419 = vst [vmem:[%s873_s1 + $0x148] sm:$0xff] %v418_v2  ;;  %421 = vst [vmem:[%s873_s1 + $0x178] sm:$0xff] %v420_v3  ;;  %v424_v5 = vld [vmem:[%s872_s0 + $0x1b8] sm:$0xff]  ;;  %v426_v6 = vld [vmem:[%s872_s0 + $0x1e8] sm:$0xff] }
  0x24   :  { %423 = vst [vmem:[%s873_s1 + $0x1a8] sm:$0xff] %v422_v4  ;;  %v428_v7 = vld [vmem:[%s872_s0 + $0x218] sm:$0xff]  ;;  %425 = vst [vmem:[%s873_s1 + $0x1d8] sm:$0xff] %v424_v5 }
  0x25   :  { %427 = vst [vmem:[%s873_s1 + $0x208] sm:$0xff] %v426_v6  ;;  %429 = vst [vmem:[%s873_s1 + $0x238] sm:$0xff] %v428_v7 }

// kernel: mamba_pod_time_fno_forward.10
= control target key start
LH: loop header
LB: loop body
LE: loop exit
PB: predicated region body
PF: predicated region fallthrough
CT: control target
= control target key end

     0   :  { %s1881_s15 = smov 0   ;;  %s2725_s0 = inlined_call_operand.vmem [shape: f32[2048,12], index: 0, kind: input, shape index: {}]   ;;  %s2726_s1 = inlined_call_operand.vmem [shape: bf16[12,12], index: 1, kind: input, shape index: {}]   ;;  %s2727_s2 = inlined_call_operand.vmem [shape: f32[1,12], index: 2, kind: input, shape index: {}]   ;;  %s2728_s3 = inlined_call_operand.vmem [shape: f32[2048,12], index: 3, kind: input, shape index: {}]   ;;  %s2729_s4 = inlined_call_operand.vmem [shape: f32[2048,12], index: 4, kind: output, shape index: {}]  }
   0x1 LB: > { %s1560_s16 = sadd.s32 4294967295, %s1854_s15   ;;  %p1564_p0 = scmp.ge.s32.totalorder %s1854_s15, 1  ;;  %s1854_s15 = sphi %s1881_s15, %s14_s15  }
   0x2   : > { %p174_p1 = scmp.lt.s32.totalorder %s1854_s15, 5 }
   0x4   : > { %p175_p2 = pnand %p1564_p0, %p174_p1 }
   0x5   : > { %s1565_s19 = sshll.u32 (!%p175_p2), %s1560_s16, 6 }
   0x6   : > { %178 = sbr.rel (%p175_p2) target bundleno = 407 (0x197), region = 36  ;;  %p206_p3 = scmp.lt.s32.totalorder (!%p175_p2), %s1565_s19, 255 }
   0xb   : > { %v1718_v0 = vld [vmem:[%s2726_s1] sm:$0x3f]   ;;  %vm431_vm0 = vcmask 1045504   ;;  %s2731_s19 = smov (!%p206_p3, %s1565_s19), 255  ;;  %vm334_vm1 = vcmask 97280  }
   0xc   : > { %1708 = vmatprep.subr.msk.bf16.mxu0 %vm431_vm0, %v1718_v0  ;;  %1709 = vmatprep.subr.msk.bf16.mxu1 %vm431_vm0, %v1718_v0  ;;  %v433_v1 = vsel %vm431_vm0, %v1718_v0, 0  ;;  %s1892_s20 = sshll.u32 %s2731_s19, 3 }
   0xd   : > { %1641 = vmatpush3.bf16.msra.mxu0 %v433_v1  ;;  %1707 = vmatpush3.bf16.msra.mxu1 %v433_v1  ;;  %s1898_s23 = scalar_lea.vmem %s2725_s0, %s1892_s20  ;;  %s2000_s26 = scalar_lea.vmem %s2728_s3, %s1892_s20 }
   0xe   : > { %v224_v2 = vld [vmem:[%s1898_s23] sm:$0xff]  ;;  %v225_v3 = vld [vmem:[%s1898_s23 + $0x8] sm:$0xff]  ;;  %v226_v7 = vld [vmem:[%s1898_s23 + $0x10] sm:$0xff]  ;;  %s2133_s5 = scalar_lea.vmem %s2729_s4, %s1892_s20 }
   0xf   : > { %v256_v4 = vld [vmem:[%s1898_s23 + $0x100] sm:$0xff]  ;;  %v288_v5 = vpack.c.bf16 %v225_v3, %v224_v2  ;;  %v257_v6 = vld [vmem:[%s1898_s23 + $0x108] sm:$0xff]  ;;  %v227_v8 = vld [vmem:[%s1898_s23 + $0x18] sm:$0xff] }
  0x10   : > { %v304_v9 = vpack.c.bf16 %v257_v6, %v256_v4  ;;  %v289_v10 = vpack.c.bf16 %v227_v8, %v226_v7  ;;  %v258_v11 = vld [vmem:[%s1898_s23 + $0x110] sm:$0xff]  ;;  %v259_v12 = vld [vmem:[%s1898_s23 + $0x118] sm:$0xff]  ;;  %v228_v13 = vld [vmem:[%s1898_s23 + $0x20] sm:$0xff] }
  0x11   : > { %1642 = vmatprep.mubr.msk.bf16.mxu0 %vm334_vm1, %v288_v5  ;;  %v305_v14 = vpack.c.bf16 %v259_v12, %v258_v11  ;;  %v229_v15 = vld [vmem:[%s1898_s23 + $0x28] sm:$0xff]  ;;  %v260_v16 = vld [vmem:[%s1898_s23 + $0x120] sm:$0xff]  ;;  %v230_v20 = vld [vmem:[%s1898_s23 + $0x30] sm:$0xff] }
  0x12   : > { %v261_v17 = vld [vmem:[%s1898_s23 + $0x128] sm:$0xff]  ;;  %1674 = vmatprep.mubr.msk.bf16.mxu1 %vm334_vm1, %v304_v9  ;;  %1643 = vmatmul.mubr.msk.bf16.vlgmr.msra.gmra.mxu0 %vm334_vm1, %v289_v10  ;;  %v290_v18 = vpack.c.bf16 %v229_v15, %v228_v13  ;;  %v231_v21 = vld [vmem:[%s1898_s23 + $0x38] sm:$0xff]  ;;  %v262_v22 = vld [vmem:[%s1898_s23 + $0x130] sm:$0xff] }
  0x13   : > { %v306_v19 = vpack.c.bf16 %v261_v17, %v260_v16  ;;  %1675 = vmatmul.mubr.msk.bf16.vlgmr.msra.gmra.mxu1 %vm334_vm1, %v305_v14  ;;  %v263_v23 = vld [vmem:[%s1898_s23 + $0x138] sm:$0xff]  ;;  %v232_v24 = vld [vmem:[%s1898_s23 + $0x40] sm:$0xff]  ;;  %v233_v25 = vld [vmem:[%s1898_s23 + $0x48] sm:$0xff]  ;;  %v291_v28 = vpack.c.bf16 %v231_v21, %v230_v20 }
  0x14   : > { %1646 = vmatprep.mubr.msk.bf16.mxu0 %vm334_vm1, %v290_v18  ;;  %v264_v26 = vld [vmem:[%s1898_s23 + $0x140] sm:$0xff]  ;;  %v265_v27 = vld [vmem:[%s1898_s23 + $0x148] sm:$0xff]  ;;  %v307_v29 = vpack.c.bf16 %v263_v23, %v262_v22  ;;  %v292_v30 = vpack.c.bf16 %v233_v25, %v232_v24  ;;  %v234_v32 = vld [vmem:[%s1898_s23 + $0x50] sm:$0xff] }
  0x15   : > { %1678 = vmatprep.mubr.msk.bf16.mxu1 %vm334_vm1, %v306_v19  ;;  %v308_v31 = vpack.c.bf16 %v265_v27, %v264_v26  ;;  %v235_v33 = vld [vmem:[%s1898_s23 + $0x58] sm:$0xff]  ;;  %v266_v34 = vld [vmem:[%s1898_s23 + $0x150] sm:$0xff]  ;;  %v236_v36 = vld [vmem:[%s1898_s23 + $0x60] sm:$0xff] }
  0x16   : > { %v267_v35 = vld [vmem:[%s1898_s23 + $0x158] sm:$0xff]  ;;  %v237_v37 = vld [vmem:[%s1898_s23 + $0x68] sm:$0xff]  ;;  %v268_v38 = vld [vmem:[%s1898_s23 + $0x160] sm:$0xff]  ;;  %v293_v40 = vpack.c.bf16 %v235_v33, %v234_v32 }
  0x17   : > { %v269_v39 = vld [vmem:[%s1898_s23 + $0x168] sm:$0xff]  ;;  %v309_v41 = vpack.c.bf16 %v267_v35, %v266_v34  ;;  %v294_v42 = vpack.c.bf16 %v237_v37, %v236_v36  ;;  %v238_v44 = vld [vmem:[%s1898_s23 + $0x70] sm:$0xff]  ;;  %v239_v45 = vld [vmem:[%s1898_s23 + $0x78] sm:$0xff] }
  0x18   : > { %v310_v43 = vpack.c.bf16 %v269_v39, %v268_v38  ;;  %v270_v46 = vld [vmem:[%s1898_s23 + $0x170] sm:$0xff]  ;;  %v271_v47 = vld [vmem:[%s1898_s23 + $0x178] sm:$0xff]  ;;  %v240_v48 = vld [vmem:[%s1898_s23 + $0x80] sm:$0xff]  ;;  %v295_v52 = vpack.c.bf16 %v239_v45, %v238_v44 }
  0x19   : > { %v241_v49 = vld [vmem:[%s1898_s23 + $0x88] sm:$0xff]  ;;  %v272_v50 = vld [vmem:[%s1898_s23 + $0x180] sm:$0xff]  ;;  %v311_v53 = vpack.c.bf16 %v271_v47, %v270_v46  ;;  %v242_v56 = vld [vmem:[%s1898_s23 + $0x90] sm:$0xff] }
  0x1a   : > { %1647 = vmatmul.mubr.msk.bf16.gmra.mxu0 %vm334_vm1, %v291_v28  ;;  %v273_v51 = vld [vmem:[%s1898_s23 + $0x188] sm:$0xff]  ;;  %v296_v54 = vpack.c.bf16 %v241_v49, %v240_v48  ;;  %v243_v57 = vld [vmem:[%s1898_s23 + $0x98] sm:$0xff]  ;;  %v274_v58 = vld [vmem:[%s1898_s23 + $0x190] sm:$0xff] }
  0x1b   : > { %1679 = vmatmul.mubr.msk.bf16.gmra.mxu1 %vm334_vm1, %v307_v29  ;;  %1650 = vmatprep.mubr.msk.bf16.mxu0 %vm334_vm1, %v292_v30  ;;  %v312_v55 = vpack.c.bf16 %v273_v51, %v272_v50  ;;  %v275_v59 = vld [vmem:[%s1898_s23 + $0x198] sm:$0xff]  ;;  %v244_v60 = vld [vmem:[%s1898_s23 + $0xa0] sm:$0xff]  ;;  %v245_v61 = vld [vmem:[%s1898_s23 + $0xa8] sm:$0xff]  ;;  %v297_v0 = vpack.c.bf16 %v243_v57, %v242_v56 }
  0x1c   : > { %1682 = vmatprep.mubr.msk.bf16.mxu1 %vm334_vm1, %v308_v31  ;;  %v276_v62 = vld [vmem:[%s1898_s23 + $0x1a0] sm:$0xff]  ;;  %v277_v63 = vld [vmem:[%s1898_s23 + $0x1a8] sm:$0xff]  ;;  %v313_v1 = vpack.c.bf16 %v275_v59, %v274_v58  ;;  %v298_v2 = vpack.c.bf16 %v245_v61, %v244_v60  ;;  %v246_v4 = vld [vmem:[%s1898_s23 + $0xb0] sm:$0xff] }
  0x1d   : > { %v314_v3 = vpack.c.bf16 %v277_v63, %v276_v62  ;;  %v247_v5 = vld [vmem:[%s1898_s23 + $0xb8] sm:$0xff]  ;;  %v278_v6 = vld [vmem:[%s1898_s23 + $0x1b0] sm:$0xff]  ;;  %v248_v8 = vld [vmem:[%s1898_s23 + $0xc0] sm:$0xff] }
  0x1e   : > { %v279_v7 = vld [vmem:[%s1898_s23 + $0x1b8] sm:$0xff]  ;;  %v249_v9 = vld [vmem:[%s1898_s23 + $0xc8] sm:$0xff]  ;;  %v280_v10 = vld [vmem:[%s1898_s23 + $0x1c0] sm:$0xff]  ;;  %v299_v12 = vpack.c.bf16 %v247_v5, %v246_v4 }
  0x1f   : > { %v281_v11 = vld [vmem:[%s1898_s23 + $0x1c8] sm:$0xff]  ;;  %v315_v13 = vpack.c.bf16 %v279_v7, %v278_v6  ;;  %v300_v14 = vpack.c.bf16 %v249_v9, %v248_v8  ;;  %v250_v16 = vld [vmem:[%s1898_s23 + $0xd0] sm:$0xff]  ;;  %v251_v17 = vld [vmem:[%s1898_s23 + $0xd8] sm:$0xff] }
  0x20   : > { %v316_v15 = vpack.c.bf16 %v281_v11, %v280_v10  ;;  %v282_v18 = vld [vmem:[%s1898_s23 + $0x1d0] sm:$0xff]  ;;  %v283_v19 = vld [vmem:[%s1898_s23 + $0x1d8] sm:$0xff]  ;;  %v252_v20 = vld [vmem:[%s1898_s23 + $0xe0] sm:$0xff]  ;;  %v301_v24 = vpack.c.bf16 %v251_v17, %v250_v16 }
  0x21   : > { %v253_v21 = vld [vmem:[%s1898_s23 + $0xe8] sm:$0xff]  ;;  %v284_v22 = vld [vmem:[%s1898_s23 + $0x1e0] sm:$0xff]  ;;  %v317_v25 = vpack.c.bf16 %v283_v19, %v282_v18  ;;  %v254_v28 = vld [vmem:[%s1898_s23 + $0xf0] sm:$0xff] }
  0x22   : > { %1651 = vmatmul.mubr.msk.bf16.gmra.mxu0 %vm334_vm1, %v293_v40  ;;  %v285_v23 = vld [vmem:[%s1898_s23 + $0x1e8] sm:$0xff]  ;;  %v302_v26 = vpack.c.bf16 %v253_v21, %v252_v20  ;;  %v255_v29 = vld [vmem:[%s1898_s23 + $0xf8] sm:$0xff]  ;;  %v286_v30 = vld [vmem:[%s1898_s23 + $0x1f0] sm:$0xff] }
  0x23   : > { %1683 = vmatmul.mubr.msk.bf16.gmra.mxu1 %vm334_vm1, %v309_v41  ;;  %1654 = vmatprep.mubr.msk.bf16.mxu0 %vm334_vm1, %v294_v42  ;;  %v318_v27 = vpack.c.bf16 %v285_v23, %v284_v22  ;;  %v287_v31 = vld [vmem:[%s1898_s23 + $0x1f8] sm:$0xff]  ;;  %v303_v32 = vpack.c.bf16 %v255_v29, %v254_v28  ;;  %v2005_v34 = vld [vmem:[%s2727_s2] ss:$0 sm:$0xff]  ;;  %v726_v36 = vld [vmem:[%s2000_s26 + $0x10] sm:$0xff] }
  0x24   : > { %1686 = vmatprep.mubr.msk.bf16.mxu1 %vm334_vm1, %v310_v43  ;;  %v319_v33 = vpack.c.bf16 %v287_v31, %v286_v30  ;;  %v758_v39 = vld [vmem:[%s2000_s26 + $0x110] sm:$0xff]  ;;  %v724_v42 = vld [vmem:[%s2000_s26] sm:$0xff]  ;;  %v727_v50 = vld [vmem:[%s2000_s26 + $0x18] sm:$0xff] }
  0x25   : > { %v756_v46 = vld [vmem:[%s2000_s26 + $0x100] sm:$0xff]  ;;  %v725_v60 = vld [vmem:[%s2000_s26 + $0x8] sm:$0xff] }
  0x2a   : > { %1655 = vmatmul.mubr.msk.bf16.gmra.mxu0 %vm334_vm1, %v295_v52 }
  0x2b   : > { %1687 = vmatmul.mubr.msk.bf16.gmra.mxu1 %vm334_vm1, %v311_v53  ;;  %1658 = vmatprep.mubr.msk.bf16.mxu0 %vm334_vm1, %v296_v54 }
  0x2c   : > { %1690 = vmatprep.mubr.msk.bf16.mxu1 %vm334_vm1, %v312_v55  ;;  %v759_v55 = vld [vmem:[%s2000_s26 + $0x118] sm:$0xff] }
  0x32   : > { %1659 = vmatmul.mubr.msk.bf16.gmra.mxu0 %vm334_vm1, %v297_v0 }
  0x33   : > { %1691 = vmatmul.mubr.msk.bf16.gmra.mxu1 %vm334_vm1, %v313_v1  ;;  %1662 = vmatprep.mubr.msk.bf16.mxu0 %vm334_vm1, %v298_v2  ;;  %v757_v2 = vld [vmem:[%s2000_s26 + $0x108] sm:$0xff] }
  0x34   : > { %1694 = vmatprep.mubr.msk.bf16.mxu1 %vm334_vm1, %v314_v3 }
  0x3a   : > { %1663 = vmatmul.mubr.msk.bf16.gmra.mxu0 %vm334_vm1, %v299_v12 }
  0x3b   : > { %1695 = vmatmul.mubr.msk.bf16.gmra.mxu1 %vm334_vm1, %v315_v13  ;;  %1666 = vmatprep.mubr.msk.bf16.mxu0 %vm334_vm1, %v300_v14 }
  0x3c   : > { %1698 = vmatprep.mubr.msk.bf16.mxu1 %vm334_vm1, %v316_v15 }
  0x42   : > { %1667 = vmatmul.mubr.msk.bf16.gmra.mxu0 %vm334_vm1, %v301_v24 }
  0x43   : > { %1699 = vmatmul.mubr.msk.bf16.gmra.mxu1 %vm334_vm1, %v317_v25  ;;  %1670 = vmatprep.mubr.msk.bf16.mxu0 %vm334_vm1, %v302_v26 }
  0x44   : > { %1702 = vmatprep.mubr.msk.bf16.mxu1 %vm334_vm1, %v318_v27 }
  0x4a   : > { %1671 = vmatmul.mubr.msk.bf16.gmra.mxu0 %vm334_vm1, %v303_v32 }
  0x4b   : > { %1703 = vmatmul.mubr.msk.bf16.gmra.mxu1 %vm334_vm1, %v319_v33 }
  0xd2   : > { %v1644_v35 = vpop.f32.mrf.mxu0 }
  0xd3   : > { %v478_v37 = vadd.f32 %v1644_v35, %v2005_v34  ;;  %v1676_v38 = vpop.f32.mrf.mxu1 }
  0xd4   : > { %v606_v40 = vadd.f32 %v1676_v38, %v2005_v34  ;;  %v469_v41 = vpop.f32.mrf.mxu0 }
  0xd5   : > { %v2012_v43 = vadd.f32 %v726_v36, %v478_v37  ;;  %v470_v44 = vadd.f32 %v2005_v34, %v469_v41  ;;  %v597_v45 = vpop.f32.mrf.mxu1 }
  0xd6   : > { %v2016_v47 = vadd.f32 %v758_v39, %v606_v40  ;;  %v598_v48 = vadd.f32 %v2005_v34, %v597_v45  ;;  %v1645_v49 = vpop.f32.mrf.mxu0 }
  0xd7   : > { %v854_v51 = vmul.f32 %v2012_v43, %v2012_v43  ;;  %v2022_v52 = vadd.f32 %v724_v42, %v470_v44  ;;  %v481_v53 = vadd.f32 %v1645_v49, %v2005_v34  ;;  %v1677_v54 = vpop.f32.mrf.mxu1  ;;  %v730_v42 = vld [vmem:[%s2000_s26 + $0x30] sm:$0xff] }
  0xd8   : > { %v886_v56 = vmul.f32 %v2016_v47, %v2016_v47  ;;  %v2028_v57 = vadd.f32 %v756_v46, %v598_v48  ;;  %v609_v58 = vadd.f32 %v1677_v54, %v2005_v34  ;;  %v472_v59 = vpop.f32.mrf.mxu0  ;;  %v762_v49 = vld [vmem:[%s2000_s26 + $0x130] sm:$0xff] }
  0xd9   : > { %v918_v61 = vmul.f32 %v854_v51, %v2012_v43  ;;  %v852_v62 = vmul.f32 %v2022_v52, %v2022_v52  ;;  %v2035_v63 = vadd.f32 %v727_v50, %v481_v53  ;;  %v473_v0 = vadd.f32 %v2005_v34, %v472_v59  ;;  %v600_v1 = vpop.f32.mrf.mxu1 }
  0xda   : > { %v950_v3 = vmul.f32 %v886_v56, %v2016_v47  ;;  %v884_v4 = vmul.f32 %v2028_v57, %v2028_v57  ;;  %v2042_v5 = vadd.f32 %v759_v55, %v609_v58  ;;  %v601_v6 = vadd.f32 %v2005_v34, %v600_v1  ;;  %v1648_v7 = vpop.f32.mrf.mxu0  ;;  %v728_v55 = vld [vmem:[%s2000_s26 + $0x20] sm:$0xff]  ;;  %v731_v1 = vld [vmem:[%s2000_s26 + $0x38] sm:$0xff] }
  0xdb   : > { %v982_v8 = vmul.f32 0.044715, %v918_v61  ;;  %v916_v9 = vmul.f32 %v852_v62, %v2022_v52  ;;  %v855_v10 = vmul.f32 %v2035_v63, %v2035_v63  ;;  %v2048_v11 = vadd.f32 %v725_v60, %v473_v0  ;;  %v1680_v12 = vpop.f32.mrf.mxu1  ;;  %v760_v60 = vld [vmem:[%s2000_s26 + $0x120] sm:$0xff] }
  0xdc   : > { %v1014_v13 = vmul.f32 0.044715, %v950_v3  ;;  %v948_v14 = vmul.f32 %v884_v4, %v2028_v57  ;;  %v887_v15 = vmul.f32 %v2042_v5, %v2042_v5  ;;  %v2053_v16 = vadd.f32 %v757_v2, %v601_v6  ;;  %v485_v25 = vpop.f32.mrf.mxu0 }
  0xdd   : > { %v1046_v17 = vadd.f32 %v982_v8, %v2012_v43  ;;  %v980_v18 = vmul.f32 0.044715, %v916_v9  ;;  %v919_v19 = vmul.f32 %v855_v10, %v2035_v63  ;;  %v853_v20 = vmul.f32 %v2048_v11, %v2048_v11  ;;  %v613_v30 = vpop.f32.mrf.mxu1 }
  0xde   : > { %v1078_v21 = vadd.f32 %v1014_v13, %v2016_v47  ;;  %v1012_v22 = vmul.f32 0.044715, %v948_v14  ;;  %v951_v23 = vmul.f32 %v887_v15, %v2042_v5  ;;  %v885_v24 = vmul.f32 %v2053_v16, %v2053_v16  ;;  %v1649_v44 = vpop.f32.mrf.mxu0  ;;  %v729_v13 = vld [vmem:[%s2000_s26 + $0x28] sm:$0xff] }
  0xdf   : > { %v1110_v26 = vmul.f32 0.7978846, %v1046_v17  ;;  %v1044_v27 = vadd.f32 %v980_v18, %v2022_v52  ;;  %v983_v28 = vmul.f32 0.044715, %v919_v19  ;;  %v917_v29 = vmul.f32 %v853_v20, %v2048_v11  ;;  %v1681_v50 = vpop.f32.mrf.mxu1  ;;  %v761_v19 = vld [vmem:[%s2000_s26 + $0x128] sm:$0xff] }
  0xe0   : > { %v1142_v31 = vmul.f32 0.7978846, %v1078_v21  ;;  %v1076_v32 = vadd.f32 %v1012_v22, %v2028_v57  ;;  %v1015_v33 = vmul.f32 0.044715, %v951_v23  ;;  %v949_v35 = vmul.f32 %v885_v24, %v2053_v16  ;;  %v488_v2 = vpop.f32.mrf.mxu0 }
  0xe1   : > { %1719 = vtanh.f32 %v1110_v26  ;;  %v1108_v36 = vmul.f32 0.7978846, %v1044_v27  ;;  %v1047_v37 = vadd.f32 %v983_v28, %v2035_v63  ;;  %v981_v38 = vmul.f32 0.044715, %v917_v29  ;;  %v616_v8 = vpop.f32.mrf.mxu1 }
  0xe2   : > { %1721 = vtanh.f32 %v1142_v31  ;;  %v1140_v39 = vmul.f32 0.7978846, %v1076_v32  ;;  %v1079_v40 = vadd.f32 %v1015_v33, %v2042_v5  ;;  %v1013_v41 = vmul.f32 0.044715, %v949_v35 }
  0xe3   : > { %1723 = vtanh.f32 %v1108_v36  ;;  %v1111_v45 = vmul.f32 0.7978846, %v1047_v37  ;;  %v1045_v46 = vadd.f32 %v981_v38, %v2048_v11  ;;  %v494_v48 = vadd.f32 %v1648_v7, %v2005_v34  ;;  %v763_v7 = vld [vmem:[%s2000_s26 + $0x138] sm:$0xff] }
  0xe4   : > { %1725 = vtanh.f32 %v1140_v39  ;;  %v1143_v51 = vmul.f32 0.7978846, %v1079_v40  ;;  %v1077_v53 = vadd.f32 %v1013_v41, %v2053_v16  ;;  %v622_v54 = vadd.f32 %v1680_v12, %v2005_v34 }
  0xe5   : > { %1727 = vtanh.f32 %v1111_v45  ;;  %v1109_v56 = vmul.f32 0.7978846, %v1045_v46  ;;  %v2076_v58 = vadd.f32 %v730_v42, %v494_v48  ;;  %v486_v59 = vadd.f32 %v2005_v34, %v485_v25 }
  0xe6   : > { %1729 = vtanh.f32 %v1143_v51  ;;  %v1141_v61 = vmul.f32 0.7978846, %v1077_v53  ;;  %v2080_v62 = vadd.f32 %v762_v49, %v622_v54  ;;  %v614_v0 = vadd.f32 %v2005_v34, %v613_v30 }
  0xe7   : > { %1731 = vtanh.f32 %v1109_v56  ;;  %v858_v3 = vmul.f32 %v2076_v58, %v2076_v58  ;;  %v2086_v4 = vadd.f32 %v728_v55, %v486_v59  ;;  %v497_v6 = vadd.f32 %v1649_v44, %v2005_v34 }
  0xe8   : > { %1733 = vtanh.f32 %v1141_v61  ;;  %v890_v9 = vmul.f32 %v2080_v62, %v2080_v62  ;;  %v2092_v10 = vadd.f32 %v760_v60, %v614_v0  ;;  %v625_v12 = vadd.f32 %v1681_v50, %v2005_v34  ;;  %v1652_v61 = vpop.f32.mrf.mxu0  ;;  %v1684_v0 = vpop.f32.mrf.mxu1 }
  0xe9   : > { %v922_v14 = vmul.f32 %v858_v3, %v2076_v58  ;;  %v856_v15 = vmul.f32 %v2086_v4, %v2086_v4  ;;  %v2099_v17 = vadd.f32 %v731_v1, %v497_v6  ;;  %v489_v18 = vadd.f32 %v2005_v34, %v488_v2 }
  0xea   : > { %v954_v20 = vmul.f32 %v890_v9, %v2080_v62  ;;  %v888_v21 = vmul.f32 %v2092_v10, %v2092_v10  ;;  %v2106_v22 = vadd.f32 %v763_v7, %v625_v12  ;;  %v617_v23 = vadd.f32 %v2005_v34, %v616_v8 }
  0xeb   : > { %v986_v24 = vmul.f32 0.044715, %v922_v14  ;;  %v920_v25 = vmul.f32 %v856_v15, %v2086_v4  ;;  %v859_v26 = vmul.f32 %v2099_v17, %v2099_v17  ;;  %v2112_v27 = vadd.f32 %v729_v13, %v489_v18 }
  0xec   : > { %v1018_v28 = vmul.f32 0.044715, %v954_v20  ;;  %v952_v29 = vmul.f32 %v888_v21, %v2092_v10  ;;  %v891_v30 = vmul.f32 %v2106_v22, %v2106_v22  ;;  %v2117_v31 = vadd.f32 %v761_v19, %v617_v23 }
  0xed   : > { %v1050_v32 = vadd.f32 %v986_v24, %v2076_v58  ;;  %v984_v33 = vmul.f32 0.044715, %v920_v25  ;;  %v923_v35 = vmul.f32 %v859_v26, %v2099_v17  ;;  %v857_v36 = vmul.f32 %v2112_v27, %v2112_v27  ;;  %v501_v24 = vpop.f32.mrf.mxu0  ;;  %v629_v25 = vpop.f32.mrf.mxu1 }
  0xee   : > { %v1720_v37 = vpop.eup %1719  ;;  %v1082_v38 = vadd.f32 %v1018_v28, %v2080_v62  ;;  %v1016_v39 = vmul.f32 0.044715, %v952_v29  ;;  %v955_v40 = vmul.f32 %v891_v30, %v2106_v22  ;;  %v889_v41 = vmul.f32 %v2117_v31, %v2117_v31 }
  0xef   : > { %v1722_v42 = vpop.eup %1721  ;;  %v1238_v44 = vadd.f32 1.0, %v1720_v37  ;;  %v1114_v45 = vmul.f32 0.7978846, %v1050_v32  ;;  %v1048_v46 = vadd.f32 %v984_v33, %v2086_v4  ;;  %v987_v48 = vmul.f32 0.044715, %v923_v35 }
  0xf0   : > { %v1724_v49 = vpop.eup %1723  ;;  %v1270_v50 = vadd.f32 1.0, %v1722_v42  ;;  %v1146_v51 = vmul.f32 0.7978846, %v1082_v38  ;;  %v1080_v53 = vadd.f32 %v1016_v39, %v2092_v10  ;;  %v1019_v54 = vmul.f32 0.044715, %v955_v40  ;;  %v734_v39 = vld [vmem:[%s2000_s26 + $0x50] sm:$0xff] }
  0xf1   : > { %v1726_v55 = vpop.eup %1725  ;;  %v1302_v56 = vmul.f32 0.5, %v1238_v44  ;;  %v1236_v59 = vadd.f32 1.0, %v1724_v49  ;;  %1735 = vtanh.f32 %v1114_v45  ;;  %v1112_v60 = vmul.f32 0.7978846, %v1048_v46  ;;  %v766_v42 = vld [vmem:[%s2000_s26 + $0x150] sm:$0xff]  ;;  %v1685_v44 = vpop.f32.mrf.mxu1 }
  0xf2   : > { %v1728_v1 = vpop.eup %1727  ;;  %v1334_v2 = vmul.f32 0.5, %v1270_v50  ;;  %v1268_v3 = vadd.f32 1.0, %v1726_v55  ;;  %1737 = vtanh.f32 %v1146_v51  ;;  %v1144_v6 = vmul.f32 0.7978846, %v1080_v53  ;;  %v767_v55 = vld [vmem:[%s2000_s26 + $0x158] sm:$0xff] }
  0xf3   : > { %v1730_v7 = vpop.eup %1729  ;;  %v1366_v8 = vmul.f32 %v1302_v56, %v2012_v43  ;;  %v1300_v9 = vmul.f32 0.5, %v1236_v59  ;;  %v1239_v12 = vadd.f32 1.0, %v1728_v1  ;;  %1739 = vtanh.f32 %v1112_v60 }
  0xf4   : > { %v1732_v13 = vpop.eup %1731  ;;  %v1398_v14 = vmul.f32 %v1334_v2, %v2016_v47  ;;  %v1332_v15 = vmul.f32 0.5, %v1268_v3  ;;  %v1271_v18 = vadd.f32 1.0, %v1730_v7  ;;  %1741 = vtanh.f32 %v1144_v6 }
  0xf5   : > { %v1734_v19 = vpop.eup %1733  ;;  %1430 = vst.msk [vmem:[%s2133_s5 + $0x10] sm:$0xff] %vm334_vm1, %v1366_v8  ;;  %v1364_v20 = vmul.f32 %v1300_v9, %v2022_v52  ;;  %v1303_v21 = vmul.f32 0.5, %v1239_v12  ;;  %v1237_v23 = vadd.f32 1.0, %v1732_v13  ;;  %v1051_v43 = vadd.f32 %v987_v48, %v2099_v17  ;;  %v732_v48 = vld [vmem:[%s2000_s26 + $0x40] sm:$0xff] }
  0xf6   : > { %1462 = vst.msk [vmem:[%s2133_s5 + $0x110] sm:$0xff] %vm334_vm1, %v1398_v14  ;;  %v1396_v47 = vmul.f32 %v1332_v15, %v2028_v57  ;;  %v1335_v26 = vmul.f32 0.5, %v1271_v18  ;;  %v1269_v28 = vadd.f32 1.0, %v1734_v19  ;;  %v1083_v29 = vadd.f32 %v1019_v54, %v2106_v22  ;;  %v735_v54 = vld [vmem:[%s2000_s26 + $0x58] sm:$0xff] }
  0xf7   : > { %1428 = vst.msk [vmem:[%s2133_s5] sm:$0xff] %vm334_vm1, %v1364_v20  ;;  %v1367_v52 = vmul.f32 %v1303_v21, %v2035_v63  ;;  %v1301_v30 = vmul.f32 0.5, %v1237_v23  ;;  %v1115_v32 = vmul.f32 0.7978846, %v1051_v43  ;;  %v921_v33 = vmul.f32 %v857_v36, %v2112_v27 }
  0xf8   : > { %1460 = vst.msk [vmem:[%s2133_s5 + $0x100] sm:$0xff] %vm334_vm1, %v1396_v47  ;;  %v1399_v35 = vmul.f32 %v1335_v26, %v2042_v5  ;;  %v1333_v37 = vmul.f32 0.5, %v1269_v28  ;;  %v1147_v57 = vmul.f32 0.7978846, %v1083_v29  ;;  %v953_v38 = vmul.f32 %v889_v41, %v2117_v31  ;;  %v1653_v5 = vpop.f32.mrf.mxu0 }
  0xf9   : > { %1431 = vst.msk [vmem:[%s2133_s5 + $0x18] sm:$0xff] %vm334_vm1, %v1367_v52  ;;  %v1365_v63 = vmul.f32 %v1301_v30, %v2048_v11  ;;  %1743 = vtanh.f32 %v1115_v32  ;;  %v985_v40 = vmul.f32 0.044715, %v921_v33  ;;  %v510_v36 = vadd.f32 %v1652_v61, %v2005_v34  ;;  %v764_v11 = vld [vmem:[%s2000_s26 + $0x140] sm:$0xff] }
  0xfa   : > { %1463 = vst.msk [vmem:[%s2133_s5 + $0x118] sm:$0xff] %vm334_vm1, %v1399_v35  ;;  %v1397_v41 = vmul.f32 %v1333_v37, %v2053_v16  ;;  %1745 = vtanh.f32 %v1147_v57  ;;  %v1017_v45 = vmul.f32 0.044715, %v953_v38  ;;  %v638_v46 = vadd.f32 %v1684_v0, %v2005_v34 }
  0xfb   : > { %1429 = vst.msk [vmem:[%s2133_s5 + $0x8] sm:$0xff] %vm334_vm1, %v1365_v63  ;;  %v1049_v49 = vadd.f32 %v985_v40, %v2112_v27  ;;  %v2168_v50 = vadd.f32 %v734_v39, %v510_v36  ;;  %v502_v51 = vadd.f32 %v2005_v34, %v501_v24  ;;  %v630_v53 = vadd.f32 %v2005_v34, %v629_v25  ;;  %v504_v63 = vpop.f32.mrf.mxu0 }
  0xfc   : > { %1461 = vst.msk [vmem:[%s2133_s5 + $0x108] sm:$0xff] %vm334_vm1, %v1397_v41  ;;  %v1081_v16 = vadd.f32 %v1017_v45, %v2117_v31  ;;  %v2177_v56 = vadd.f32 %v766_v42, %v638_v46  ;;  %v513_v59 = vadd.f32 %v1653_v5, %v2005_v34  ;;  %v641_v60 = vadd.f32 %v1685_v44, %v2005_v34  ;;  %v632_v5 = vpop.f32.mrf.mxu1 }
  0xfd   : > { %v1113_v61 = vmul.f32 0.7978846, %v1049_v49  ;;  %v862_v0 = vmul.f32 %v2168_v50, %v2168_v50  ;;  %v2183_v1 = vadd.f32 %v732_v48, %v502_v51  ;;  %v2185_v2 = vadd.f32 %v764_v11, %v630_v53 }
  0xfe   : > { %v1736_v3 = vpop.eup %1735  ;;  %v1145_v6 = vmul.f32 0.7978846, %v1081_v16  ;;  %v894_v7 = vmul.f32 %v2177_v56, %v2177_v56  ;;  %v2189_v8 = vadd.f32 %v735_v54, %v513_v59  ;;  %v2191_v9 = vadd.f32 %v767_v55, %v641_v60  ;;  %v733_v54 = vld [vmem:[%s2000_s26 + $0x48] sm:$0xff]  ;;  %v1656_v55 = vpop.f32.mrf.mxu0 }
  0xff   : > { %v1738_v12 = vpop.eup %1737  ;;  %v1242_v13 = vadd.f32 1.0, %v1736_v3  ;;  %1747 = vtanh.f32 %v1113_v61  ;;  %v926_v14 = vmul.f32 %v862_v0, %v2168_v50  ;;  %v860_v15 = vmul.f32 %v2183_v1, %v2183_v1  ;;  %v765_v61 = vld [vmem:[%s2000_s26 + $0x148] sm:$0xff]  ;;  %v1688_v0 = vpop.f32.mrf.mxu1 }
 0x100   : > { %v1740_v18 = vpop.eup %1739  ;;  %v1274_v19 = vadd.f32 1.0, %v1738_v12  ;;  %1749 = vtanh.f32 %v1145_v6  ;;  %v958_v20 = vmul.f32 %v894_v7, %v2177_v56  ;;  %v892_v21 = vmul.f32 %v2185_v2, %v2185_v2  ;;  %v738_v12 = vld [vmem:[%s2000_s26 + $0x70] sm:$0xff] }
 0x101   : > { %v1742_v23 = vpop.eup %1741  ;;  %v1306_v43 = vmul.f32 0.5, %v1242_v13  ;;  %v1240_v24 = vadd.f32 1.0, %v1740_v18  ;;  %v990_v25 = vmul.f32 0.044715, %v926_v14  ;;  %v924_v47 = vmul.f32 %v860_v15, %v2183_v1 }
 0x102   : > { %v1338_v26 = vmul.f32 0.5, %v1274_v19  ;;  %v1272_v28 = vadd.f32 1.0, %v1742_v23  ;;  %v1022_v29 = vmul.f32 0.044715, %v958_v20  ;;  %v956_v52 = vmul.f32 %v892_v21, %v2185_v2  ;;  %v770_v19 = vld [vmem:[%s2000_s26 + $0x170] sm:$0xff] }
 0x103   : > { %v1370_v30 = vmul.f32 %v1306_v43, %v2076_v58  ;;  %v1304_v32 = vmul.f32 0.5, %v1240_v24  ;;  %v1054_v33 = vadd.f32 %v990_v25, %v2168_v50  ;;  %v988_v35 = vmul.f32 0.044715, %v924_v47  ;;  %v517_v25 = vpop.f32.mrf.mxu0 }
 0x104   : > { %v1402_v37 = vmul.f32 %v1338_v26, %v2080_v62  ;;  %v1336_v57 = vmul.f32 0.5, %v1272_v28  ;;  %v1086_v38 = vadd.f32 %v1022_v29, %v2177_v56  ;;  %v1020_v39 = vmul.f32 0.044715, %v956_v52  ;;  %v645_v52 = vpop.f32.mrf.mxu1 }
 0x105   : > { %1434 = vst.msk [vmem:[%s2133_s5 + $0x30] sm:$0xff] %vm334_vm1, %v1370_v30  ;;  %v1368_v40 = vmul.f32 %v1304_v32, %v2086_v4  ;;  %v1118_v36 = vmul.f32 0.7978846, %v1054_v33  ;;  %v1052_v58 = vadd.f32 %v988_v35, %v2183_v1  ;;  %v863_v42 = vmul.f32 %v2189_v8, %v2189_v8 }
 0x106   : > { %v1744_v44 = vpop.eup %1743  ;;  %1466 = vst.msk [vmem:[%s2133_s5 + $0x130] sm:$0xff] %vm334_vm1, %v1402_v37  ;;  %v1400_v62 = vmul.f32 %v1336_v57, %v2092_v10  ;;  %v1150_v41 = vmul.f32 0.7978846, %v1086_v38  ;;  %v1084_v45 = vadd.f32 %v1020_v39, %v2185_v2  ;;  %v895_v4 = vmul.f32 %v2191_v9, %v2191_v9 }
 0x107   : > { %v1746_v46 = vpop.eup %1745  ;;  %1432 = vst.msk [vmem:[%s2133_s5 + $0x20] sm:$0xff] %vm334_vm1, %v1368_v40  ;;  %v1243_v48 = vadd.f32 1.0, %v1744_v44  ;;  %1751 = vtanh.f32 %v1118_v36  ;;  %v1116_v11 = vmul.f32 0.7978846, %v1052_v58  ;;  %v927_v49 = vmul.f32 %v863_v42, %v2189_v8  ;;  %v736_v40 = vld [vmem:[%s2000_s26 + $0x60] sm:$0xff]  ;;  %v1657_v36 = vpop.f32.mrf.mxu0 }
 0x108   : > { %1464 = vst.msk [vmem:[%s2133_s5 + $0x120] sm:$0xff] %vm334_vm1, %v1400_v62  ;;  %v1275_v51 = vadd.f32 1.0, %v1746_v46  ;;  %1753 = vtanh.f32 %v1150_v41  ;;  %v1148_v10 = vmul.f32 0.7978846, %v1084_v45  ;;  %v959_v53 = vmul.f32 %v895_v4, %v2191_v9  ;;  %v768_v62 = vld [vmem:[%s2000_s26 + $0x160] sm:$0xff]  ;;  %v1689_v41 = vpop.f32.mrf.mxu1 }
 0x109   : > { %v1307_v16 = vmul.f32 0.5, %v1243_v48  ;;  %1755 = vtanh.f32 %v1116_v11  ;;  %v991_v59 = vmul.f32 0.044715, %v927_v49  ;;  %v505_v60 = vadd.f32 %v2005_v34, %v504_v63 }
 0x10a   : > { %v1339_v3 = vmul.f32 0.5, %v1275_v51  ;;  %1757 = vtanh.f32 %v1148_v10  ;;  %v1023_v6 = vmul.f32 0.044715, %v959_v53  ;;  %v633_v7 = vadd.f32 %v2005_v34, %v632_v5 }
 0x10b   : > { %v1371_v13 = vmul.f32 %v1307_v16, %v2099_v17  ;;  %v1055_v14 = vadd.f32 %v991_v59, %v2189_v8  ;;  %v2230_v15 = vadd.f32 %v733_v54, %v505_v60  ;;  %v526_v18 = vadd.f32 %v1656_v55, %v2005_v34 }
 0x10c   : > { %v1748_v20 = vpop.eup %1747  ;;  %v1403_v21 = vmul.f32 %v1339_v3, %v2106_v22  ;;  %v1087_v23 = vadd.f32 %v1023_v6, %v2191_v9  ;;  %v2236_v43 = vadd.f32 %v765_v61, %v633_v7  ;;  %v654_v24 = vadd.f32 %v1688_v0, %v2005_v34 }
 0x10d   : > { %v1750_v47 = vpop.eup %1749  ;;  %1435 = vst.msk [vmem:[%s2133_s5 + $0x38] sm:$0xff] %vm334_vm1, %v1371_v13  ;;  %v1241_v17 = vadd.f32 1.0, %v1748_v20  ;;  %v1119_v26 = vmul.f32 0.7978846, %v1055_v14  ;;  %v861_v28 = vmul.f32 %v2230_v15, %v2230_v15  ;;  %v2243_v29 = vadd.f32 %v738_v12, %v526_v18 }
 0x10e   : > { %1467 = vst.msk [vmem:[%s2133_s5 + $0x138] sm:$0xff] %vm334_vm1, %v1403_v21  ;;  %v1273_v22 = vadd.f32 1.0, %v1750_v47  ;;  %v1151_v30 = vmul.f32 0.7978846, %v1087_v23  ;;  %v893_v32 = vmul.f32 %v2236_v43, %v2236_v43  ;;  %v2249_v33 = vadd.f32 %v770_v19, %v654_v24  ;;  %v771_v47 = vld [vmem:[%s2000_s26 + $0x178] sm:$0xff] }
 0x10f   : > { %v1305_v35 = vmul.f32 0.5, %v1241_v17  ;;  %1759 = vtanh.f32 %v1119_v26  ;;  %v925_v37 = vmul.f32 %v861_v28, %v2230_v15  ;;  %v866_v57 = vmul.f32 %v2243_v29, %v2243_v29 }
 0x110   : > { %v1337_v38 = vmul.f32 0.5, %v1273_v22  ;;  %1761 = vtanh.f32 %v1151_v30  ;;  %v957_v39 = vmul.f32 %v893_v32, %v2236_v43  ;;  %v898_v63 = vmul.f32 %v2249_v33, %v2249_v33  ;;  %v648_v22 = vpop.f32.mrf.mxu1 }
 0x111   : > { %v1369_v58 = vmul.f32 %v1305_v35, %v2112_v27  ;;  %v989_v42 = vmul.f32 0.044715, %v925_v37  ;;  %v930_v5 = vmul.f32 %v866_v57, %v2243_v29  ;;  %v518_v44 = vadd.f32 %v2005_v34, %v517_v25  ;;  %v739_v25 = vld [vmem:[%s2000_s26 + $0x78] sm:$0xff] }
 0x112   : > { %v1401_v45 = vmul.f32 %v1337_v38, %v2117_v31  ;;  %v1021_v4 = vmul.f32 0.044715, %v957_v39  ;;  %v962_v46 = vmul.f32 %v898_v63, %v2249_v33  ;;  %v646_v48 = vadd.f32 %v2005_v34, %v645_v52  ;;  %v520_v52 = vpop.f32.mrf.mxu0  ;;  %v737_v39 = vld [vmem:[%s2000_s26 + $0x68] sm:$0xff] }
 0x113   : > { %1433 = vst.msk [vmem:[%s2133_s5 + $0x28] sm:$0xff] %vm334_vm1, %v1369_v58  ;;  %v1053_v11 = vadd.f32 %v989_v42, %v2230_v15  ;;  %v994_v27 = vmul.f32 0.044715, %v930_v5  ;;  %v2268_v49 = vadd.f32 %v736_v40, %v518_v44  ;;  %v529_v51 = vadd.f32 %v1657_v36, %v2005_v34  ;;  %v769_v63 = vld [vmem:[%s2000_s26 + $0x168] sm:$0xff] }
 0x114   : > { %v1752_v10 = vpop.eup %1751  ;;  %1465 = vst.msk [vmem:[%s2133_s5 + $0x128] sm:$0xff] %vm334_vm1, %v1401_v45  ;;  %v1085_v53 = vadd.f32 %v1021_v4, %v2236_v43  ;;  %v1026_v31 = vmul.f32 0.044715, %v962_v46  ;;  %v2274_v54 = vadd.f32 %v768_v62, %v646_v48  ;;  %v657_v55 = vadd.f32 %v1689_v41, %v2005_v34  ;;  %v1660_v45 = vpop.f32.mrf.mxu0 }
 0x115   : > { %v1754_v16 = vpop.eup %1753  ;;  %v1246_v59 = vadd.f32 1.0, %v1752_v10  ;;  %v1117_v60 = vmul.f32 0.7978846, %v1053_v11  ;;  %v1058_v61 = vadd.f32 %v994_v27, %v2243_v29  ;;  %v864_v0 = vmul.f32 %v2268_v49, %v2268_v49  ;;  %v1692_v4 = vpop.f32.mrf.mxu1 }
 0x116   : > { %v1756_v3 = vpop.eup %1755  ;;  %v1278_v6 = vadd.f32 1.0, %v1754_v16  ;;  %v1149_v7 = vmul.f32 0.7978846, %v1085_v53  ;;  %v1090_v12 = vadd.f32 %v1026_v31, %v2249_v33  ;;  %v896_v13 = vmul.f32 %v2274_v54, %v2274_v54 }
 0x117   : > { %v1758_v14 = vpop.eup %1757  ;;  %v1310_v18 = vmul.f32 0.5, %v1246_v59  ;;  %v1244_v19 = vadd.f32 1.0, %v1756_v3  ;;  %1763 = vtanh.f32 %v1117_v60  ;;  %v1122_v20 = vmul.f32 0.7978846, %v1058_v61  ;;  %v533_v3 = vpop.f32.mrf.mxu0 }
 0x118   : > { %v1342_v21 = vmul.f32 0.5, %v1278_v6  ;;  %v1276_v23 = vadd.f32 1.0, %v1758_v14  ;;  %1765 = vtanh.f32 %v1149_v7  ;;  %v1154_v24 = vmul.f32 0.7978846, %v1090_v12  ;;  %v661_v6 = vpop.f32.mrf.mxu1  ;;  %v742_v14 = vld [vmem:[%s2000_s26 + $0x90] sm:$0xff] }
 0x119   : > { %v1374_v17 = vmul.f32 %v1310_v18, %v2168_v50  ;;  %v1308_v26 = vmul.f32 0.5, %v1244_v19  ;;  %1767 = vtanh.f32 %v1122_v20  ;;  %v928_v28 = vmul.f32 %v864_v0, %v2268_v49 }
 0x11a   : > { %v1406_v30 = vmul.f32 %v1342_v21, %v2177_v56  ;;  %v1340_v32 = vmul.f32 0.5, %v1276_v23  ;;  %1769 = vtanh.f32 %v1154_v24  ;;  %v960_v35 = vmul.f32 %v896_v13, %v2274_v54  ;;  %v774_v21 = vld [vmem:[%s2000_s26 + $0x190] sm:$0xff] }
 0x11b   : > { %1438 = vst.msk [vmem:[%s2133_s5 + $0x50] sm:$0xff] %vm334_vm1, %v1374_v17  ;;  %v1372_v37 = vmul.f32 %v1308_v26, %v2183_v1  ;;  %v992_v50 = vmul.f32 0.044715, %v928_v28  ;;  %v2292_v57 = vadd.f32 %v739_v25, %v529_v51  ;;  %v2294_v38 = vadd.f32 %v771_v47, %v657_v55 }
 0x11c   : > { %v1760_v40 = vpop.eup %1759  ;;  %1470 = vst.msk [vmem:[%s2133_s5 + $0x150] sm:$0xff] %vm334_vm1, %v1406_v30  ;;  %v1404_v56 = vmul.f32 %v1340_v32, %v2185_v2  ;;  %v1024_v36 = vmul.f32 0.044715, %v960_v35  ;;  %v521_v58 = vadd.f32 %v2005_v34, %v520_v52  ;;  %v649_v42 = vadd.f32 %v2005_v34, %v648_v22 }
 0x11d   : > { %v1762_v5 = vpop.eup %1761  ;;  %1436 = vst.msk [vmem:[%s2133_s5 + $0x40] sm:$0xff] %vm334_vm1, %v1372_v37  ;;  %v1247_v1 = vadd.f32 1.0, %v1760_v40  ;;  %v1056_v44 = vadd.f32 %v992_v50, %v2268_v49  ;;  %v867_v62 = vmul.f32 %v2292_v57, %v2292_v57  ;;  %v899_v41 = vmul.f32 %v2294_v38, %v2294_v38 }
 0x11e   : > { %1468 = vst.msk [vmem:[%s2133_s5 + $0x140] sm:$0xff] %vm334_vm1, %v1404_v56  ;;  %v1279_v2 = vadd.f32 1.0, %v1762_v5  ;;  %v1088_v46 = vadd.f32 %v1024_v36, %v2274_v54  ;;  %v2313_v48 = vadd.f32 %v737_v39, %v521_v58  ;;  %v2315_v11 = vadd.f32 %v769_v63, %v649_v42  ;;  %v1661_v39 = vpop.f32.mrf.mxu0  ;;  %v1693_v58 = vpop.f32.mrf.mxu1 }
 0x11f   : > { %v1311_v27 = vmul.f32 0.5, %v1247_v1  ;;  %v1120_v51 = vmul.f32 0.7978846, %v1056_v44  ;;  %v931_v10 = vmul.f32 %v867_v62, %v2292_v57  ;;  %v963_v53 = vmul.f32 %v899_v41, %v2294_v38  ;;  %v740_v44 = vld [vmem:[%s2000_s26 + $0x80] sm:$0xff] }
 0x120   : > { %v1343_v31 = vmul.f32 0.5, %v1279_v2  ;;  %v1152_v55 = vmul.f32 0.7978846, %v1088_v46  ;;  %v865_v16 = vmul.f32 %v2313_v48, %v2313_v48  ;;  %v897_v59 = vmul.f32 %v2315_v11, %v2315_v11  ;;  %v772_v2 = vld [vmem:[%s2000_s26 + $0x180] sm:$0xff] }
 0x121   : > { %v1375_v60 = vmul.f32 %v1311_v27, %v2189_v8  ;;  %1771 = vtanh.f32 %v1120_v51  ;;  %v995_v61 = vmul.f32 0.044715, %v931_v10  ;;  %v1027_v0 = vmul.f32 0.044715, %v963_v53  ;;  %v536_v10 = vpop.f32.mrf.mxu0 }
 0x122   : > { %v1407_v7 = vmul.f32 %v1343_v31, %v2191_v9  ;;  %1773 = vtanh.f32 %v1152_v55  ;;  %v929_v12 = vmul.f32 %v865_v16, %v2313_v48  ;;  %v961_v13 = vmul.f32 %v897_v59, %v2315_v11  ;;  %v743_v55 = vld [vmem:[%s2000_s26 + $0x98] sm:$0xff]  ;;  %v664_v16 = vpop.f32.mrf.mxu1 }
 0x123   : > { %1439 = vst.msk [vmem:[%s2133_s5 + $0x58] sm:$0xff] %vm334_vm1, %v1375_v60  ;;  %v1059_v18 = vadd.f32 %v995_v61, %v2292_v57  ;;  %v1091_v8 = vadd.f32 %v1027_v0, %v2294_v38  ;;  %v542_v19 = vadd.f32 %v1660_v45, %v2005_v34  ;;  %v670_v20 = vadd.f32 %v1692_v4, %v2005_v34  ;;  %v775_v0 = vld [vmem:[%s2000_s26 + $0x198] sm:$0xff] }
 0x124   : > { %v1764_v23 = vpop.eup %1763  ;;  %1471 = vst.msk [vmem:[%s2133_s5 + $0x158] sm:$0xff] %vm334_vm1, %v1407_v7  ;;  %v993_v9 = vmul.f32 0.044715, %v929_v12  ;;  %v1025_v24 = vmul.f32 0.044715, %v961_v13  ;;  %v534_v25 = vadd.f32 %v2005_v34, %v533_v3  ;;  %v662_v47 = vadd.f32 %v2005_v34, %v661_v6 }
 0x125   : > { %v1766_v17 = vpop.eup %1765  ;;  %v1245_v26 = vadd.f32 1.0, %v1764_v23  ;;  %v1123_v28 = vmul.f32 0.7978846, %v1059_v18  ;;  %v1155_v52 = vmul.f32 0.7978846, %v1091_v8  ;;  %v2339_v22 = vadd.f32 %v742_v14, %v542_v19 }
 0x126   : > { %v1768_v30 = vpop.eup %1767  ;;  %v1277_v32 = vadd.f32 1.0, %v1766_v17  ;;  %v1057_v35 = vadd.f32 %v993_v9, %v2313_v48  ;;  %v1089_v37 = vadd.f32 %v1025_v24, %v2315_v11  ;;  %v2343_v50 = vadd.f32 %v774_v21, %v670_v20  ;;  %v741_v17 = vld [vmem:[%s2000_s26 + $0x88] sm:$0xff] }
 0x127   : > { %v1770_v63 = vpop.eup %1769  ;;  %v1309_v40 = vmul.f32 0.5, %v1245_v26  ;;  %v1250_v56 = vadd.f32 1.0, %v1768_v30  ;;  %1775 = vtanh.f32 %v1123_v28  ;;  %v870_v36 = vmul.f32 %v2339_v22, %v2339_v22 }
 0x128   : > { %v1341_v42 = vmul.f32 0.5, %v1277_v32  ;;  %v1282_v5 = vadd.f32 1.0, %v1770_v63  ;;  %1777 = vtanh.f32 %v1155_v52  ;;  %v1121_v1 = vmul.f32 0.7978846, %v1057_v35 }
 0x129   : > { %v1373_v62 = vmul.f32 %v1309_v40, %v2230_v15  ;;  %v1314_v41 = vmul.f32 0.5, %v1250_v56  ;;  %v1153_v45 = vmul.f32 0.7978846, %v1089_v37  ;;  %v934_v4 = vmul.f32 %v870_v36, %v2339_v22  ;;  %v773_v56 = vld [vmem:[%s2000_s26 + $0x188] sm:$0xff]  ;;  %v1664_v36 = vpop.f32.mrf.mxu0 }
 0x12a   : > { %v1405_v46 = vmul.f32 %v1341_v42, %v2236_v43  ;;  %v1346_v27 = vmul.f32 0.5, %v1282_v5  ;;  %1779 = vtanh.f32 %v1121_v1  ;;  %v902_v51 = vmul.f32 %v2343_v50, %v2343_v50 }
 0x12b   : > { %1437 = vst.msk [vmem:[%s2133_s5 + $0x48] sm:$0xff] %vm334_vm1, %v1373_v62  ;;  %v1378_v15 = vmul.f32 %v1314_v41, %v2243_v29  ;;  %1781 = vtanh.f32 %v1153_v45  ;;  %v998_v53 = vmul.f32 0.044715, %v934_v4  ;;  %v2357_v31 = vadd.f32 %v740_v44, %v534_v25 }
 0x12c   : > { %1469 = vst.msk [vmem:[%s2133_s5 + $0x148] sm:$0xff] %vm334_vm1, %v1405_v46  ;;  %v1410_v43 = vmul.f32 %v1346_v27, %v2249_v33  ;;  %v966_v59 = vmul.f32 %v902_v51, %v2343_v50  ;;  %v2364_v60 = vadd.f32 %v772_v2, %v662_v47  ;;  %v545_v61 = vadd.f32 %v1661_v39, %v2005_v34  ;;  %v1696_v27 = vpop.f32.mrf.mxu1 }
 0x12d   : > { %1442 = vst.msk [vmem:[%s2133_s5 + $0x70] sm:$0xff] %vm334_vm1, %v1378_v15  ;;  %v1062_v29 = vadd.f32 %v998_v53, %v2339_v22  ;;  %v868_v3 = vmul.f32 %v2357_v31, %v2357_v31  ;;  %v673_v6 = vadd.f32 %v1693_v58, %v2005_v34  ;;  %v537_v7 = vadd.f32 %v2005_v34, %v536_v10 }
 0x12e   : > { %v1772_v33 = vpop.eup %1771  ;;  %1474 = vst.msk [vmem:[%s2133_s5 + $0x170] sm:$0xff] %vm334_vm1, %v1410_v43  ;;  %v1030_v12 = vmul.f32 0.044715, %v966_v59  ;;  %v900_v13 = vmul.f32 %v2364_v60, %v2364_v60  ;;  %v2379_v14 = vadd.f32 %v743_v55, %v545_v61  ;;  %v665_v18 = vadd.f32 %v2005_v34, %v664_v16  ;;  %v549_v55 = vpop.f32.mrf.mxu0 }
 0x12f   : > { %v1774_v8 = vpop.eup %1773  ;;  %v1248_v19 = vadd.f32 1.0, %v1772_v33  ;;  %v1126_v20 = vmul.f32 0.7978846, %v1062_v29  ;;  %v932_v21 = vmul.f32 %v868_v3, %v2357_v31  ;;  %v2383_v23 = vadd.f32 %v775_v0, %v673_v6 }
 0x130   : > { %v1280_v9 = vadd.f32 1.0, %v1774_v8  ;;  %v1094_v24 = vadd.f32 %v1030_v12, %v2343_v50  ;;  %v964_v25 = vmul.f32 %v900_v13, %v2364_v60  ;;  %v871_v47 = vmul.f32 %v2379_v14, %v2379_v14  ;;  %v746_v13 = vld [vmem:[%s2000_s26 + $0xb0] sm:$0xff] }
 0x131   : > { %v1312_v26 = vmul.f32 0.5, %v1248_v19  ;;  %1783 = vtanh.f32 %v1126_v20  ;;  %v996_v34 = vmul.f32 0.044715, %v932_v21  ;;  %v903_v28 = vmul.f32 %v2383_v23, %v2383_v23  ;;  %v2423_v19 = vld [vmem:[%s2727_s2] ss:$0 sm:$0xff]  ;;  %v778_v20 = vld [vmem:[%s2000_s26 + $0x1b0] sm:$0xff] }
 0x132   : > { %v1344_v52 = vmul.f32 0.5, %v1280_v9  ;;  %v1158_v30 = vmul.f32 0.7978846, %v1094_v24  ;;  %v1028_v32 = vmul.f32 0.044715, %v964_v25  ;;  %v935_v35 = vmul.f32 %v871_v47, %v2379_v14  ;;  %v744_v21 = vld [vmem:[%s2000_s26 + $0xa0] sm:$0xff]  ;;  %v1665_v9 = vpop.f32.mrf.mxu0 }
 0x133   : > { %v1376_v37 = vmul.f32 %v1312_v26, %v2268_v49  ;;  %v1060_v39 = vadd.f32 %v996_v34, %v2357_v31  ;;  %v967_v63 = vmul.f32 %v903_v28, %v2383_v23  ;;  %v2396_v40 = vadd.f32 %v741_v17, %v537_v7  ;;  %v776_v26 = vld [vmem:[%s2000_s26 + $0x1a0] sm:$0xff] }
 0x134   : > { %v1776_v58 = vpop.eup %1775  ;;  %v1408_v42 = vmul.f32 %v1344_v52, %v2274_v54  ;;  %1785 = vtanh.f32 %v1158_v30  ;;  %v1092_v5 = vadd.f32 %v1028_v32, %v2364_v60  ;;  %v999_v1 = vmul.f32 0.044715, %v935_v35  ;;  %v747_v32 = vld [vmem:[%s2000_s26 + $0xb8] sm:$0xff] }
 0x135   : > { %v1778_v44 = vpop.eup %1777  ;;  %1440 = vst.msk [vmem:[%s2133_s5 + $0x60] sm:$0xff] %vm334_vm1, %v1376_v37  ;;  %v1251_v49 = vadd.f32 1.0, %v1776_v58  ;;  %v1124_v62 = vmul.f32 0.7978846, %v1060_v39  ;;  %v1031_v41 = vmul.f32 0.044715, %v967_v63  ;;  %v869_v45 = vmul.f32 %v2396_v40, %v2396_v40 }
 0x136   : > { %1472 = vst.msk [vmem:[%s2133_s5 + $0x160] sm:$0xff] %vm334_vm1, %v1408_v42  ;;  %v1283_v4 = vadd.f32 1.0, %v1778_v44  ;;  %v1156_v2 = vmul.f32 0.7978846, %v1092_v5  ;;  %v1063_v46 = vadd.f32 %v999_v1, %v2379_v14  ;;  %v2408_v54 = vadd.f32 %v773_v56, %v665_v18  ;;  %v677_v18 = vpop.f32.mrf.mxu1 }
 0x137   : > { %v1780_v51 = vpop.eup %1779  ;;  %v1315_v10 = vmul.f32 0.5, %v1251_v49  ;;  %1787 = vtanh.f32 %v1124_v62  ;;  %v1095_v15 = vadd.f32 %v1031_v41, %v2383_v23  ;;  %v933_v53 = vmul.f32 %v869_v45, %v2396_v40 }
 0x138   : > { %v1782_v16 = vpop.eup %1781  ;;  %v1347_v43 = vmul.f32 0.5, %v1283_v4  ;;  %v1249_v59 = vadd.f32 1.0, %v1780_v51  ;;  %1789 = vtanh.f32 %v1156_v2  ;;  %v1127_v61 = vmul.f32 0.7978846, %v1063_v46  ;;  %v1697_v56 = vpop.f32.mrf.mxu1 }
 0x139   : > { %v1379_v0 = vmul.f32 %v1315_v10, %v2292_v57  ;;  %v1281_v29 = vadd.f32 1.0, %v1782_v16  ;;  %v1159_v3 = vmul.f32 0.7978846, %v1095_v15  ;;  %v997_v6 = vmul.f32 0.044715, %v933_v53 }
 0x13a   : > { %v1411_v7 = vmul.f32 %v1347_v43, %v2294_v38  ;;  %v1313_v33 = vmul.f32 0.5, %v1249_v59  ;;  %1791 = vtanh.f32 %v1127_v61  ;;  %v901_v12 = vmul.f32 %v2408_v54, %v2408_v54 }
 0x13b   : > { %1443 = vst.msk [vmem:[%s2133_s5 + $0x78] sm:$0xff] %vm334_vm1, %v1379_v0  ;;  %v1345_v8 = vmul.f32 0.5, %v1281_v29  ;;  %1793 = vtanh.f32 %v1159_v3  ;;  %v1061_v57 = vadd.f32 %v997_v6, %v2396_v40  ;;  %v558_v38 = vadd.f32 %v2423_v19, %v1664_v36  ;;  %v552_v0 = vpop.f32.mrf.mxu0 }
 0x13c   : > { %1475 = vst.msk [vmem:[%s2133_s5 + $0x178] sm:$0xff] %vm334_vm1, %v1411_v7  ;;  %v1377_v24 = vmul.f32 %v1313_v33, %v2313_v48  ;;  %v965_v25 = vmul.f32 %v901_v12, %v2408_v54  ;;  %v686_v47 = vadd.f32 %v2423_v19, %v1696_v27  ;;  %v550_v17 = vadd.f32 %v2423_v19, %v549_v55  ;;  %v680_v33 = vpop.f32.mrf.mxu1 }
 0x13d   : > { %v1409_v34 = vmul.f32 %v1345_v8, %v2315_v11  ;;  %v1125_v28 = vmul.f32 0.7978846, %v1061_v57  ;;  %v2436_v52 = vadd.f32 %v746_v13, %v558_v38  ;;  %v678_v30 = vadd.f32 %v2423_v19, %v677_v18 }
 0x13e   : > { %v1784_v35 = vpop.eup %1783  ;;  %1441 = vst.msk [vmem:[%s2133_s5 + $0x68] sm:$0xff] %vm334_vm1, %v1377_v24  ;;  %v1029_v48 = vmul.f32 0.044715, %v965_v25  ;;  %v2442_v37 = vadd.f32 %v778_v20, %v686_v47  ;;  %v2444_v39 = vadd.f32 %v744_v21, %v550_v17  ;;  %v561_v63 = vadd.f32 %v2423_v19, %v1665_v9  ;;  %v779_v24 = vld [vmem:[%s2000_s26 + $0x1b8] sm:$0xff] }
 0x13f   : > { %1473 = vst.msk [vmem:[%s2133_s5 + $0x168] sm:$0xff] %vm334_vm1, %v1409_v34  ;;  %v1254_v11 = vadd.f32 1.0, %v1784_v35  ;;  %1795 = vtanh.f32 %v1125_v28  ;;  %v874_v36 = vmul.f32 %v2436_v52, %v2436_v52  ;;  %v2451_v58 = vadd.f32 %v776_v26, %v678_v30  ;;  %v1668_v34 = vpop.f32.mrf.mxu0  ;;  %v1700_v35 = vpop.f32.mrf.mxu1 }
 0x140   : > { %v1093_v42 = vadd.f32 %v1029_v48, %v2408_v54  ;;  %v906_v5 = vmul.f32 %v2442_v37, %v2442_v37  ;;  %v872_v1 = vmul.f32 %v2444_v39, %v2444_v39  ;;  %v2458_v44 = vadd.f32 %v747_v32, %v561_v63 }
 0x141   : > { %v1786_v49 = vpop.eup %1785  ;;  %v1318_v62 = vmul.f32 0.5, %v1254_v11  ;;  %v938_v41 = vmul.f32 %v874_v36, %v2436_v52  ;;  %v904_v45 = vmul.f32 %v2451_v58, %v2451_v58  ;;  %v689_v4 = vadd.f32 %v2423_v19, %v1697_v56  ;;  %v745_v11 = vld [vmem:[%s2000_s26 + $0xa8] sm:$0xff] }
 0x142   : > { %v1286_v2 = vadd.f32 1.0, %v1786_v49  ;;  %v1157_v46 = vmul.f32 0.7978846, %v1093_v42  ;;  %v970_v27 = vmul.f32 %v906_v5, %v2442_v37  ;;  %v936_v51 = vmul.f32 %v872_v1, %v2444_v39  ;;  %v777_v5 = vld [vmem:[%s2000_s26 + $0x1a8] sm:$0xff] }
 0x143   : > { %v1382_v10 = vmul.f32 %v1318_v62, %v2339_v22  ;;  %v1002_v15 = vmul.f32 0.044715, %v938_v41  ;;  %v968_v53 = vmul.f32 %v904_v45, %v2451_v58  ;;  %v875_v55 = vmul.f32 %v2458_v44, %v2458_v44  ;;  %v565_v41 = vpop.f32.mrf.mxu0 }
 0x144   : > { %v1788_v16 = vpop.eup %1787  ;;  %v1350_v43 = vmul.f32 0.5, %v1286_v2  ;;  %1797 = vtanh.f32 %v1157_v46  ;;  %v1034_v59 = vmul.f32 0.044715, %v970_v27  ;;  %v1000_v61 = vmul.f32 0.044715, %v936_v51  ;;  %v750_v27 = vld [vmem:[%s2000_s26 + $0xd0] sm:$0xff] }
 0x145   : > { %v1790_v29 = vpop.eup %1789  ;;  %1446 = vst.msk [vmem:[%s2133_s5 + $0x90] sm:$0xff] %vm334_vm1, %v1382_v10  ;;  %v1252_v3 = vadd.f32 1.0, %v1788_v16  ;;  %v1066_v22 = vadd.f32 %v1002_v15, %v2436_v52  ;;  %v1032_v6 = vmul.f32 0.044715, %v968_v53  ;;  %v939_v7 = vmul.f32 %v875_v55, %v2458_v44  ;;  %v782_v51 = vld [vmem:[%s2000_s26 + $0x1d0] sm:$0xff]  ;;  %v693_v10 = vpop.f32.mrf.mxu1 }
 0x146   : > { %v1414_v12 = vmul.f32 %v1350_v43, %v2343_v50  ;;  %v1284_v13 = vadd.f32 1.0, %v1790_v29  ;;  %v1098_v18 = vadd.f32 %v1034_v59, %v2442_v37  ;;  %v1064_v8 = vadd.f32 %v1000_v61, %v2444_v39 }
 0x147   : > { %v1792_v57 = vpop.eup %1791  ;;  %v1316_v38 = vmul.f32 0.5, %v1252_v3  ;;  %v1130_v20 = vmul.f32 0.7978846, %v1066_v22  ;;  %v1096_v21 = vadd.f32 %v1032_v6, %v2451_v58  ;;  %v1003_v9 = vmul.f32 0.044715, %v939_v7  ;;  %v780_v22 = vld [vmem:[%s2000_s26 + $0x1c0] sm:$0xff] }
 0x148   : > { %v1794_v25 = vpop.eup %1793  ;;  %1478 = vst.msk [vmem:[%s2133_s5 + $0x190] sm:$0xff] %vm334_vm1, %v1414_v12  ;;  %v1348_v47 = vmul.f32 0.5, %v1284_v13  ;;  %v1255_v17 = vadd.f32 1.0, %v1792_v57  ;;  %v1162_v50 = vmul.f32 0.7978846, %v1098_v18  ;;  %v2487_v42 = vadd.f32 %v779_v24, %v689_v4  ;;  %v1669_v24 = vpop.f32.mrf.mxu0 }
 0x149   : > { %v1128_v26 = vmul.f32 0.7978846, %v1064_v8  ;;  %v1380_v28 = vmul.f32 %v1316_v38, %v2357_v31  ;;  %v1287_v30 = vadd.f32 1.0, %v1794_v25  ;;  %1799 = vtanh.f32 %v1130_v20 }
 0x14a   : > { %v1160_v32 = vmul.f32 0.7978846, %v1096_v21  ;;  %v1412_v48 = vmul.f32 %v1348_v47, %v2364_v60  ;;  %v1319_v63 = vmul.f32 0.5, %v1255_v17  ;;  %1801 = vtanh.f32 %v1162_v50 }
 0x14b   : > { %v1067_v56 = vadd.f32 %v1003_v9, %v2458_v44  ;;  %1444 = vst.msk [vmem:[%s2133_s5 + $0x80] sm:$0xff] %vm334_vm1, %v1380_v28  ;;  %v1351_v36 = vmul.f32 0.5, %v1287_v30  ;;  %1803 = vtanh.f32 %v1128_v26  ;;  %v553_v31 = vadd.f32 %v2423_v19, %v552_v0 }
 0x14c   : > { %v1796_v1 = vpop.eup %1795  ;;  %1476 = vst.msk [vmem:[%s2133_s5 + $0x180] sm:$0xff] %vm334_vm1, %v1412_v48  ;;  %v1383_v60 = vmul.f32 %v1319_v63, %v2379_v14  ;;  %1805 = vtanh.f32 %v1160_v32  ;;  %v681_v62 = vadd.f32 %v2423_v19, %v680_v33  ;;  %v907_v2 = vmul.f32 %v2487_v42, %v2487_v42  ;;  %v1701_v32 = vpop.f32.mrf.mxu1 }
 0x14d   : > { %v1131_v49 = vmul.f32 0.7978846, %v1067_v56  ;;  %v1415_v45 = vmul.f32 %v1351_v36, %v2383_v23  ;;  %v1253_v4 = vadd.f32 1.0, %v1796_v1  ;;  %v2498_v46 = vadd.f32 %v745_v11, %v553_v31  ;;  %v748_v23 = vld [vmem:[%s2000_s26 + $0xc0] sm:$0xff] }
 0x14e   : > { %1447 = vst.msk [vmem:[%s2133_s5 + $0x98] sm:$0xff] %vm334_vm1, %v1383_v60  ;;  %v2504_v14 = vadd.f32 %v777_v5, %v681_v62  ;;  %v574_v15 = vadd.f32 %v2423_v19, %v1668_v34  ;;  %v702_v53 = vadd.f32 %v2423_v19, %v1700_v35  ;;  %v971_v16 = vmul.f32 %v907_v2, %v2487_v42  ;;  %v568_v60 = vpop.f32.mrf.mxu0 }
 0x14f   : > { %1807 = vtanh.f32 %v1131_v49  ;;  %1479 = vst.msk [vmem:[%s2133_s5 + $0x198] sm:$0xff] %vm334_vm1, %v1415_v45  ;;  %v1317_v55 = vmul.f32 0.5, %v1253_v4  ;;  %v873_v43 = vmul.f32 %v2498_v46, %v2498_v46  ;;  %v566_v59 = vadd.f32 %v2423_v19, %v565_v41 }
 0x150   : > { %v905_v61 = vmul.f32 %v2504_v14, %v2504_v14  ;;  %v2517_v0 = vadd.f32 %v750_v27, %v574_v15  ;;  %v2519_v29 = vadd.f32 %v782_v51, %v702_v53  ;;  %v694_v3 = vadd.f32 %v2423_v19, %v693_v10  ;;  %v696_v10 = vpop.f32.mrf.mxu1 }
 0x151   : > { %v1798_v6 = vpop.eup %1797  ;;  %v1381_v7 = vmul.f32 %v1317_v55, %v2396_v40  ;;  %v1035_v33 = vmul.f32 0.044715, %v971_v16  ;;  %v937_v12 = vmul.f32 %v873_v43, %v2498_v46  ;;  %v2525_v13 = vadd.f32 %v748_v23, %v566_v59 }
 0x152   : > { %v1285_v18 = vadd.f32 1.0, %v1798_v6  ;;  %v969_v8 = vmul.f32 %v905_v61, %v2504_v14  ;;  %v878_v57 = vmul.f32 %v2517_v0, %v2517_v0  ;;  %v910_v38 = vmul.f32 %v2519_v29, %v2519_v29 }
 0x153   : > { %1445 = vst.msk [vmem:[%s2133_s5 + $0x88] sm:$0xff] %vm334_vm1, %v1381_v7  ;;  %v1099_v20 = vadd.f32 %v1035_v33, %v2487_v42  ;;  %v1001_v21 = vmul.f32 0.044715, %v937_v12  ;;  %v876_v40 = vmul.f32 %v2525_v13, %v2525_v13  ;;  %v2537_v9 = vadd.f32 %v780_v22, %v694_v3  ;;  %v1672_v3 = vpop.f32.mrf.mxu0  ;;  %v751_v33 = vld [vmem:[%s2000_s26 + $0xd8] sm:$0xff] }
 0x154   : > { %v1349_v25 = vmul.f32 0.5, %v1285_v18  ;;  %v1033_v47 = vmul.f32 0.044715, %v969_v8  ;;  %v942_v17 = vmul.f32 %v878_v57, %v2517_v0  ;;  %v974_v50 = vmul.f32 %v910_v38, %v2519_v29  ;;  %v783_v8 = vld [vmem:[%s2000_s26 + $0x1d8] sm:$0xff] }
 0x155   : > { %v1163_v26 = vmul.f32 0.7978846, %v1099_v20  ;;  %v1065_v34 = vadd.f32 %v1001_v21, %v2498_v46  ;;  %v940_v28 = vmul.f32 %v876_v40, %v2525_v13  ;;  %v908_v30 = vmul.f32 %v2537_v9, %v2537_v9  ;;  %v749_v21 = vld [vmem:[%s2000_s26 + $0xc8] sm:$0xff] }
 0x156   : > { %v1800_v35 = vpop.eup %1799  ;;  %v1413_v48 = vmul.f32 %v1349_v25, %v2408_v54  ;;  %v1097_v63 = vadd.f32 %v1033_v47, %v2504_v14  ;;  %v1006_v56 = vmul.f32 0.044715, %v942_v17  ;;  %v1038_v11 = vmul.f32 0.044715, %v974_v50  ;;  %v754_v17 = vld [vmem:[%s2000_s26 + $0xf0] sm:$0xff] }
 0x157   : > { %v1802_v36 = vpop.eup %1801  ;;  %v1258_v31 = vadd.f32 1.0, %v1800_v35  ;;  %1809 = vtanh.f32 %v1163_v26  ;;  %v1129_v5 = vmul.f32 0.7978846, %v1065_v34  ;;  %v1004_v1 = vmul.f32 0.044715, %v940_v28  ;;  %v786_v50 = vld [vmem:[%s2000_s26 + $0x1f0] sm:$0xff] }
 0x158   : > { %v1804_v49 = vpop.eup %1803  ;;  %1477 = vst.msk [vmem:[%s2133_s5 + $0x188] sm:$0xff] %vm334_vm1, %v1413_v48  ;;  %v1290_v62 = vadd.f32 1.0, %v1802_v36  ;;  %v1161_v41 = vmul.f32 0.7978846, %v1097_v63  ;;  %v1070_v45 = vadd.f32 %v1006_v56, %v2517_v0  ;;  %v1102_v4 = vadd.f32 %v1038_v11, %v2519_v29  ;;  %v752_v56 = vld [vmem:[%s2000_s26 + $0xe0] sm:$0xff] }
 0x159   : > { %v1806_v54 = vpop.eup %1805  ;;  %v1322_v2 = vmul.f32 0.5, %v1258_v31  ;;  %v1256_v27 = vadd.f32 1.0, %v1804_v49  ;;  %1811 = vtanh.f32 %v1129_v5  ;;  %v1068_v51 = vadd.f32 %v1004_v1, %v2525_v13 }
 0x15a   : > { %v1354_v15 = vmul.f32 0.5, %v1290_v62  ;;  %v1288_v53 = vadd.f32 1.0, %v1806_v54  ;;  %1813 = vtanh.f32 %v1161_v41  ;;  %v1134_v23 = vmul.f32 0.7978846, %v1070_v45 }
 0x15b   : > { %v1386_v16 = vmul.f32 %v1322_v2, %v2436_v52  ;;  %v1320_v43 = vmul.f32 0.5, %v1256_v27  ;;  %v1166_v59 = vmul.f32 0.7978846, %v1102_v4  ;;  %v1132_v61 = vmul.f32 0.7978846, %v1068_v51 }
 0x15c   : > { %v1808_v55 = vpop.eup %1807  ;;  %v1418_v22 = vmul.f32 %v1354_v15, %v2442_v37  ;;  %v1352_v6 = vmul.f32 0.5, %v1288_v53  ;;  %1815 = vtanh.f32 %v1134_v23  ;;  %v972_v52 = vmul.f32 %v908_v30, %v2537_v9  ;;  %v1704_v37 = vpop.f32.mrf.mxu1 }
 0x15d   : > { %v1259_v7 = vadd.f32 1.0, %v1808_v55  ;;  %1450 = vst.msk [vmem:[%s2133_s5 + $0xb0] sm:$0xff] %vm334_vm1, %v1386_v16  ;;  %v1384_v12 = vmul.f32 %v1320_v43, %v2444_v39  ;;  %1817 = vtanh.f32 %v1166_v59  ;;  %v577_v18 = vadd.f32 %v2423_v19, %v1669_v24  ;;  %v781_v39 = vld [vmem:[%s2000_s26 + $0x1c8] sm:$0xff] }
 0x15e   : > { %1482 = vst.msk [vmem:[%s2133_s5 + $0x1b0] sm:$0xff] %vm334_vm1, %v1418_v22  ;;  %v1416_v57 = vmul.f32 %v1352_v6, %v2451_v58  ;;  %1819 = vtanh.f32 %v1132_v61  ;;  %v705_v20 = vadd.f32 %v2423_v19, %v1701_v32  ;;  %v1036_v40 = vmul.f32 0.044715, %v972_v52  ;;  %v581_v58 = vpop.f32.mrf.mxu0  ;;  %v709_v22 = vpop.f32.mrf.mxu1 }
 0x15f   : > { %v1323_v38 = vmul.f32 0.5, %v1259_v7  ;;  %1448 = vst.msk [vmem:[%s2133_s5 + $0xa0] sm:$0xff] %vm334_vm1, %v1384_v12  ;;  %v2569_v25 = vadd.f32 %v751_v33, %v577_v18  ;;  %v569_v24 = vadd.f32 %v2423_v19, %v568_v60  ;;  %v697_v47 = vadd.f32 %v2423_v19, %v696_v10 }
 0x160   : > { %1480 = vst.msk [vmem:[%s2133_s5 + $0x1a0] sm:$0xff] %vm334_vm1, %v1416_v57  ;;  %v2578_v34 = vadd.f32 %v783_v8, %v705_v20  ;;  %v590_v28 = vadd.f32 %v2423_v19, %v1672_v3  ;;  %v718_v30 = vadd.f32 %v2423_v19, %v1704_v37  ;;  %v1100_v32 = vadd.f32 %v1036_v40, %v2537_v9 }
 0x161   : > { %v1387_v26 = vmul.f32 %v1323_v38, %v2458_v44  ;;  %v879_v35 = vmul.f32 %v2569_v25, %v2569_v25  ;;  %v2585_v48 = vadd.f32 %v749_v21, %v569_v24  ;;  %v2587_v63 = vadd.f32 %v781_v39, %v697_v47  ;;  %v1673_v24 = vpop.f32.mrf.mxu0 }
 0x162   : > { %v911_v44 = vmul.f32 %v2578_v34, %v2578_v34  ;;  %v2594_v11 = vadd.f32 %v754_v17, %v590_v28  ;;  %v2596_v36 = vadd.f32 %v786_v50, %v718_v30  ;;  %v582_v31 = vadd.f32 %v2423_v19, %v581_v58  ;;  %v1705_v58 = vpop.f32.mrf.mxu1 }
 0x163   : > { %1451 = vst.msk [vmem:[%s2133_s5 + $0xb8] sm:$0xff] %vm334_vm1, %v1387_v26  ;;  %v1164_v5 = vmul.f32 0.7978846, %v1100_v32  ;;  %v943_v1 = vmul.f32 %v879_v35, %v2569_v25  ;;  %v877_v60 = vmul.f32 %v2585_v48, %v2585_v48  ;;  %v909_v49 = vmul.f32 %v2587_v63, %v2587_v63 }
 0x164   : > { %v1810_v62 = vpop.eup %1809  ;;  %v975_v41 = vmul.f32 %v911_v44, %v2578_v34  ;;  %v882_v45 = vmul.f32 %v2594_v11, %v2594_v11  ;;  %v914_v4 = vmul.f32 %v2596_v36, %v2596_v36  ;;  %v2609_v54 = vadd.f32 %v752_v56, %v582_v31 }
 0x165   : > { %v1291_v2 = vadd.f32 1.0, %v1810_v62  ;;  %1821 = vtanh.f32 %v1164_v5  ;;  %v1007_v27 = vmul.f32 0.044715, %v943_v1  ;;  %v941_v51 = vmul.f32 %v877_v60, %v2585_v48  ;;  %v784_v5 = vld [vmem:[%s2000_s26 + $0x1e0] sm:$0xff]  ;;  %v584_v1 = vpop.f32.mrf.mxu0 }
 0x166   : > { %v1812_v10 = vpop.eup %1811  ;;  %v1039_v15 = vmul.f32 0.044715, %v975_v41  ;;  %v973_v53 = vmul.f32 %v909_v49, %v2587_v63  ;;  %v946_v23 = vmul.f32 %v882_v45, %v2594_v11  ;;  %v978_v55 = vmul.f32 %v914_v4, %v2596_v36  ;;  %v755_v41 = vld [vmem:[%s2000_s26 + $0xf8] sm:$0xff] }
 0x167   : > { %v1814_v16 = vpop.eup %1813  ;;  %v1355_v43 = vmul.f32 0.5, %v1291_v2  ;;  %v1257_v59 = vadd.f32 1.0, %v1812_v10  ;;  %v1071_v61 = vadd.f32 %v1007_v27, %v2569_v25  ;;  %v1005_v3 = vmul.f32 0.044715, %v941_v51  ;;  %v787_v51 = vld [vmem:[%s2000_s26 + $0x1f8] sm:$0xff] }
 0x168   : > { %v1289_v6 = vadd.f32 1.0, %v1814_v16  ;;  %v1103_v7 = vadd.f32 %v1039_v15, %v2578_v34  ;;  %v1037_v33 = vmul.f32 0.044715, %v973_v53  ;;  %v1010_v12 = vmul.f32 0.044715, %v946_v23  ;;  %v785_v23 = vld [vmem:[%s2000_s26 + $0x1e8] sm:$0xff] }
 0x169   : > { %v1816_v52 = vpop.eup %1815  ;;  %v1419_v18 = vmul.f32 %v1355_v43, %v2487_v42  ;;  %v1321_v8 = vmul.f32 0.5, %v1257_v59  ;;  %v1135_v37 = vmul.f32 0.7978846, %v1071_v61  ;;  %v1069_v57 = vadd.f32 %v1005_v3, %v2585_v48 }
 0x16a   : > { %v1818_v38 = vpop.eup %1817  ;;  %v1353_v20 = vmul.f32 0.5, %v1289_v6  ;;  %v1262_v21 = vadd.f32 1.0, %v1816_v52  ;;  %v1167_v39 = vmul.f32 0.7978846, %v1103_v7  ;;  %v1101_v40 = vadd.f32 %v1037_v33, %v2587_v63 }
 0x16b   : > { %v1820_v47 = vpop.eup %1819  ;;  %1483 = vst.msk [vmem:[%s2133_s5 + $0x1b8] sm:$0xff] %vm334_vm1, %v1419_v18  ;;  %v1385_v17 = vmul.f32 %v1321_v8, %v2498_v46  ;;  %v1294_v50 = vadd.f32 1.0, %v1818_v38  ;;  %1823 = vtanh.f32 %v1135_v37  ;;  %v1133_v42 = vmul.f32 0.7978846, %v1069_v57 }
 0x16c   : > { %v1417_v26 = vmul.f32 %v1353_v20, %v2504_v14  ;;  %v1326_v28 = vmul.f32 0.5, %v1262_v21  ;;  %v1260_v30 = vadd.f32 1.0, %v1820_v47  ;;  %1825 = vtanh.f32 %v1167_v39 }
 0x16d   : > { %1449 = vst.msk [vmem:[%s2133_s5 + $0xa8] sm:$0xff] %vm334_vm1, %v1385_v17  ;;  %v1358_v32 = vmul.f32 0.5, %v1294_v50  ;;  %1827 = vtanh.f32 %v1133_v42  ;;  %v1165_v35 = vmul.f32 0.7978846, %v1101_v40  ;;  %v1074_v56 = vadd.f32 %v1010_v12, %v2594_v11 }
 0x16e   : > { %1481 = vst.msk [vmem:[%s2133_s5 + $0x1a8] sm:$0xff] %vm334_vm1, %v1417_v26  ;;  %v1390_v46 = vmul.f32 %v1326_v28, %v2517_v0  ;;  %v1324_v44 = vmul.f32 0.5, %v1260_v30  ;;  %v1042_v31 = vmul.f32 0.044715, %v978_v55  ;;  %v880_v14 = vmul.f32 %v2609_v54, %v2609_v54  ;;  %v712_v0 = vpop.f32.mrf.mxu1 }
 0x16f   : > { %v1422_v60 = vmul.f32 %v1358_v32, %v2519_v29  ;;  %1829 = vtanh.f32 %v1165_v35  ;;  %v1138_v49 = vmul.f32 0.7978846, %v1074_v56  ;;  %v710_v62 = vadd.f32 %v2423_v19, %v709_v22  ;;  %v753_v29 = vld [vmem:[%s2000_s26 + $0xe8] sm:$0xff] }
 0x170   : > { %1454 = vst.msk [vmem:[%s2133_s5 + $0xd0] sm:$0xff] %vm334_vm1, %v1390_v46  ;;  %v1388_v45 = vmul.f32 %v1324_v44, %v2525_v13  ;;  %v1106_v4 = vadd.f32 %v1042_v31, %v2596_v36  ;;  %v944_v2 = vmul.f32 %v880_v14, %v2609_v54  ;;  %v593_v27 = vadd.f32 %v2423_v19, %v1673_v24 }
 0x171   : > { %1486 = vst.msk [vmem:[%s2133_s5 + $0x1d0] sm:$0xff] %vm334_vm1, %v1422_v60  ;;  %1831 = vtanh.f32 %v1138_v49  ;;  %v2646_v10 = vadd.f32 %v784_v5, %v710_v62  ;;  %v721_v15 = vadd.f32 %v2423_v19, %v1705_v58  ;;  %v585_v53 = vadd.f32 %v2423_v19, %v584_v1 }
 0x172   : > { %v1822_v55 = vpop.eup %1821  ;;  %1452 = vst.msk [vmem:[%s2133_s5 + $0xc0] sm:$0xff] %vm334_vm1, %v1388_v45  ;;  %v1170_v13 = vmul.f32 0.7978846, %v1106_v4  ;;  %v1008_v16 = vmul.f32 0.044715, %v944_v2  ;;  %v2653_v43 = vadd.f32 %v755_v41, %v593_v27  ;;  %v713_v59 = vadd.f32 %v2423_v19, %v712_v0 }
 0x173   : > { %v1292_v61 = vadd.f32 1.0, %v1822_v55  ;;  %v912_v3 = vmul.f32 %v2646_v10, %v2646_v10  ;;  %v2658_v22 = vadd.f32 %v787_v51, %v721_v15  ;;  %v2660_v6 = vadd.f32 %v753_v29, %v585_v53 }
 0x174   : > { %1833 = vtanh.f32 %v1170_v13  ;;  %v1072_v7 = vadd.f32 %v1008_v16, %v2609_v54  ;;  %v883_v33 = vmul.f32 %v2653_v43, %v2653_v43  ;;  %v2665_v12 = vadd.f32 %v785_v23, %v713_v59 }
 0x175   : > { %v1356_v52 = vmul.f32 0.5, %v1292_v61  ;;  %v976_v19 = vmul.f32 %v912_v3, %v2646_v10  ;;  %v915_v18 = vmul.f32 %v2658_v22, %v2658_v22  ;;  %v881_v8 = vmul.f32 %v2660_v6, %v2660_v6 }
 0x176   : > { %v1136_v37 = vmul.f32 0.7978846, %v1072_v7  ;;  %v947_v57 = vmul.f32 %v883_v33, %v2653_v43  ;;  %v913_v38 = vmul.f32 %v2665_v12, %v2665_v12 }
 0x177   : > { %v1420_v20 = vmul.f32 %v1356_v52, %v2537_v9  ;;  %v1040_v21 = vmul.f32 0.044715, %v976_v19  ;;  %v979_v39 = vmul.f32 %v915_v18, %v2658_v22  ;;  %v945_v40 = vmul.f32 %v881_v8, %v2660_v6 }
 0x178   : > { %v1824_v24 = vpop.eup %1823  ;;  %1835 = vtanh.f32 %v1136_v37  ;;  %v1011_v47 = vmul.f32 0.044715, %v947_v57  ;;  %v977_v17 = vmul.f32 %v913_v38, %v2665_v12 }
 0x179   : > { %v1826_v50 = vpop.eup %1825  ;;  %1484 = vst.msk [vmem:[%s2133_s5 + $0x1c0] sm:$0xff] %vm334_vm1, %v1420_v20  ;;  %v1263_v42 = vadd.f32 1.0, %v1824_v24  ;;  %v1104_v58 = vadd.f32 %v1040_v21, %v2646_v10  ;;  %v1043_v26 = vmul.f32 0.044715, %v979_v39  ;;  %v1009_v28 = vmul.f32 0.044715, %v945_v40 }
 0x17a   : > { %v1828_v30 = vpop.eup %1827  ;;  %v1295_v9 = vadd.f32 1.0, %v1826_v50  ;;  %v1075_v32 = vadd.f32 %v1011_v47, %v2653_v43  ;;  %v1041_v35 = vmul.f32 0.044715, %v977_v17 }
 0x17b   : > { %v1327_v56 = vmul.f32 0.5, %v1263_v42  ;;  %v1261_v46 = vadd.f32 1.0, %v1828_v30  ;;  %v1168_v44 = vmul.f32 0.7978846, %v1104_v58  ;;  %v1107_v31 = vadd.f32 %v1043_v26, %v2658_v22 }
 0x17c   : > { %v1830_v14 = vpop.eup %1829  ;;  %v1359_v5 = vmul.f32 0.5, %v1295_v9  ;;  %v1139_v1 = vmul.f32 0.7978846, %v1075_v32  ;;  %v1073_v60 = vadd.f32 %v1009_v28, %v2660_v6  ;;  %v1105_v49 = vadd.f32 %v1041_v35, %v2665_v12 }
 0x17d   : > { %v1391_v62 = vmul.f32 %v1327_v56, %v2569_v25  ;;  %v1325_v41 = vmul.f32 0.5, %v1261_v46  ;;  %v1293_v0 = vadd.f32 1.0, %v1830_v14  ;;  %1837 = vtanh.f32 %v1168_v44 }
 0x17e   : > { %v1832_v45 = vpop.eup %1831  ;;  %v1423_v4 = vmul.f32 %v1359_v5, %v2578_v34  ;;  %1839 = vtanh.f32 %v1139_v1  ;;  %v1171_v2 = vmul.f32 0.7978846, %v1107_v31  ;;  %v1137_v27 = vmul.f32 0.7978846, %v1073_v60 }
 0x17f   : > { %1455 = vst.msk [vmem:[%s2133_s5 + $0xd8] sm:$0xff] %vm334_vm1, %v1391_v62  ;;  %v1389_v51 = vmul.f32 %v1325_v41, %v2585_v48  ;;  %v1357_v29 = vmul.f32 0.5, %v1293_v0  ;;  %v1266_v15 = vadd.f32 1.0, %v1832_v45  ;;  %v1169_v53 = vmul.f32 0.7978846, %v1105_v49 }
 0x180   : > { %1487 = vst.msk [vmem:[%s2133_s5 + $0x1d8] sm:$0xff] %vm334_vm1, %v1423_v4  ;;  %1841 = vtanh.f32 %v1171_v2 }
 0x181   : > { %v1834_v25 = vpop.eup %1833  ;;  %1453 = vst.msk [vmem:[%s2133_s5 + $0xc8] sm:$0xff] %vm334_vm1, %v1389_v51  ;;  %v1421_v34 = vmul.f32 %v1357_v29, %v2587_v63  ;;  %v1330_v23 = vmul.f32 0.5, %v1266_v15  ;;  %1843 = vtanh.f32 %v1137_v27 }
 0x182   : > { %v1298_v55 = vadd.f32 1.0, %v1834_v25  ;;  %1845 = vtanh.f32 %v1169_v53 }
 0x183   : > { %1485 = vst.msk [vmem:[%s2133_s5 + $0x1c8] sm:$0xff] %vm334_vm1, %v1421_v34  ;;  %v1394_v48 = vmul.f32 %v1330_v23, %v2594_v11 }
 0x184   : > { %v1362_v13 = vmul.f32 0.5, %v1298_v55 }
 0x185   : > { %v1836_v16 = vpop.eup %1835  ;;  %1458 = vst.msk [vmem:[%s2133_s5 + $0xf0] sm:$0xff] %vm334_vm1, %v1394_v48 }
 0x186   : > { %v1426_v59 = vmul.f32 %v1362_v13, %v2596_v36  ;;  %v1264_v61 = vadd.f32 1.0, %v1836_v16 }
 0x188   : > { %1490 = vst.msk [vmem:[%s2133_s5 + $0x1f0] sm:$0xff] %vm334_vm1, %v1426_v59  ;;  %v1328_v3 = vmul.f32 0.5, %v1264_v61 }
 0x18a   : > { %v1838_v63 = vpop.eup %1837  ;;  %v1392_v7 = vmul.f32 %v1328_v3, %v2609_v54 }
 0x18b   : > { %v1840_v33 = vpop.eup %1839  ;;  %v1296_v52 = vadd.f32 1.0, %v1838_v63 }
 0x18c   : > { %1456 = vst.msk [vmem:[%s2133_s5 + $0xe0] sm:$0xff] %vm334_vm1, %v1392_v7  ;;  %v1267_v11 = vadd.f32 1.0, %v1840_v33 }
 0x18d   : > { %v1842_v19 = vpop.eup %1841  ;;  %v1360_v18 = vmul.f32 0.5, %v1296_v52 }
 0x18e   : > { %v1844_v8 = vpop.eup %1843  ;;  %v1331_v37 = vmul.f32 0.5, %v1267_v11  ;;  %v1299_v36 = vadd.f32 1.0, %v1842_v19 }
 0x18f   : > { %v1846_v57 = vpop.eup %1845  ;;  %v1424_v38 = vmul.f32 %v1360_v18, %v2646_v10  ;;  %v1265_v20 = vadd.f32 1.0, %v1844_v8 }
 0x190   : > { %v1395_v54 = vmul.f32 %v1331_v37, %v2653_v43  ;;  %v1363_v21 = vmul.f32 0.5, %v1299_v36  ;;  %v1297_v39 = vadd.f32 1.0, %v1846_v57 }
 0x191   : > { %1488 = vst.msk [vmem:[%s2133_s5 + $0x1e0] sm:$0xff] %vm334_vm1, %v1424_v38  ;;  %v1329_v40 = vmul.f32 0.5, %v1265_v20 }
 0x192   : > { %1459 = vst.msk [vmem:[%s2133_s5 + $0xf8] sm:$0xff] %vm334_vm1, %v1395_v54  ;;  %v1427_v24 = vmul.f32 %v1363_v21, %v2658_v22  ;;  %v1361_v47 = vmul.f32 0.5, %v1297_v39 }
 0x193   : > { %v1393_v17 = vmul.f32 %v1329_v40, %v2660_v6 }
 0x194   : > { %1491 = vst.msk [vmem:[%s2133_s5 + $0x1f8] sm:$0xff] %vm334_vm1, %v1427_v24  ;;  %v1425_v50 = vmul.f32 %v1361_v47, %v2665_v12 }
 0x195   : > { %1457 = vst.msk [vmem:[%s2133_s5 + $0xe8] sm:$0xff] %vm334_vm1, %v1393_v17 }
 0x196   : > { %1489 = vst.msk [vmem:[%s2133_s5 + $0x1e8] sm:$0xff] %vm334_vm1, %v1425_v50 }
 0x197 PF: > { %s14_s15 = sadd.s32 1, %s1854_s15  }
 0x198   : > { %p11_p4 = scmp.ge.s32.totalorder %s14_s15, 6  }
 0x19a   :  { %13 = sbr.rel (!%p11_p4) target bundleno = 1 (0x1), region = 69 }

// kernel: mamba_pod_time_fno_forward.11
= control target key start
LH: loop header
LB: loop body
LE: loop exit
PB: predicated region body
PF: predicated region fallthrough
CT: control target
= control target key end

     0   :  { %s2332_s20 = smov 0   ;;  %s3384_s0 = inlined_call_operand.vmem [shape: f32[2048,12], index: 0, kind: input, shape index: {}]   ;;  %s3385_s1 = inlined_call_operand.vmem [shape: bf16[12,32], index: 1, kind: input, shape index: {}]   ;;  %s3386_s2 = inlined_call_operand.vmem [shape: f32[1,32], index: 2, kind: input, shape index: {}]   ;;  %s3387_s3 = inlined_call_operand.vmem [shape: bf16[32,1], index: 3, kind: input, shape index: {}]   ;;  %s3388_s4 = inlined_call_operand.<no memory space> [shape: f32[1,1], index: 4, kind: input, shape index: {}]   ;;  %s3389_s5 = inlined_call_operand.vmem [shape: f32[2048,1], index: 5, kind: output, shape index: {}]  }
   0x1   :  { %v10_v0 = vstv %s3388_s4 }
   0x2   :  { %11 = vst [vmem:[#allocation2] sm:$0x1] %v10_v0 }
   0x3 LB: > { %s1869_s21 = sadd.s32 4294967295, %s2297_s20   ;;  %p1873_p0 = scmp.ge.s32.totalorder %s2297_s20, 1  ;;  %s2297_s20 = sphi %s2332_s20, %s17_s20  }
   0x4   : > { %p190_p1 = scmp.lt.s32.totalorder %s2297_s20, 5 }
   0x6   : > { %p191_p2 = pnand %p1873_p0, %p190_p1 }
   0x7   : > { %s1874_s4 = sshll.u32 (!%p191_p2), %s1869_s21, 6 }
   0x8   : > { %194 = sbr.rel (%p191_p2) target bundleno = 611 (0x263), region = 40  ;;  %p219_p3 = scmp.lt.s32.totalorder (!%p191_p2), %s1874_s4, 255 }
   0xd   : > { %v2159_v1 = vld [vmem:[%s3385_s1] sm:$0x3f]   ;;  %vm438_vm0 = vcmask 1045504   ;;  %s3391_s4 = smov (!%p219_p3, %s1874_s4), 255  ;;  %vm341_vm1 = vcmask 97280   ;;  %vm1362_vm2 = vcmask 261120  }
   0xe   : > { %2150 = vmatprep.subr.msk.bf16.mxu0 %vm438_vm0, %v2159_v1  ;;  %v440_v2 = vsel %vm438_vm0, %v2159_v1, 0  ;;  %s1875_s24 = sshll.u32 %s3391_s4, 3  ;;  %vm1748_vm3 = vcmask 7168  }
   0xf   : > { %2017 = vmatpush3.bf16.msra.mxu0 %v440_v2  ;;  %s2351_s27 = scalar_lea.vmem %s3384_s0, %s1875_s24  ;;  %s3187_s13 = scalar_lea.vmem %s3389_s5, %s1875_s24 }
  0x10   : > { %v231_v3 = vld [vmem:[%s2351_s27] sm:$0xff]  ;;  %v232_v4 = vld [vmem:[%s2351_s27 + $0x8] sm:$0xff]  ;;  %v233_v5 = vld [vmem:[%s2351_s27 + $0x10] sm:$0xff] }
  0x11   : > { %v295_v6 = vpack.c.bf16 %v232_v4, %v231_v3  ;;  %v234_v7 = vld [vmem:[%s2351_s27 + $0x18] sm:$0xff]  ;;  %v235_v8 = vld [vmem:[%s2351_s27 + $0x20] sm:$0xff]  ;;  %v236_v9 = vld [vmem:[%s2351_s27 + $0x28] sm:$0xff] }
  0x12   : > { %v296_v10 = vpack.c.bf16 %v234_v7, %v233_v5  ;;  %v297_v11 = vpack.c.bf16 %v236_v9, %v235_v8  ;;  %v237_v12 = vld [vmem:[%s2351_s27 + $0x30] sm:$0xff]  ;;  %v238_v13 = vld [vmem:[%s2351_s27 + $0x38] sm:$0xff]  ;;  %v239_v14 = vld [vmem:[%s2351_s27 + $0x40] sm:$0xff] }
  0x13   : > { %2018 = vmatprep.mubr.msk.bf16.mxu0 %vm341_vm1, %v295_v6  ;;  %v240_v15 = vld [vmem:[%s2351_s27 + $0x48] sm:$0xff]  ;;  %v298_v16 = vpack.c.bf16 %v238_v13, %v237_v12  ;;  %v241_v18 = vld [vmem:[%s2351_s27 + $0x50] sm:$0xff]  ;;  %v242_v19 = vld [vmem:[%s2351_s27 + $0x58] sm:$0xff] }
  0x14   : > { %2019 = vmatmul.mubr.msk.bf16.vlgmr.msra.gmra.mxu0 %vm341_vm1, %v296_v10  ;;  %v299_v17 = vpack.c.bf16 %v240_v15, %v239_v14  ;;  %v243_v20 = vld [vmem:[%s2351_s27 + $0x60] sm:$0xff]  ;;  %v244_v21 = vld [vmem:[%s2351_s27 + $0x68] sm:$0xff]  ;;  %v300_v22 = vpack.c.bf16 %v242_v19, %v241_v18  ;;  %v245_v24 = vld [vmem:[%s2351_s27 + $0x70] sm:$0xff] }
  0x15   : > { %2022 = vmatprep.mubr.msk.bf16.mxu0 %vm341_vm1, %v297_v11  ;;  %v301_v23 = vpack.c.bf16 %v244_v21, %v243_v20  ;;  %v246_v25 = vld [vmem:[%s2351_s27 + $0x78] sm:$0xff]  ;;  %v247_v26 = vld [vmem:[%s2351_s27 + $0x80] sm:$0xff]  ;;  %v248_v27 = vld [vmem:[%s2351_s27 + $0x88] sm:$0xff] }
  0x16   : > { %v302_v28 = vpack.c.bf16 %v246_v25, %v245_v24  ;;  %v303_v29 = vpack.c.bf16 %v248_v27, %v247_v26  ;;  %v249_v30 = vld [vmem:[%s2351_s27 + $0x90] sm:$0xff]  ;;  %v250_v31 = vld [vmem:[%s2351_s27 + $0x98] sm:$0xff]  ;;  %v251_v32 = vld [vmem:[%s2351_s27 + $0xa0] sm:$0xff] }
  0x17   : > { %v252_v33 = vld [vmem:[%s2351_s27 + $0xa8] sm:$0xff]  ;;  %v304_v34 = vpack.c.bf16 %v250_v31, %v249_v30  ;;  %v253_v36 = vld [vmem:[%s2351_s27 + $0xb0] sm:$0xff]  ;;  %v254_v37 = vld [vmem:[%s2351_s27 + $0xb8] sm:$0xff] }
  0x18   : > { %v305_v35 = vpack.c.bf16 %v252_v33, %v251_v32  ;;  %v255_v38 = vld [vmem:[%s2351_s27 + $0xc0] sm:$0xff]  ;;  %v256_v39 = vld [vmem:[%s2351_s27 + $0xc8] sm:$0xff]  ;;  %v306_v40 = vpack.c.bf16 %v254_v37, %v253_v36  ;;  %v257_v42 = vld [vmem:[%s2351_s27 + $0xd0] sm:$0xff] }
  0x19   : > { %v307_v41 = vpack.c.bf16 %v256_v39, %v255_v38  ;;  %v258_v43 = vld [vmem:[%s2351_s27 + $0xd8] sm:$0xff]  ;;  %v259_v44 = vld [vmem:[%s2351_s27 + $0xe0] sm:$0xff]  ;;  %v260_v45 = vld [vmem:[%s2351_s27 + $0xe8] sm:$0xff] }
  0x1a   : > { %v308_v46 = vpack.c.bf16 %v258_v43, %v257_v42  ;;  %v309_v47 = vpack.c.bf16 %v260_v45, %v259_v44  ;;  %v261_v48 = vld [vmem:[%s2351_s27 + $0xf0] sm:$0xff]  ;;  %v262_v49 = vld [vmem:[%s2351_s27 + $0xf8] sm:$0xff]  ;;  %v263_v50 = vld [vmem:[%s2351_s27 + $0x100] sm:$0xff] }
  0x1b   : > { %v264_v51 = vld [vmem:[%s2351_s27 + $0x108] sm:$0xff]  ;;  %v310_v52 = vpack.c.bf16 %v262_v49, %v261_v48  ;;  %v265_v54 = vld [vmem:[%s2351_s27 + $0x110] sm:$0xff]  ;;  %v266_v55 = vld [vmem:[%s2351_s27 + $0x118] sm:$0xff] }
  0x1c   : > { %2023 = vmatmul.mubr.msk.bf16.gmra.mxu0 %vm341_vm1, %v298_v16  ;;  %v311_v53 = vpack.c.bf16 %v264_v51, %v263_v50  ;;  %v267_v56 = vld [vmem:[%s2351_s27 + $0x120] sm:$0xff]  ;;  %v268_v57 = vld [vmem:[%s2351_s27 + $0x128] sm:$0xff]  ;;  %v312_v58 = vpack.c.bf16 %v266_v55, %v265_v54  ;;  %v269_v60 = vld [vmem:[%s2351_s27 + $0x130] sm:$0xff] }
  0x1d   : > { %2026 = vmatprep.mubr.msk.bf16.mxu0 %vm341_vm1, %v299_v17  ;;  %v313_v59 = vpack.c.bf16 %v268_v57, %v267_v56  ;;  %v270_v61 = vld [vmem:[%s2351_s27 + $0x138] sm:$0xff]  ;;  %v271_v62 = vld [vmem:[%s2351_s27 + $0x140] sm:$0xff]  ;;  %v272_v63 = vld [vmem:[%s2351_s27 + $0x148] sm:$0xff] }
  0x1e   : > { %v314_v0 = vpack.c.bf16 %v270_v61, %v269_v60  ;;  %v315_v1 = vpack.c.bf16 %v272_v63, %v271_v62  ;;  %v273_v2 = vld [vmem:[%s2351_s27 + $0x150] sm:$0xff]  ;;  %v274_v3 = vld [vmem:[%s2351_s27 + $0x158] sm:$0xff]  ;;  %v275_v4 = vld [vmem:[%s2351_s27 + $0x160] sm:$0xff] }
  0x1f   : > { %v276_v5 = vld [vmem:[%s2351_s27 + $0x168] sm:$0xff]  ;;  %v316_v6 = vpack.c.bf16 %v274_v3, %v273_v2  ;;  %v277_v8 = vld [vmem:[%s2351_s27 + $0x170] sm:$0xff]  ;;  %v278_v9 = vld [vmem:[%s2351_s27 + $0x178] sm:$0xff] }
  0x20   : > { %v317_v7 = vpack.c.bf16 %v276_v5, %v275_v4  ;;  %v279_v10 = vld [vmem:[%s2351_s27 + $0x180] sm:$0xff]  ;;  %v280_v11 = vld [vmem:[%s2351_s27 + $0x188] sm:$0xff]  ;;  %v318_v12 = vpack.c.bf16 %v278_v9, %v277_v8  ;;  %v281_v14 = vld [vmem:[%s2351_s27 + $0x190] sm:$0xff] }
  0x21   : > { %v319_v13 = vpack.c.bf16 %v280_v11, %v279_v10  ;;  %v282_v15 = vld [vmem:[%s2351_s27 + $0x198] sm:$0xff]  ;;  %v283_v16 = vld [vmem:[%s2351_s27 + $0x1a0] sm:$0xff]  ;;  %v284_v17 = vld [vmem:[%s2351_s27 + $0x1a8] sm:$0xff] }
  0x22   : > { %v320_v18 = vpack.c.bf16 %v282_v15, %v281_v14  ;;  %v321_v19 = vpack.c.bf16 %v284_v17, %v283_v16  ;;  %v285_v20 = vld [vmem:[%s2351_s27 + $0x1b0] sm:$0xff]  ;;  %v286_v21 = vld [vmem:[%s2351_s27 + $0x1b8] sm:$0xff]  ;;  %v2160_v24 = vld [vmem:[%s3387_s3 + $0x8] sm:$0xff]  }
  0x23   : > { %v322_v25 = vpack.c.bf16 %v286_v21, %v285_v20  ;;  %2082 = vmatprep.subr.bf16.mxu1 %v2160_v24  ;;  %v289_v27 = vld [vmem:[%s2351_s27 + $0x1d0] sm:$0xff]  ;;  %v292_v30 = vld [vmem:[%s2351_s27 + $0x1e8] sm:$0xff]  ;;  %v2161_v31 = vld [vmem:[%s3387_s3] sm:$0xff]  }
  0x24   : > { %2027 = vmatmul.mubr.msk.bf16.gmra.mxu0 %vm341_vm1, %v300_v22  ;;  %v287_v22 = vld [vmem:[%s2351_s27 + $0x1c0] sm:$0xff]  ;;  %2083 = vmatpush3.bf16.msra.mxu1 %v2160_v24 }
  0x25   : > { %2030 = vmatprep.mubr.msk.bf16.mxu0 %vm341_vm1, %v301_v23  ;;  %v288_v23 = vld [vmem:[%s2351_s27 + $0x1c8] sm:$0xff]  ;;  %2084 = vmatprep.subr.bf16.mxu1 %v2161_v31  ;;  %v2458_v37 = vld [vmem:[%s3386_s2] ss:$0 sm:$0xff] }
  0x26   : > { %v323_v26 = vpack.c.bf16 %v288_v23, %v287_v22 }
  0x28   : > { %2085 = vmatpush3.bf16.msra.mxu1 %v2161_v31 }
  0x2c   : > { %2031 = vmatmul.mubr.msk.bf16.gmra.mxu0 %vm341_vm1, %v302_v28  ;;  %v290_v28 = vld [vmem:[%s2351_s27 + $0x1d8] sm:$0xff] }
  0x2d   : > { %2034 = vmatprep.mubr.msk.bf16.mxu0 %vm341_vm1, %v303_v29  ;;  %v291_v29 = vld [vmem:[%s2351_s27 + $0x1e0] sm:$0xff]  ;;  %v324_v32 = vpack.c.bf16 %v290_v28, %v289_v27 }
  0x2e   : > { %v325_v33 = vpack.c.bf16 %v292_v30, %v291_v29 }
  0x34   : > { %2035 = vmatmul.mubr.msk.bf16.gmra.mxu0 %vm341_vm1, %v304_v34  ;;  %v293_v34 = vld [vmem:[%s2351_s27 + $0x1f0] sm:$0xff] }
  0x35   : > { %2038 = vmatprep.mubr.msk.bf16.mxu0 %vm341_vm1, %v305_v35  ;;  %v294_v35 = vld [vmem:[%s2351_s27 + $0x1f8] sm:$0xff] }
  0x36   : > { %v326_v36 = vpack.c.bf16 %v294_v35, %v293_v34 }
  0x3c   : > { %2039 = vmatmul.mubr.msk.bf16.gmra.mxu0 %vm341_vm1, %v306_v40 }
  0x3d   : > { %2042 = vmatprep.mubr.msk.bf16.mxu0 %vm341_vm1, %v307_v41 }
  0x44   : > { %2043 = vmatmul.mubr.msk.bf16.gmra.mxu0 %vm341_vm1, %v308_v46 }
  0x45   : > { %2046 = vmatprep.mubr.msk.bf16.mxu0 %vm341_vm1, %v309_v47 }
  0x4c   : > { %2047 = vmatmul.mubr.msk.bf16.gmra.mxu0 %vm341_vm1, %v310_v52 }
  0x4d   : > { %2050 = vmatprep.mubr.msk.bf16.mxu0 %vm341_vm1, %v311_v53 }
  0x54   : > { %2051 = vmatmul.mubr.msk.bf16.gmra.mxu0 %vm341_vm1, %v312_v58 }
  0x55   : > { %2054 = vmatprep.mubr.msk.bf16.mxu0 %vm341_vm1, %v313_v59 }
  0x5c   : > { %2055 = vmatmul.mubr.msk.bf16.gmra.mxu0 %vm341_vm1, %v314_v0 }
  0x5d   : > { %2058 = vmatprep.mubr.msk.bf16.mxu0 %vm341_vm1, %v315_v1 }
  0x64   : > { %2059 = vmatmul.mubr.msk.bf16.gmra.mxu0 %vm341_vm1, %v316_v6 }
  0x65   : > { %2062 = vmatprep.mubr.msk.bf16.mxu0 %vm341_vm1, %v317_v7 }
  0x6c   : > { %2063 = vmatmul.mubr.msk.bf16.gmra.mxu0 %vm341_vm1, %v318_v12 }
  0x6d   : > { %2066 = vmatprep.mubr.msk.bf16.mxu0 %vm341_vm1, %v319_v13 }
  0x74   : > { %2067 = vmatmul.mubr.msk.bf16.gmra.mxu0 %vm341_vm1, %v320_v18 }
  0x75   : > { %2070 = vmatprep.mubr.msk.bf16.mxu0 %vm341_vm1, %v321_v19 }
  0x7c   : > { %2071 = vmatmul.mubr.msk.bf16.gmra.mxu0 %vm341_vm1, %v322_v25 }
  0x7d   : > { %2074 = vmatprep.mubr.msk.bf16.mxu0 %vm341_vm1, %v323_v26 }
  0x84   : > { %2075 = vmatmul.mubr.msk.bf16.gmra.mxu0 %vm341_vm1, %v324_v32 }
  0x85   : > { %2078 = vmatprep.mubr.msk.bf16.mxu0 %vm341_vm1, %v325_v33 }
  0x8c   : > { %2079 = vmatmul.mubr.msk.bf16.gmra.mxu0 %vm341_vm1, %v326_v36 }
  0xd4   : > { %v2020_v38 = vpop.f32.mrf.mxu0 }
  0xd5   : > { %v2461_v39 = vadd.f32 %v2020_v38, %v2458_v37 }
  0xd6   : > { %v476_v40 = vpop.f32.mrf.mxu0 }
  0xd7   : > { %v733_v41 = vmul.f32 %v2461_v39, %v2461_v39  ;;  %v2466_v42 = vadd.f32 %v2458_v37, %v476_v40 }
  0xd8   : > { %v2021_v43 = vpop.f32.mrf.mxu0 }
  0xd9   : > { %v797_v44 = vmul.f32 %v733_v41, %v2461_v39  ;;  %v731_v45 = vmul.f32 %v2466_v42, %v2466_v42  ;;  %v2472_v46 = vadd.f32 %v2021_v43, %v2458_v37 }
  0xda   : > { %v479_v47 = vpop.f32.mrf.mxu0 }
  0xdb   : > { %v861_v48 = vmul.f32 0.044715, %v797_v44  ;;  %v795_v49 = vmul.f32 %v731_v45, %v2466_v42  ;;  %v734_v50 = vmul.f32 %v2472_v46, %v2472_v46  ;;  %v2478_v51 = vadd.f32 %v2458_v37, %v479_v47 }
  0xdc   : > { %v2024_v52 = vpop.f32.mrf.mxu0 }
  0xdd   : > { %v925_v53 = vadd.f32 %v861_v48, %v2461_v39  ;;  %v859_v54 = vmul.f32 0.044715, %v795_v49  ;;  %v798_v55 = vmul.f32 %v734_v50, %v2472_v46  ;;  %v732_v56 = vmul.f32 %v2478_v51, %v2478_v51 }
  0xde   : > { %v2485_v57 = vadd.f32 %v2024_v52, %v2458_v37  ;;  %v492_v58 = vpop.f32.mrf.mxu0 }
  0xdf   : > { %v989_v59 = vmul.f32 0.7978846, %v925_v53  ;;  %v923_v60 = vadd.f32 %v859_v54, %v2466_v42  ;;  %v862_v61 = vmul.f32 0.044715, %v798_v55  ;;  %v796_v62 = vmul.f32 %v732_v56, %v2478_v51 }
  0xe0   : > { %v737_v63 = vmul.f32 %v2485_v57, %v2485_v57  ;;  %v2492_v0 = vadd.f32 %v2458_v37, %v492_v58  ;;  %v2025_v1 = vpop.f32.mrf.mxu0 }
  0xe1   : > { %v926_v2 = vadd.f32 %v862_v61, %v2472_v46  ;;  %v860_v3 = vmul.f32 0.044715, %v796_v62  ;;  %2162 = vtanh.f32 %v989_v59  ;;  %v2499_v6 = vadd.f32 %v2025_v1, %v2458_v37 }
  0xe2   : > { %v801_v4 = vmul.f32 %v737_v63, %v2485_v57  ;;  %v735_v5 = vmul.f32 %v2492_v0, %v2492_v0  ;;  %v495_v7 = vpop.f32.mrf.mxu0  ;;  %v987_v8 = vmul.f32 0.7978846, %v923_v60 }
  0xe3   : > { %v990_v9 = vmul.f32 0.7978846, %v926_v2  ;;  %v924_v10 = vadd.f32 %v860_v3, %v2478_v51  ;;  %v2503_v11 = vadd.f32 %v2458_v37, %v495_v7  ;;  %v738_v14 = vmul.f32 %v2499_v6, %v2499_v6 }
  0xe4   : > { %v865_v12 = vmul.f32 0.044715, %v801_v4  ;;  %v799_v13 = vmul.f32 %v735_v5, %v2492_v0  ;;  %v2028_v15 = vpop.f32.mrf.mxu0 }
  0xe5   : > { %2164 = vtanh.f32 %v990_v9  ;;  %v988_v16 = vmul.f32 0.7978846, %v924_v10  ;;  %v736_v17 = vmul.f32 %v2503_v11, %v2503_v11  ;;  %v2511_v18 = vadd.f32 %v2028_v15, %v2458_v37 }
  0xe6   : > { %v929_v19 = vadd.f32 %v865_v12, %v2485_v57  ;;  %v863_v20 = vmul.f32 0.044715, %v799_v13  ;;  %v802_v21 = vmul.f32 %v738_v14, %v2499_v6  ;;  %v508_v22 = vpop.f32.mrf.mxu0  ;;  %2166 = vtanh.f32 %v987_v8 }
  0xe7   : > { %v800_v23 = vmul.f32 %v736_v17, %v2503_v11  ;;  %v741_v24 = vmul.f32 %v2511_v18, %v2511_v18  ;;  %v2519_v25 = vadd.f32 %v2458_v37, %v508_v22  ;;  %2168 = vtanh.f32 %v988_v16 }
  0xe8   : > { %v993_v26 = vmul.f32 0.7978846, %v929_v19  ;;  %v927_v27 = vadd.f32 %v863_v20, %v2492_v0  ;;  %v866_v28 = vmul.f32 0.044715, %v802_v21  ;;  %v2029_v29 = vpop.f32.mrf.mxu0 }
  0xe9   : > { %v864_v30 = vmul.f32 0.044715, %v800_v23  ;;  %v805_v31 = vmul.f32 %v741_v24, %v2511_v18  ;;  %v739_v32 = vmul.f32 %v2519_v25, %v2519_v25  ;;  %v2526_v33 = vadd.f32 %v2029_v29, %v2458_v37 }
  0xea   : > { %2170 = vtanh.f32 %v993_v26  ;;  %v991_v34 = vmul.f32 0.7978846, %v927_v27  ;;  %v930_v35 = vadd.f32 %v866_v28, %v2499_v6  ;;  %v511_v36 = vpop.f32.mrf.mxu0 }
  0xeb   : > { %v928_v38 = vadd.f32 %v864_v30, %v2503_v11  ;;  %v869_v40 = vmul.f32 0.044715, %v805_v31  ;;  %v803_v41 = vmul.f32 %v739_v32, %v2519_v25  ;;  %v742_v43 = vmul.f32 %v2526_v33, %v2526_v33 }
  0xec   : > { %2172 = vtanh.f32 %v991_v34  ;;  %v994_v44 = vmul.f32 0.7978846, %v930_v35  ;;  %v2534_v45 = vadd.f32 %v2458_v37, %v511_v36  ;;  %v2032_v47 = vpop.f32.mrf.mxu0 }
  0xed   : > { %v992_v48 = vmul.f32 0.7978846, %v928_v38  ;;  %v933_v49 = vadd.f32 %v869_v40, %v2511_v18  ;;  %v867_v50 = vmul.f32 0.044715, %v803_v41  ;;  %v806_v52 = vmul.f32 %v742_v43, %v2526_v33 }
  0xee   : > { %2174 = vtanh.f32 %v994_v44  ;;  %v740_v53 = vmul.f32 %v2534_v45, %v2534_v45  ;;  %v2541_v54 = vadd.f32 %v2032_v47, %v2458_v37  ;;  %v524_v55 = vpop.f32.mrf.mxu0  ;;  %v2163_v56 = vpop.eup %2162 }
  0xef   : > { %2176 = vtanh.f32 %v992_v48  ;;  %v997_v58 = vmul.f32 0.7978846, %v933_v49  ;;  %v931_v59 = vadd.f32 %v867_v50, %v2519_v25  ;;  %v870_v60 = vmul.f32 0.044715, %v806_v52 }
  0xf0   : > { %v804_v61 = vmul.f32 %v740_v53, %v2534_v45  ;;  %v745_v62 = vmul.f32 %v2541_v54, %v2541_v54  ;;  %v2548_v63 = vadd.f32 %v2458_v37, %v524_v55  ;;  %v2033_v1 = vpop.f32.mrf.mxu0  ;;  %v1117_v12 = vadd.f32 1.0, %v2163_v56 }
  0xf1   : > { %2178 = vtanh.f32 %v997_v58  ;;  %v995_v2 = vmul.f32 0.7978846, %v931_v59  ;;  %v2551_v3 = vadd.f32 %v2033_v1, %v2458_v37  ;;  %v934_v5 = vadd.f32 %v870_v60, %v2526_v33 }
  0xf2   : > { %v2165_v4 = vpop.eup %2164  ;;  %v868_v7 = vmul.f32 0.044715, %v804_v61  ;;  %v809_v8 = vmul.f32 %v745_v62, %v2541_v54  ;;  %v743_v9 = vmul.f32 %v2548_v63, %v2548_v63  ;;  %v527_v10 = vpop.f32.mrf.mxu0  ;;  %v1181_v32 = vmul.f32 0.5, %v1117_v12 }
  0xf3   : > { %2180 = vtanh.f32 %v995_v2  ;;  %v746_v13 = vmul.f32 %v2551_v3, %v2551_v3  ;;  %v2559_v14 = vpop.eup %2166  ;;  %v998_v15 = vmul.f32 0.7978846, %v934_v5  ;;  %v1118_v22 = vadd.f32 1.0, %v2165_v4 }
  0xf4   : > { %v932_v16 = vadd.f32 %v868_v7, %v2534_v45  ;;  %v873_v17 = vmul.f32 0.044715, %v809_v8  ;;  %v807_v19 = vmul.f32 %v743_v9, %v2548_v63  ;;  %v2036_v20 = vpop.f32.mrf.mxu0  ;;  %v2563_v21 = vpop.eup %2168  ;;  %v2567_v24 = vadd.f32 %v2458_v37, %v527_v10 }
  0xf5   : > { %v810_v23 = vmul.f32 %v746_v13, %v2551_v3  ;;  %v2570_v26 = vadd.f32 %v2036_v20, %v2458_v37  ;;  %2182 = vtanh.f32 %v998_v15  ;;  %v1182_v52 = vmul.f32 0.5, %v1118_v22 }
  0xf6   : > { %v996_v27 = vmul.f32 0.7978846, %v932_v16  ;;  %v937_v28 = vadd.f32 %v873_v17, %v2541_v54  ;;  %v871_v29 = vmul.f32 0.044715, %v807_v19  ;;  %v540_v30 = vpop.f32.mrf.mxu0  ;;  %v744_v35 = vmul.f32 %v2567_v24, %v2567_v24 }
  0xf7   : > { %v2171_v31 = vpop.eup %2170  ;;  %v874_v34 = vmul.f32 0.044715, %v810_v23  ;;  %v749_v36 = vmul.f32 %v2570_v26, %v2570_v26  ;;  %v2582_v50 = vadd.f32 %v2458_v37, %v540_v30  ;;  %v2593_v15 = vmul.f32 %v1181_v32, %v2461_v39 }
  0xf8   : > { %v1121_v38 = vadd.f32 1.0, %v2171_v31  ;;  %2184 = vtanh.f32 %v996_v27  ;;  %v1001_v40 = vmul.f32 0.7978846, %v937_v28  ;;  %v935_v41 = vadd.f32 %v871_v29, %v2548_v63  ;;  %v2037_v43 = vpop.f32.mrf.mxu0 }
  0xf9   : > { %v2173_v44 = vpop.eup %2172  ;;  %v938_v47 = vadd.f32 %v874_v34, %v2551_v3  ;;  %v808_v48 = vmul.f32 %v744_v35, %v2567_v24  ;;  %v813_v49 = vmul.f32 %v749_v36, %v2570_v26  ;;  %v747_v62 = vmul.f32 %v2582_v50, %v2582_v50 }
  0xfa   : > { %v1185_v53 = vmul.f32 0.5, %v1121_v38  ;;  %v1119_v55 = vadd.f32 1.0, %v2173_v44  ;;  %2186 = vtanh.f32 %v1001_v40  ;;  %v543_v56 = vpop.f32.mrf.mxu0  ;;  %v999_v59 = vmul.f32 0.7978846, %v935_v41 }
  0xfb   : > { %v2175_v58 = vpop.eup %2174  ;;  %v872_v60 = vmul.f32 0.044715, %v808_v48  ;;  %v877_v61 = vmul.f32 0.044715, %v813_v49  ;;  %v1002_v5 = vmul.f32 0.7978846, %v938_v47  ;;  %v811_v10 = vmul.f32 %v747_v62, %v2582_v50 }
  0xfc   : > { %v2177_v1 = vpop.eup %2176  ;;  %v2040_v2 = vpop.f32.mrf.mxu0  ;;  %v1183_v4 = vmul.f32 0.5, %v1119_v55  ;;  %v2590_v12 = vadd.f32 %v2037_v43, %v2458_v37  ;;  %v2596_v16 = vmul.f32 %v1182_v52, %v2472_v46  ;;  %v2599_v17 = vmul.f32 %v1185_v53, %v2485_v57 }
  0xfd   : > { %v936_v7 = vadd.f32 %v872_v60, %v2567_v24  ;;  %v941_v9 = vadd.f32 %v877_v61, %v2570_v26  ;;  %2188 = vtanh.f32 %v999_v59  ;;  %v875_v22 = vmul.f32 0.044715, %v811_v10 }
  0xfe   : > { %v2179_v8 = vpop.eup %2178  ;;  %v556_v13 = vpop.f32.mrf.mxu0  ;;  %v750_v23 = vmul.f32 %v2590_v12, %v2590_v12  ;;  %v2604_v27 = vadd.f32 %v2458_v37, %v543_v56  ;;  %v2609_v39 = vmul.f32 %v1183_v4, %v2492_v0  ;;  %v1122_v46 = vadd.f32 1.0, %v2175_v58 }
  0xff   : > { %v1000_v20 = vmul.f32 0.7978846, %v936_v7  ;;  %v1120_v29 = vadd.f32 1.0, %v2177_v1  ;;  %2190 = vtanh.f32 %v1002_v5  ;;  %v1005_v57 = vmul.f32 0.7978846, %v941_v9 }
 0x100   : > { %v2181_v19 = vpop.eup %2180  ;;  %v2606_v28 = vpop.f32.mrf.mxu0  ;;  %v939_v30 = vadd.f32 %v875_v22, %v2582_v50  ;;  %v814_v31 = vmul.f32 %v750_v23, %v2590_v12  ;;  %v748_v32 = vmul.f32 %v2604_v27, %v2604_v27  ;;  %v1125_v36 = vadd.f32 1.0, %v2179_v8 }
 0x101   : > { %v1123_v38 = vadd.f32 1.0, %v2181_v19  ;;  %v2616_v40 = vadd.f32 %v2040_v2, %v2458_v37  ;;  %v1115_v0 = vadd.f32 1.0, %v2559_v14  ;;  %2192 = vtanh.f32 %v1000_v20 }
 0x102   : > { %v559_v34 = vpop.f32.mrf.mxu0  ;;  %v2183_v35 = vpop.eup %2182  ;;  %v878_v43 = vmul.f32 0.044715, %v814_v31  ;;  %v812_v44 = vmul.f32 %v748_v32, %v2604_v27  ;;  %v1186_v49 = vmul.f32 0.5, %v1122_v46  ;;  %v1116_v53 = vadd.f32 1.0, %v2563_v21 }
 0x103   : > { %v1126_v41 = vadd.f32 1.0, %v2183_v35  ;;  %v753_v52 = vmul.f32 %v2616_v40, %v2616_v40  ;;  %v1179_v55 = vmul.f32 0.5, %v1115_v0  ;;  %v1184_v56 = vmul.f32 0.5, %v1120_v29 }
 0x104   : > { %v2044_v47 = vpop.f32.mrf.mxu0  ;;  %2194 = vtanh.f32 %v1005_v57  ;;  %v1003_v59 = vmul.f32 0.7978846, %v939_v30  ;;  %v942_v61 = vadd.f32 %v878_v43, %v2590_v12  ;;  %v876_v62 = vmul.f32 0.044715, %v812_v44 }
 0x105   : > { %v2185_v48 = vpop.eup %2184  ;;  %v817_v1 = vmul.f32 %v753_v52, %v2616_v40  ;;  %v1180_v2 = vmul.f32 0.5, %v1116_v53  ;;  %v1189_v4 = vmul.f32 0.5, %v1125_v36  ;;  %v1187_v5 = vmul.f32 0.5, %v1123_v38 }
 0x106   : > { %v1124_v58 = vadd.f32 1.0, %v2185_v48  ;;  %v572_v60 = vpop.f32.mrf.mxu0  ;;  %v1190_v7 = vmul.f32 0.5, %v1126_v41  ;;  %v1243_v8 = vmul.f32 %v1179_v55, %v2466_v42  ;;  %v940_v21 = vadd.f32 %v876_v62, %v2604_v27 }
 0x107   : > { %v2187_v14 = vpop.eup %2186  ;;  %v881_v10 = vmul.f32 0.044715, %v817_v1  ;;  %v1244_v19 = vmul.f32 %v1180_v2, %v2478_v51  ;;  %v2631_v20 = vadd.f32 %v2458_v37, %v556_v13  ;;  %v2634_v22 = vmul.f32 %v1186_v49, %v2499_v6 }
 0x108   : > { %v2626_v9 = vpop.f32.mrf.mxu0  ;;  %v1248_v23 = vmul.f32 %v1184_v56, %v2503_v11  ;;  %v1188_v46 = vmul.f32 0.5, %v1124_v58  ;;  %2196 = vtanh.f32 %v1003_v59  ;;  %v1129_v57 = vadd.f32 1.0, %v2187_v14 }
 0x109   : > { %v1006_v42 = vmul.f32 0.7978846, %v942_v61  ;;  %v945_v30 = vadd.f32 %v881_v10, %v2616_v40  ;;  %v1307_v31 = vpack.c.bf16 %v1244_v19, %v1243_v8  ;;  %v2639_v35 = vmul.f32 %v1189_v4, %v2511_v18 }
 0x10a   : > { %v575_v29 = vpop.f32.mrf.mxu0  ;;  %v2189_v32 = vpop.eup %2188  ;;  %v1004_v51 = vmul.f32 0.7978846, %v940_v21  ;;  %v751_v13 = vmul.f32 %v2631_v20, %v2631_v20  ;;  %v1308_v6 = vpack.c.bf16 %v2596_v16, %v2593_v15  ;;  %v2648_v36 = vmul.f32 %v1187_v5, %v2519_v25 }
 0x10b   : > { %v2651_v38 = vmul.f32 %v1190_v7, %v2526_v33  ;;  %v1009_v0 = vmul.f32 0.7978846, %v945_v30  ;;  %2086 = vmatprep.mubr.msk.bf16.mxu1 %vm1362_vm2, %v1307_v31  ;;  %v2656_v18 = vadd.f32 %v2606_v28, %v2458_v37  ;;  %v2659_v43 = vmul.f32 %v1188_v46, %v2534_v45 }
 0x10c   : > { %v2645_v11 = vpop.f32.mrf.mxu0  ;;  %v2191_v41 = vpop.eup %2190  ;;  %v815_v15 = vmul.f32 %v751_v13, %v2631_v20  ;;  %2087 = vmatmul.mubr.msk.bf16.vlgmr.msra.gmra.mxu1 %vm1362_vm2, %v1308_v6  ;;  %v2664_v25 = vadd.f32 %v2458_v37, %v559_v34  ;;  %v2667_v33 = vadd.f32 %v2044_v47, %v2458_v37  ;;  %v1193_v44 = vmul.f32 0.5, %v1129_v57 }
 0x10d   : > { %v1127_v48 = vadd.f32 1.0, %v2189_v32  ;;  %2198 = vtanh.f32 %v1006_v42  ;;  %v754_v28 = vmul.f32 %v2656_v18, %v2656_v18  ;;  %v1309_v55 = vpack.c.bf16 %v1248_v23, %v2609_v39 }
 0x10e   : > { %v2669_v16 = vpop.f32.mrf.mxu0  ;;  %2200 = vtanh.f32 %v1004_v51  ;;  %v879_v45 = vmul.f32 0.044715, %v815_v15  ;;  %v752_v49 = vmul.f32 %v2664_v25, %v2664_v25  ;;  %v757_v34 = vmul.f32 %v2667_v33, %v2667_v33  ;;  %v2193_v47 = vpop.eup %2192 }
 0x10f   : > { %2202 = vtanh.f32 %v1009_v0  ;;  %v818_v53 = vmul.f32 %v754_v28, %v2656_v18  ;;  %v2682_v56 = vadd.f32 %v2458_v37, %v572_v60  ;;  %v1130_v58 = vadd.f32 1.0, %v2191_v41  ;;  %2090 = vmatprep.mubr.msk.bf16.mxu1 %vm1362_vm2, %v1309_v55 }
 0x110   : > { %v2677_v52 = vpop.f32.mrf.mxu0  ;;  %v943_v59 = vadd.f32 %v879_v45, %v2631_v20  ;;  %v816_v14 = vmul.f32 %v752_v49, %v2664_v25  ;;  %v821_v61 = vmul.f32 %v757_v34, %v2667_v33  ;;  %v2690_v2 = vmul.f32 %v1193_v44, %v2541_v54 }
 0x111   : > { %v2195_v1 = vpop.eup %2194  ;;  %v1191_v4 = vmul.f32 0.5, %v1127_v48  ;;  %v882_v5 = vmul.f32 0.044715, %v818_v53  ;;  %v755_v39 = vmul.f32 %v2682_v56, %v2682_v56  ;;  %v1128_v60 = vadd.f32 1.0, %v2193_v47 }
 0x112   : > { %v2687_v62 = vpop.f32.mrf.mxu0  ;;  %v1007_v7 = vmul.f32 0.7978846, %v943_v59  ;;  %v880_v8 = vmul.f32 0.044715, %v816_v14  ;;  %v1310_v21 = vpack.c.bf16 %v2634_v22, %v2599_v17  ;;  %v885_v23 = vmul.f32 0.044715, %v821_v61 }
 0x113   : > { %v946_v19 = vadd.f32 %v882_v5, %v2656_v18  ;;  %v819_v54 = vmul.f32 %v755_v39, %v2682_v56  ;;  %v2703_v46 = vadd.f32 %v2626_v9, %v2458_v37  ;;  %v1194_v57 = vmul.f32 0.5, %v1130_v58 }
 0x114   : > { %v2697_v10 = vpop.f32.mrf.mxu0  ;;  %v1133_v42 = vadd.f32 1.0, %v2195_v1  ;;  %v944_v30 = vadd.f32 %v880_v8, %v2664_v25  ;;  %2091 = vmatmul.mubr.msk.bf16.gmra.mxu1 %vm1362_vm2, %v1310_v21  ;;  %v2708_v31 = vadd.f32 %v2458_v37, %v575_v29  ;;  %v949_v51 = vadd.f32 %v885_v23, %v2667_v33 }
 0x115   : > { %v2197_v22 = vpop.eup %2196  ;;  %v1010_v32 = vmul.f32 0.7978846, %v946_v19  ;;  %v883_v13 = vmul.f32 0.044715, %v819_v54  ;;  %v758_v9 = vmul.f32 %v2703_v46, %v2703_v46  ;;  %v1192_v6 = vmul.f32 0.5, %v1128_v60 }
 0x116   : > { %v2710_v17 = vpop.f32.mrf.mxu0  ;;  %2204 = vtanh.f32 %v1007_v7  ;;  %v1008_v0 = vmul.f32 0.7978846, %v944_v30  ;;  %v756_v41 = vmul.f32 %v2708_v31, %v2708_v31  ;;  %v1013_v29 = vmul.f32 0.7978846, %v949_v51 }
 0x117   : > { %2206 = vtanh.f32 %v1010_v32  ;;  %v947_v44 = vadd.f32 %v883_v13, %v2682_v56  ;;  %v822_v48 = vmul.f32 %v758_v9, %v2703_v46  ;;  %v1255_v28 = vmul.f32 %v1191_v4, %v2548_v63 }
 0x118   : > { %v2717_v15 = vpop.f32.mrf.mxu0  ;;  %2208 = vtanh.f32 %v1008_v0  ;;  %v820_v45 = vmul.f32 %v756_v41, %v2708_v31  ;;  %v2725_v49 = vadd.f32 %v2645_v11, %v2458_v37  ;;  %v1131_v47 = vadd.f32 1.0, %v2197_v22 }
 0x119   : > { %2210 = vtanh.f32 %v1013_v29  ;;  %v1011_v53 = vmul.f32 0.7978846, %v947_v44  ;;  %v886_v55 = vmul.f32 0.044715, %v822_v48  ;;  %v2730_v59 = vmul.f32 %v1194_v57, %v2551_v3 }
 0x11a   : > { %v2727_v34 = vpop.f32.mrf.mxu0  ;;  %v2199_v58 = vpop.eup %2198  ;;  %v884_v14 = vmul.f32 0.044715, %v820_v45  ;;  %v761_v63 = vmul.f32 %v2725_v49, %v2725_v49  ;;  %v1311_v61 = vpack.c.bf16 %v2659_v43, %v2648_v36  ;;  %v1256_v4 = vmul.f32 %v1192_v6, %v2567_v24 }
 0x11b   : > { %v2201_v11 = vpop.eup %2200  ;;  %v1197_v5 = vmul.f32 0.5, %v1133_v42  ;;  %2212 = vtanh.f32 %v1011_v53  ;;  %v950_v39 = vadd.f32 %v886_v55, %v2703_v46  ;;  %v2745_v8 = vadd.f32 %v2458_v37, %v2669_v16 }
 0x11c   : > { %v2736_v1 = vpop.f32.mrf.mxu0  ;;  %v2203_v60 = vpop.eup %2202  ;;  %v948_v3 = vadd.f32 %v884_v14, %v2708_v31  ;;  %v825_v7 = vmul.f32 %v761_v63, %v2725_v49  ;;  %2094 = vmatprep.mubr.msk.bf16.mxu1 %vm1362_vm2, %v1311_v61  ;;  %v1312_v36 = vpack.c.bf16 %v2651_v38, %v2639_v35  ;;  %v1195_v24 = vmul.f32 0.5, %v1131_v47 }
 0x11d   : > { %v1134_v21 = vadd.f32 1.0, %v2199_v58  ;;  %v1014_v19 = vmul.f32 0.7978846, %v950_v39  ;;  %v2753_v23 = vadd.f32 %v2677_v52, %v2458_v37  ;;  %v759_v42 = vmul.f32 %v2745_v8, %v2745_v8 }
 0x11e   : > { %v2749_v43 = vpop.f32.mrf.mxu0  ;;  %v1012_v54 = vmul.f32 0.7978846, %v948_v3  ;;  %v889_v57 = vmul.f32 0.044715, %v825_v7  ;;  %2095 = vmatmul.mubr.msk.bf16.gmra.mxu1 %vm1362_vm2, %v1312_v36  ;;  %v2760_v16 = vadd.f32 %v2458_v37, %v2687_v62  ;;  %v1132_v38 = vadd.f32 1.0, %v2201_v11 }
 0x11f   : > { %v1137_v30 = vadd.f32 1.0, %v2203_v60  ;;  %v762_v22 = vmul.f32 %v2753_v23, %v2753_v23  ;;  %v2768_v52 = vadd.f32 %v2697_v10, %v2458_v37  ;;  %2214 = vtanh.f32 %v1014_v19 }
 0x120   : > { %v2762_v35 = vpop.f32.mrf.mxu0  ;;  %v953_v32 = vadd.f32 %v889_v57, %v2725_v49  ;;  %v823_v51 = vmul.f32 %v759_v42, %v2745_v8  ;;  %v760_v62 = vmul.f32 %v2760_v16, %v2760_v16  ;;  %v1313_v0 = vpack.c.bf16 %v1256_v4, %v1255_v28 }
 0x121   : > { %v826_v9 = vmul.f32 %v762_v22, %v2753_v23  ;;  %v765_v6 = vmul.f32 %v2768_v52, %v2768_v52  ;;  %v2781_v10 = vadd.f32 %v2458_v37, %v2710_v17  ;;  %2216 = vtanh.f32 %v1012_v54 }
 0x122   : > { %v2774_v13 = vpop.f32.mrf.mxu0  ;;  %v1017_v41 = vmul.f32 0.7978846, %v953_v32  ;;  %v887_v29 = vmul.f32 0.044715, %v823_v51  ;;  %v824_v44 = vmul.f32 %v760_v62, %v2760_v16  ;;  %v1196_v47 = vmul.f32 0.5, %v1132_v38  ;;  %2098 = vmatprep.mubr.msk.bf16.mxu1 %vm1362_vm2, %v1313_v0 }
 0x123   : > { %v2205_v45 = vpop.eup %2204  ;;  %v890_v53 = vmul.f32 0.044715, %v826_v9  ;;  %v829_v55 = vmul.f32 %v765_v6, %v2768_v52  ;;  %v763_v28 = vmul.f32 %v2781_v10, %v2781_v10  ;;  %v1314_v63 = vpack.c.bf16 %v2730_v59, %v2690_v2 }
 0x124   : > { %v2784_v48 = vpop.f32.mrf.mxu0  ;;  %v2207_v58 = vpop.eup %2206  ;;  %2218 = vtanh.f32 %v1017_v41  ;;  %v951_v17 = vadd.f32 %v887_v29, %v2745_v8  ;;  %v888_v14 = vmul.f32 0.044715, %v824_v44  ;;  %v1198_v4 = vmul.f32 0.5, %v1134_v21 }
 0x125   : > { %v2209_v11 = vpop.eup %2208  ;;  %v1201_v39 = vmul.f32 0.5, %v1137_v30  ;;  %v954_v60 = vadd.f32 %v890_v53, %v2753_v23  ;;  %v827_v3 = vmul.f32 %v763_v28, %v2781_v10  ;;  %v1135_v36 = vadd.f32 1.0, %v2205_v45 }
 0x126   : > { %v2793_v61 = vpop.f32.mrf.mxu0  ;;  %v2211_v7 = vpop.eup %2210  ;;  %v1015_v19 = vmul.f32 0.7978846, %v951_v17  ;;  %v952_v54 = vadd.f32 %v888_v14, %v2760_v16  ;;  %2099 = vmatmul.mubr.msk.bf16.gmra.mxu1 %vm1362_vm2, %v1314_v63  ;;  %v1261_v2 = vmul.f32 %v1197_v5, %v2570_v26  ;;  %v1138_v59 = vadd.f32 1.0, %v2207_v58 }
 0x127   : > { %v893_v42 = vmul.f32 0.044715, %v829_v55  ;;  %v1259_v21 = vmul.f32 %v1195_v24, %v2582_v50  ;;  %v1260_v30 = vmul.f32 %v1196_v47, %v2604_v27  ;;  %v1136_v22 = vadd.f32 1.0, %v2209_v11 }
 0x128   : > { %v2799_v57 = vpop.f32.mrf.mxu0  ;;  %v2213_v38 = vpop.eup %2212  ;;  %v891_v32 = vmul.f32 0.044715, %v827_v3  ;;  %v1262_v62 = vmul.f32 %v1198_v4, %v2590_v12  ;;  %v2808_v9 = vmul.f32 %v1201_v39, %v2616_v40  ;;  %v1141_v6 = vadd.f32 1.0, %v2211_v7 }
 0x129   : > { %v1018_v0 = vmul.f32 0.7978846, %v954_v60  ;;  %v2810_v41 = vmul.f32 0.5, %v1135_v36  ;;  %2220 = vtanh.f32 %v1015_v19  ;;  %v1016_v26 = vmul.f32 0.7978846, %v952_v54 }
 0x12a   : > { %v2804_v51 = vpop.f32.mrf.mxu0  ;;  %v955_v5 = vadd.f32 %v891_v32, %v2781_v10  ;;  %v2815_v27 = vmul.f32 0.5, %v1138_v59  ;;  %v957_v24 = vadd.f32 %v893_v42, %v2768_v52  ;;  %v2820_v12 = vadd.f32 %v2717_v15, %v2458_v37 }
 0x12b   : > { %v2824_v40 = vadd.f32 %v2458_v37, %v2727_v34  ;;  %v1200_v29 = vmul.f32 0.5, %v1136_v22  ;;  %v1139_v44 = vadd.f32 1.0, %v2213_v38  ;;  %v2828_v45 = vadd.f32 %v2736_v1, %v2458_v37 }
 0x12c   : > { %v2813_v50 = vpop.f32.mrf.mxu0  ;;  %v1315_v47 = vpack.c.bf16 %v1260_v30, %v1259_v21  ;;  %v2215_v55 = vpop.eup %2214  ;;  %v2832_v28 = vmul.f32 0.5, %v1141_v6  ;;  %2222 = vtanh.f32 %v1018_v0  ;;  %v766_v15 = vmul.f32 %v2820_v12, %v2820_v12 }
 0x12d   : > { %v764_v34 = vmul.f32 %v2824_v40, %v2824_v40  ;;  %2224 = vtanh.f32 %v1016_v26  ;;  %v1019_v58 = vmul.f32 0.7978846, %v955_v5  ;;  %v769_v17 = vmul.f32 %v2828_v45, %v2828_v45 }
 0x12e   : > { %v2830_v53 = vpop.f32.mrf.mxu0  ;;  %2102 = vmatprep.mubr.msk.bf16.mxu1 %vm1362_vm2, %v1315_v47  ;;  %v2843_v1 = vadd.f32 %v2458_v37, %v2749_v43  ;;  %v2217_v63 = vpop.eup %2216  ;;  %v1021_v11 = vmul.f32 0.7978846, %v957_v24  ;;  %v830_v4 = vmul.f32 %v766_v15, %v2820_v12  ;;  %v1316_v60 = vpack.c.bf16 %v1262_v62, %v1261_v2 }
 0x12f   : > { %v828_v39 = vmul.f32 %v764_v34, %v2824_v40  ;;  %v1203_v3 = vmul.f32 0.5, %v1139_v44  ;;  %v833_v7 = vmul.f32 %v769_v17, %v2828_v45  ;;  %v2854_v19 = vadd.f32 %v2762_v35, %v2458_v37 }
 0x130   : > { %v2845_v14 = vpop.f32.mrf.mxu0  ;;  %v767_v36 = vmul.f32 %v2843_v1, %v2843_v1  ;;  %v1142_v59 = vadd.f32 1.0, %v2215_v55  ;;  %v894_v42 = vmul.f32 0.044715, %v830_v4  ;;  %2103 = vmatmul.mubr.msk.bf16.gmra.mxu1 %vm1362_vm2, %v1316_v60  ;;  %v2861_v2 = vadd.f32 %v2458_v37, %v2774_v13 }
 0x131   : > { %v2219_v54 = vpop.eup %2218  ;;  %v892_v38 = vmul.f32 0.044715, %v828_v39  ;;  %v1140_v21 = vadd.f32 1.0, %v2217_v63  ;;  %2226 = vtanh.f32 %v1019_v58  ;;  %v897_v30 = vmul.f32 0.044715, %v833_v7 }
 0x132   : > { %v2856_v43 = vpop.f32.mrf.mxu0  ;;  %v831_v22 = vmul.f32 %v767_v36, %v2843_v1  ;;  %v958_v35 = vadd.f32 %v894_v42, %v2820_v12  ;;  %v770_v62 = vmul.f32 %v2854_v19, %v2854_v19  ;;  %v768_v6 = vmul.f32 %v2861_v2, %v2861_v2 }
 0x133   : > { %v956_v32 = vadd.f32 %v892_v38, %v2824_v40  ;;  %v1145_v0 = vadd.f32 1.0, %v2219_v54  ;;  %2228 = vtanh.f32 %v1021_v11  ;;  %v961_v13 = vadd.f32 %v897_v30, %v2828_v45 }
 0x134   : > { %v895_v26 = vmul.f32 0.044715, %v831_v22  ;;  %v2871_v5 = vpop.f32.mrf.mxu0  ;;  %v1022_v24 = vmul.f32 0.7978846, %v958_v35  ;;  %v834_v47 = vmul.f32 %v770_v62, %v2854_v19  ;;  %v832_v55 = vmul.f32 %v768_v6, %v2861_v2 }
 0x135   : > { %v1020_v44 = vmul.f32 0.7978846, %v956_v32  ;;  %v1206_v15 = vmul.f32 0.5, %v1142_v59  ;;  %v1204_v34 = vmul.f32 0.5, %v1140_v21  ;;  %v1025_v58 = vmul.f32 0.7978846, %v961_v13 }
 0x136   : > { %v959_v17 = vadd.f32 %v895_v26, %v2843_v1  ;;  %v2221_v63 = vpop.eup %2220  ;;  %2230 = vtanh.f32 %v1022_v24  ;;  %v898_v4 = vmul.f32 0.044715, %v834_v47  ;;  %v896_v11 = vmul.f32 0.044715, %v832_v55  ;;  %v2881_v54 = vpop.f32.mrf.mxu0 }
 0x137   : > { %v2878_v39 = vadd.f32 %v2784_v48, %v2458_v37  ;;  %v1264_v60 = vmul.f32 %v1200_v29, %v2664_v25  ;;  %v1209_v7 = vmul.f32 0.5, %v1145_v0  ;;  %2232 = vtanh.f32 %v1020_v44 }
 0x138   : > { %v1023_v36 = vmul.f32 0.7978846, %v959_v17  ;;  %v1266_v59 = vmul.f32 %v2815_v27, %v2656_v18  ;;  %2234 = vtanh.f32 %v1025_v58  ;;  %v962_v42 = vadd.f32 %v898_v4, %v2854_v19 }
 0x139   : > { %v960_v38 = vadd.f32 %v896_v11, %v2861_v2  ;;  %v2223_v21 = vpop.eup %2222  ;;  %v1263_v48 = vmul.f32 %v2810_v41, %v2631_v20  ;;  %v2891_v25 = vmul.f32 %v2832_v28, %v2667_v33  ;;  %v1267_v29 = vmul.f32 %v1203_v3, %v2682_v56  ;;  %v2903_v41 = vpop.f32.mrf.mxu0 }
 0x13a   : > { %v1143_v30 = vadd.f32 1.0, %v2221_v63  ;;  %v2225_v22 = vpop.eup %2224  ;;  %v2895_v35 = vmul.f32 %v1206_v15, %v2703_v46  ;;  %v1268_v18 = vmul.f32 %v1204_v34, %v2708_v31  ;;  %v1026_v27 = vmul.f32 0.7978846, %v962_v42 }
 0x13b   : > { %v773_v32 = vmul.f32 %v2878_v39, %v2878_v39  ;;  %v2901_v62 = vmul.f32 %v1209_v7, %v2725_v49  ;;  %2236 = vtanh.f32 %v1023_v36  ;;  %v1024_v20 = vmul.f32 0.7978846, %v960_v38  ;;  %v2933_v47 = vpop.f32.mrf.mxu0  ;;  %v2951_v38 = vld [vmem:[%s3386_s2] ss:$0 sm:$0xff] }
 0x13c   : > { %v1317_v33 = vpack.c.bf16 %v1264_v60, %v1263_v48  ;;  %v1146_v56 = vadd.f32 1.0, %v2223_v21  ;;  %v2908_v46 = vadd.f32 %v2458_v37, %v2793_v61  ;;  %v1318_v31 = vpack.c.bf16 %v1266_v59, %v2808_v9 }
 0x13d   : > { %v837_v28 = vmul.f32 %v773_v32, %v2878_v39  ;;  %v1207_v3 = vmul.f32 0.5, %v1143_v30  ;;  %v1144_v6 = vadd.f32 1.0, %v2225_v22  ;;  %2238 = vtanh.f32 %v1026_v27  ;;  %v2957_v48 = vpop.f32.mrf.mxu0 }
 0x13e   : > { %2106 = vmatprep.mubr.msk.bf16.mxu1 %vm1362_vm2, %v1317_v33  ;;  %v2914_v49 = vadd.f32 %v2799_v57, %v2458_v37  ;;  %v2227_v0 = vpop.eup %2226  ;;  %v771_v26 = vmul.f32 %v2908_v46, %v2908_v46  ;;  %v2921_v61 = vadd.f32 %v2458_v37, %v2804_v51  ;;  %v2925_v9 = vadd.f32 %v2813_v50, %v2458_v37 }
 0x13f   : > { %v901_v13 = vmul.f32 0.044715, %v837_v28  ;;  %2107 = vmatmul.mubr.msk.bf16.gmra.mxu1 %vm1362_vm2, %v1318_v31  ;;  %2240 = vtanh.f32 %v1024_v20  ;;  %v1319_v24 = vpack.c.bf16 %v1268_v18, %v1267_v29  ;;  %v2931_v44 = vadd.f32 %v2458_v37, %v2830_v53 }
 0x140   : > { %v774_v57 = vmul.f32 %v2914_v49, %v2914_v49  ;;  %v2229_v55 = vpop.eup %2228  ;;  %v835_v51 = vmul.f32 %v771_v26, %v2908_v46  ;;  %v772_v50 = vmul.f32 %v2921_v61, %v2921_v61  ;;  %v777_v34 = vmul.f32 %v2925_v9, %v2925_v9 }
 0x141   : > { %v965_v15 = vadd.f32 %v901_v13, %v2878_v39  ;;  %v1210_v58 = vmul.f32 0.5, %v1146_v56  ;;  %v1147_v17 = vadd.f32 1.0, %v2227_v0  ;;  %2110 = vmatprep.mubr.msk.bf16.mxu1 %vm1362_vm2, %v1319_v24  ;;  %v775_v37 = vmul.f32 %v2931_v44, %v2931_v44 }
 0x142   : > { %v838_v63 = vmul.f32 %v774_v57, %v2914_v49  ;;  %v899_v4 = vmul.f32 0.044715, %v835_v51  ;;  %v836_v11 = vmul.f32 %v772_v50, %v2921_v61  ;;  %v841_v60 = vmul.f32 %v777_v34, %v2925_v9 }
 0x143   : > { %v1029_v53 = vmul.f32 0.7978846, %v965_v15  ;;  %v2231_v7 = vpop.eup %2230  ;;  %v1208_v36 = vmul.f32 0.5, %v1144_v6  ;;  %v839_v42 = vmul.f32 %v775_v37, %v2931_v44  ;;  %v2955_v21 = vadd.f32 %v2951_v38, %v2845_v14 }
 0x144   : > { %v902_v59 = vmul.f32 0.044715, %v838_v63  ;;  %v2233_v29 = vpop.eup %2232  ;;  %v963_v30 = vadd.f32 %v899_v4, %v2908_v46  ;;  %v900_v22 = vmul.f32 0.044715, %v836_v11  ;;  %v1320_v18 = vpack.c.bf16 %v2895_v35, %v2891_v25  ;;  %v2968_v35 = vpop.f32.mrf.mxu0 }
 0x145   : > { %2242 = vtanh.f32 %v1029_v53  ;;  %v2235_v27 = vpop.eup %2234  ;;  %v1149_v32 = vadd.f32 1.0, %v2229_v55  ;;  %v1148_v20 = vadd.f32 1.0, %v2233_v29  ;;  %v905_v56 = vmul.f32 0.044715, %v841_v60 }
 0x146   : > { %v966_v33 = vadd.f32 %v902_v59, %v2914_v49  ;;  %v1211_v28 = vmul.f32 0.5, %v1147_v17  ;;  %v1150_v31 = vadd.f32 1.0, %v2231_v7  ;;  %v964_v14 = vadd.f32 %v900_v22, %v2921_v61 }
 0x147   : > { %v903_v6 = vmul.f32 0.044715, %v839_v42  ;;  %2111 = vmatmul.mubr.msk.bf16.gmra.mxu1 %vm1362_vm2, %v1320_v18  ;;  %v1153_v0 = vadd.f32 1.0, %v2235_v27  ;;  %v1027_v13 = vmul.f32 0.7978846, %v963_v30  ;;  %v969_v26 = vadd.f32 %v905_v56, %v2925_v9 }
 0x148   : > { %v778_v25 = vmul.f32 %v2955_v21, %v2955_v21  ;;  %v2237_v57 = vpop.eup %2236  ;;  %v1271_v24 = vmul.f32 %v1207_v3, %v2745_v8  ;;  %v1212_v55 = vmul.f32 0.5, %v1148_v20  ;;  %v1030_v15 = vmul.f32 0.7978846, %v966_v33 }
 0x149   : > { %v2973_v51 = vadd.f32 %v2951_v38, %v2856_v43  ;;  %v1274_v50 = vmul.f32 %v1210_v58, %v2753_v23  ;;  %v1272_v34 = vmul.f32 %v1208_v36, %v2760_v16  ;;  %v2977_v17 = vmul.f32 0.5, %v1149_v32  ;;  %v2986_v23 = vpop.f32.mrf.mxu0 }
 0x14a   : > { %v1028_v63 = vmul.f32 0.7978846, %v964_v14  ;;  %v2239_v37 = vpop.eup %2238  ;;  %v1275_v53 = vmul.f32 %v1211_v28, %v2781_v10  ;;  %v2980_v4 = vmul.f32 0.5, %v1150_v31  ;;  %v1033_v11 = vmul.f32 0.7978846, %v969_v26 }
 0x14b   : > { %v967_v8 = vadd.f32 %v903_v6, %v2931_v44  ;;  %v2983_v3 = vmul.f32 0.5, %v1153_v0  ;;  %v1151_v60 = vadd.f32 1.0, %v2237_v57  ;;  %2244 = vtanh.f32 %v1027_v13  ;;  %v3006_v32 = vpop.f32.mrf.mxu0 }
 0x14c   : > { %v842_v43 = vmul.f32 %v778_v25, %v2955_v21  ;;  %v2241_v16 = vpop.eup %2240  ;;  %v1276_v58 = vmul.f32 %v1212_v55, %v2824_v40  ;;  %2246 = vtanh.f32 %v1030_v15  ;;  %v776_v10 = vmul.f32 %v2973_v51, %v2973_v51 }
 0x14d   : > { %v2993_v7 = vadd.f32 %v2951_v38, %v2871_v5  ;;  %2248 = vtanh.f32 %v1028_v63  ;;  %v1031_v36 = vmul.f32 0.7978846, %v967_v8  ;;  %v1321_v59 = vpack.c.bf16 %v1272_v34, %v1271_v24 }
 0x14e   : > { %v2997_v42 = vadd.f32 %v2951_v38, %v2881_v54  ;;  %2250 = vtanh.f32 %v1033_v11  ;;  %v906_v29 = vmul.f32 0.044715, %v842_v43  ;;  %v840_v30 = vmul.f32 %v776_v10, %v2973_v51 }
 0x14f   : > { %v781_v40 = vmul.f32 %v2993_v7, %v2993_v7  ;;  %v1154_v22 = vadd.f32 1.0, %v2239_v37  ;;  %v1152_v18 = vadd.f32 1.0, %v2241_v16  ;;  %2114 = vmatprep.mubr.msk.bf16.mxu1 %vm1362_vm2, %v1321_v59  ;;  %v1322_v27 = vpack.c.bf16 %v1274_v50, %v2901_v62 }
 0x150   : > { %v779_v5 = vmul.f32 %v2997_v42, %v2997_v42  ;;  %v904_v54 = vmul.f32 0.044715, %v840_v30  ;;  %v3011_v33 = vadd.f32 %v2951_v38, %v2903_v41  ;;  %v3015_v56 = vadd.f32 %v2951_v38, %v2933_v47 }
 0x151   : > { %v845_v20 = vmul.f32 %v781_v40, %v2993_v7  ;;  %2252 = vtanh.f32 %v1031_v36  ;;  %2115 = vmatmul.mubr.msk.bf16.gmra.mxu1 %vm1362_vm2, %v1322_v27  ;;  %v3021_v62 = vadd.f32 %v2951_v38, %v2957_v48  ;;  %v1323_v14 = vpack.c.bf16 %v1276_v58, %v1275_v53  ;;  %v2076_v48 = vpop.f32.mrf.mxu0 }
 0x152   : > { %v2243_v28 = vpop.eup %2242  ;;  %v843_v31 = vmul.f32 %v779_v5, %v2997_v42  ;;  %v970_v6 = vadd.f32 %v906_v29, %v2955_v21  ;;  %v968_v41 = vadd.f32 %v904_v54, %v2973_v51  ;;  %v782_v47 = vmul.f32 %v3011_v33, %v3011_v33 }
 0x153   : > { %v909_v0 = vmul.f32 0.044715, %v845_v20  ;;  %v1157_v13 = vadd.f32 1.0, %v2243_v28  ;;  %v780_v25 = vmul.f32 %v3015_v56, %v3015_v56  ;;  %v785_v57 = vmul.f32 %v3021_v62, %v3021_v62  ;;  %2118 = vmatprep.mubr.msk.bf16.mxu1 %vm1362_vm2, %v1323_v14  ;;  %v700_v36 = vpop.f32.mrf.mxu0 }
 0x154   : > { %v907_v26 = vmul.f32 0.044715, %v843_v31  ;;  %v1215_v24 = vmul.f32 0.5, %v1151_v60  ;;  %v1218_v55 = vmul.f32 0.5, %v1154_v22  ;;  %v1032_v15 = vmul.f32 0.7978846, %v968_v41 }
 0x155   : > { %v846_v50 = vmul.f32 %v782_v47, %v3011_v33  ;;  %v973_v34 = vadd.f32 %v909_v0, %v2993_v7  ;;  %v844_v37 = vmul.f32 %v780_v25, %v3015_v56  ;;  %v3038_v53 = vadd.f32 %v2951_v38, %v2968_v35 }
 0x156   : > { %v971_v63 = vadd.f32 %v907_v26, %v2997_v42  ;;  %v1216_v11 = vmul.f32 0.5, %v1152_v18  ;;  %v1034_v8 = vmul.f32 0.7978846, %v970_v6  ;;  %2254 = vtanh.f32 %v1032_v15 }
 0x157   : > { %v849_v43 = vmul.f32 %v785_v57, %v3021_v62  ;;  %v1221_v60 = vmul.f32 0.5, %v1157_v13  ;;  %v910_v58 = vmul.f32 0.044715, %v846_v50  ;;  %v783_v10 = vmul.f32 %v3038_v53, %v3038_v53 }
 0x158   : > { %v1035_v16 = vmul.f32 0.7978846, %v971_v63  ;;  %v2245_v59 = vpop.eup %2244  ;;  %v1277_v29 = vmul.f32 %v2977_v17, %v2768_v52  ;;  %v1278_v35 = vmul.f32 %v2980_v4, %v2820_v12  ;;  %v908_v30 = vmul.f32 0.044715, %v844_v37 }
 0x159   : > { %v2247_v40 = vpop.eup %2246  ;;  %v3049_v22 = vmul.f32 %v2983_v3, %v2828_v45  ;;  %v1279_v18 = vmul.f32 %v1215_v24, %v2843_v1  ;;  %v1037_v5 = vmul.f32 0.7978846, %v973_v34  ;;  %v974_v27 = vadd.f32 %v910_v58, %v3011_v33  ;;  %v2077_v1 = vpop.f32.mrf.mxu0 }
 0x15a   : > { %v2249_v54 = vpop.eup %2248  ;;  %v3054_v20 = vmul.f32 %v1218_v55, %v2854_v19  ;;  %2256 = vtanh.f32 %v1034_v8  ;;  %v972_v52 = vadd.f32 %v908_v30, %v3015_v56  ;;  %v913_v17 = vmul.f32 0.044715, %v849_v43 }
 0x15b   : > { %v2251_v12 = vpop.eup %2250  ;;  %v1280_v4 = vmul.f32 %v1216_v11, %v2861_v2  ;;  %v3059_v28 = vmul.f32 %v1221_v60, %v2878_v39  ;;  %2258 = vtanh.f32 %v1035_v16  ;;  %v847_v45 = vmul.f32 %v783_v10, %v3038_v53  ;;  %v703_v55 = vpop.f32.mrf.mxu0 }
 0x15c   : > { %v1155_v3 = vadd.f32 1.0, %v2245_v59  ;;  %v1158_v31 = vadd.f32 1.0, %v2247_v40  ;;  %v1038_v14 = vmul.f32 0.7978846, %v974_v27  ;;  %v1036_v6 = vmul.f32 0.7978846, %v972_v52 }
 0x15d   : > { %v1156_v19 = vadd.f32 1.0, %v2249_v54  ;;  %2260 = vtanh.f32 %v1037_v5  ;;  %v911_v41 = vmul.f32 0.044715, %v847_v45  ;;  %v1324_v0 = vpack.c.bf16 %v1278_v35, %v1277_v29  ;;  %v2080_v59 = vpop.f32.mrf.mxu0 }
 0x15e   : > { %v2253_v47 = vpop.eup %2252  ;;  %v1161_v13 = vadd.f32 1.0, %v2251_v12  ;;  %2262 = vtanh.f32 %v1036_v6  ;;  %v977_v2 = vadd.f32 %v913_v17, %v3021_v62  ;;  %v3065_v39 = vadd.f32 %v2951_v38, %v2986_v23 }
 0x15f   : > { %v975_v26 = vadd.f32 %v911_v41, %v3038_v53  ;;  %2119 = vmatmul.mubr.msk.bf16.gmra.mxu1 %vm1362_vm2, %v1324_v0  ;;  %v3071_v25 = vadd.f32 %v2951_v38, %v3006_v32  ;;  %v3074_v57 = vadd.f32 %v2951_v38, %v2076_v48  ;;  %v1325_v24 = vpack.c.bf16 %v1280_v4, %v1279_v18 }
 0x160   : > { %v1219_v15 = vmul.f32 0.5, %v1155_v3  ;;  %2264 = vtanh.f32 %v1038_v14  ;;  %v786_v50 = vmul.f32 %v3065_v39, %v3065_v39  ;;  %v3079_v23 = vadd.f32 %v2951_v38, %v700_v36 }
 0x161   : > { %v1222_v34 = vmul.f32 0.5, %v1158_v31  ;;  %v1039_v63 = vmul.f32 0.7978846, %v975_v26  ;;  %v784_v37 = vmul.f32 %v3071_v25, %v3071_v25  ;;  %v789_v32 = vmul.f32 %v3074_v57, %v3074_v57  ;;  %2122 = vmatprep.mubr.msk.bf16.mxu1 %vm1362_vm2, %v1325_v24 }
 0x162   : > { %v1220_v48 = vmul.f32 0.5, %v1156_v19  ;;  %v850_v11 = vmul.f32 %v786_v50, %v3065_v39  ;;  %v787_v8 = vmul.f32 %v3079_v23, %v3079_v23  ;;  %v3090_v43 = vadd.f32 %v2951_v38, %v2077_v1 }
 0x163   : > { %v2255_v60 = vpop.eup %2254  ;;  %v1225_v16 = vmul.f32 0.5, %v1161_v13  ;;  %v1159_v58 = vadd.f32 1.0, %v2253_v47  ;;  %v1041_v10 = vmul.f32 0.7978846, %v977_v2  ;;  %v848_v36 = vmul.f32 %v784_v37, %v3071_v25 }
 0x164   : > { %v914_v29 = vmul.f32 0.044715, %v850_v11  ;;  %v853_v35 = vmul.f32 %v789_v32, %v3074_v57  ;;  %v851_v30 = vmul.f32 %v787_v8, %v3079_v23  ;;  %v790_v40 = vmul.f32 %v3090_v43, %v3090_v43 }
 0x165   : > { %2266 = vtanh.f32 %v1039_v63  ;;  %v912_v18 = vmul.f32 0.044715, %v848_v36  ;;  %v1326_v5 = vpack.c.bf16 %v3054_v20, %v3049_v22  ;;  %v3100_v27 = vadd.f32 %v2951_v38, %v703_v55  ;;  %v716_v20 = vpop.f32.mrf.mxu0 }
 0x166   : > { %v1283_v54 = vmul.f32 %v1219_v15, %v2908_v46  ;;  %v1160_v52 = vadd.f32 1.0, %v2255_v60  ;;  %v978_v17 = vadd.f32 %v914_v29, %v3065_v39  ;;  %v915_v12 = vmul.f32 0.044715, %v851_v30 }
 0x167   : > { %v2257_v4 = vpop.eup %2256  ;;  %v1286_v45 = vmul.f32 %v1222_v34, %v2914_v49  ;;  %v1284_v1 = vmul.f32 %v1220_v48, %v2921_v61  ;;  %v976_v3 = vadd.f32 %v912_v18, %v3071_v25  ;;  %2123 = vmatmul.mubr.msk.bf16.gmra.mxu1 %vm1362_vm2, %v1326_v5  ;;  %v854_v22 = vmul.f32 %v790_v40, %v3090_v43  ;;  %v2081_v15 = vpop.f32.mrf.mxu0 }
 0x168   : > { %v2259_v31 = vpop.eup %2258  ;;  %v3110_v14 = vmul.f32 %v1225_v16, %v2925_v9  ;;  %v1042_v46 = vmul.f32 0.7978846, %v978_v17  ;;  %v917_v6 = vmul.f32 0.044715, %v853_v35  ;;  %v979_v19 = vadd.f32 %v915_v12, %v3079_v23 }
 0x169   : > { %v1223_v41 = vmul.f32 0.5, %v1159_v58  ;;  %2268 = vtanh.f32 %v1041_v10  ;;  %v1040_v49 = vmul.f32 0.7978846, %v976_v3  ;;  %v788_v61 = vmul.f32 %v3100_v27, %v3100_v27  ;;  %v719_v35 = vpop.f32.mrf.mxu0 }
 0x16a   : > { %v2261_v0 = vpop.eup %2260  ;;  %v1224_v47 = vmul.f32 0.5, %v1160_v52  ;;  %2270 = vtanh.f32 %v1042_v46  ;;  %v1043_v13 = vmul.f32 0.7978846, %v979_v19  ;;  %v918_v2 = vmul.f32 0.044715, %v854_v22 }
 0x16b   : > { %v2263_v26 = vpop.eup %2262  ;;  %v1162_v24 = vadd.f32 1.0, %v2257_v4  ;;  %v1163_v55 = vadd.f32 1.0, %v2259_v31  ;;  %2272 = vtanh.f32 %v1040_v49  ;;  %v852_v9 = vmul.f32 %v788_v61, %v3100_v27 }
 0x16c   : > { %v1164_v50 = vadd.f32 1.0, %v2263_v26  ;;  %v981_v34 = vadd.f32 %v917_v6, %v3074_v57  ;;  %v982_v63 = vadd.f32 %v918_v2, %v3090_v43  ;;  %v3119_v37 = vadd.f32 %v2951_v38, %v2080_v59 }
 0x16d   : > { %v2265_v32 = vpop.eup %2264  ;;  %v1287_v48 = vmul.f32 %v1223_v41, %v2931_v44  ;;  %2274 = vtanh.f32 %v1043_v13  ;;  %v916_v11 = vmul.f32 0.044715, %v852_v9  ;;  %v1327_v8 = vpack.c.bf16 %v1284_v1, %v1283_v54 }
 0x16e   : > { %v1288_v60 = vmul.f32 %v1224_v47, %v2973_v51  ;;  %v1228_v16 = vmul.f32 0.5, %v1164_v50  ;;  %v1046_v58 = vmul.f32 0.7978846, %v982_v63  ;;  %v793_v10 = vmul.f32 %v3119_v37, %v3119_v37 }
 0x16f   : > { %v1226_v36 = vmul.f32 0.5, %v1162_v24  ;;  %v980_v29 = vadd.f32 %v916_v11, %v3100_v27  ;;  %2126 = vmatprep.mubr.msk.bf16.mxu1 %vm1362_vm2, %v1327_v8  ;;  %v3128_v59 = vadd.f32 %v2951_v38, %v716_v20  ;;  %v1328_v44 = vpack.c.bf16 %v1286_v45, %v3059_v28 }
 0x170   : > { %v1227_v30 = vmul.f32 0.5, %v1163_v55  ;;  %v1166_v40 = vadd.f32 1.0, %v2265_v32  ;;  %v1045_v18 = vmul.f32 0.7978846, %v981_v34  ;;  %v857_v51 = vmul.f32 %v793_v10, %v3119_v37 }
 0x171   : > { %v1292_v5 = vmul.f32 %v1228_v16, %v3015_v56  ;;  %v1044_v54 = vmul.f32 0.7978846, %v980_v29  ;;  %v791_v52 = vmul.f32 %v3128_v59, %v3128_v59  ;;  %2127 = vmatmul.mubr.msk.bf16.gmra.mxu1 %vm1362_vm2, %v1328_v44  ;;  %v3137_v17 = vadd.f32 %v2951_v38, %v2081_v15 }
 0x172   : > { %v2267_v12 = vpop.eup %2266  ;;  %2276 = vtanh.f32 %v1046_v58  ;;  %v921_v28 = vmul.f32 0.044715, %v857_v51  ;;  %v3140_v4 = vadd.f32 %v2951_v38, %v719_v35  ;;  %v1329_v45 = vpack.c.bf16 %v1288_v60, %v1287_v48 }
 0x173   : > { %v1290_v1 = vmul.f32 %v1226_v36, %v2955_v21  ;;  %2278 = vtanh.f32 %v1044_v54  ;;  %v855_v56 = vmul.f32 %v791_v52, %v3128_v59  ;;  %v794_v3 = vmul.f32 %v3137_v17, %v3137_v17 }
 0x174   : > { %v1165_v22 = vadd.f32 1.0, %v2261_v0  ;;  %v1291_v20 = vmul.f32 %v1227_v30, %v2997_v42  ;;  %v985_v31 = vadd.f32 %v921_v28, %v3119_v37  ;;  %v792_v46 = vmul.f32 %v3140_v4, %v3140_v4  ;;  %2130 = vmatprep.mubr.msk.bf16.mxu1 %vm1362_vm2, %v1329_v45 }
 0x175   : > { %v1167_v38 = vadd.f32 1.0, %v2267_v12  ;;  %2280 = vtanh.f32 %v1045_v18  ;;  %v919_v6 = vmul.f32 0.044715, %v855_v56  ;;  %v858_v21 = vmul.f32 %v794_v3, %v3137_v17 }
 0x176   : > { %v2269_v19 = vpop.eup %2268  ;;  %v1230_v41 = vmul.f32 0.5, %v1166_v40  ;;  %v856_v49 = vmul.f32 %v792_v46, %v3140_v4  ;;  %v1331_v61 = vpack.c.bf16 %v1292_v5, %v1291_v20  ;;  %v1330_v13 = vpack.c.bf16 %v1290_v1, %v3110_v14 }
 0x177   : > { %v2271_v0 = vpop.eup %2270  ;;  %v983_v42 = vadd.f32 %v919_v6, %v3128_v59  ;;  %v922_v47 = vmul.f32 0.044715, %v858_v21  ;;  %v1229_v26 = vmul.f32 0.5, %v1165_v22  ;;  %v1049_v24 = vmul.f32 0.7978846, %v985_v31 }
 0x178   : > { %v2273_v2 = vpop.eup %2272  ;;  %v920_v55 = vmul.f32 0.044715, %v856_v49  ;;  %v1231_v9 = vmul.f32 0.5, %v1167_v38  ;;  %v1294_v32 = vmul.f32 %v1230_v41, %v3011_v33  ;;  %v1170_v11 = vadd.f32 1.0, %v2271_v0 }
 0x179   : > { %v1168_v15 = vadd.f32 1.0, %v2273_v2  ;;  %v1047_v50 = vmul.f32 0.7978846, %v983_v42  ;;  %v986_v34 = vadd.f32 %v922_v47, %v3137_v17  ;;  %2131 = vmatmul.mubr.msk.bf16.gmra.mxu1 %vm1362_vm2, %v1330_v13  ;;  %v1293_v60 = vmul.f32 %v1229_v26, %v2993_v7  ;;  %v3180_v26 = vld [vmem:[#allocation2] ss:$0 sm:$0xff] }
 0x17a   : > { %v2275_v63 = vpop.eup %2274  ;;  %v984_v48 = vadd.f32 %v920_v55, %v3140_v4  ;;  %2134 = vmatprep.mubr.msk.bf16.mxu1 %vm1362_vm2, %v1331_v61  ;;  %v1169_v16 = vadd.f32 1.0, %v2269_v19  ;;  %v1295_v10 = vmul.f32 %v1231_v9, %v3038_v53  ;;  %v1234_v44 = vmul.f32 0.5, %v1170_v11 }
 0x17b   : > { %v1232_v14 = vmul.f32 0.5, %v1168_v15  ;;  %2282 = vtanh.f32 %v1047_v50  ;;  %v1050_v8 = vmul.f32 0.7978846, %v986_v34  ;;  %v1171_v29 = vadd.f32 1.0, %v2275_v63 }
 0x17c   : > { %2284 = vtanh.f32 %v1049_v24  ;;  %v1048_v58 = vmul.f32 0.7978846, %v984_v48  ;;  %v1332_v35 = vpack.c.bf16 %v1294_v32, %v1293_v60  ;;  %v1233_v18 = vmul.f32 0.5, %v1169_v16 }
 0x17d   : > { %v1296_v36 = vmul.f32 %v1232_v14, %v3071_v25  ;;  %2286 = vtanh.f32 %v1050_v8  ;;  %v1235_v51 = vmul.f32 0.5, %v1171_v29  ;;  %v1298_v53 = vmul.f32 %v1234_v44, %v3065_v39 }
 0x17e   : > { %2288 = vtanh.f32 %v1048_v58  ;;  %v1297_v52 = vmul.f32 %v1233_v18, %v3021_v62 }
 0x17f   : > { %v2277_v33 = vpop.eup %2276  ;;  %v1333_v30 = vpack.c.bf16 %v1296_v36, %v1295_v10  ;;  %v1299_v28 = vmul.f32 %v1235_v51, %v3079_v23 }
 0x180   : > { %v2279_v40 = vpop.eup %2278  ;;  %v1174_v54 = vadd.f32 1.0, %v2277_v33  ;;  %v1334_v56 = vpack.c.bf16 %v1298_v53, %v1297_v52 }
 0x181   : > { %v1172_v5 = vadd.f32 1.0, %v2279_v40  ;;  %2135 = vmatmul.mubr.msk.bf16.gmra.mxu1 %vm1362_vm2, %v1332_v35 }
 0x182   : > { %v2281_v7 = vpop.eup %2280  ;;  %2138 = vmatprep.mubr.msk.bf16.mxu1 %vm1362_vm2, %v1333_v30  ;;  %v1238_v1 = vmul.f32 0.5, %v1174_v54 }
 0x183   : > { %v1236_v25 = vmul.f32 0.5, %v1172_v5  ;;  %v1173_v12 = vadd.f32 1.0, %v2281_v7 }
 0x184   : > { %v1302_v62 = vmul.f32 %v1238_v1, %v3090_v43 }
 0x185   : > { %v1300_v45 = vmul.f32 %v1236_v25, %v3100_v27  ;;  %v1237_v31 = vmul.f32 0.5, %v1173_v12 }
 0x187   : > { %v1335_v3 = vpack.c.bf16 %v1300_v45, %v1299_v28  ;;  %v1301_v27 = vmul.f32 %v1237_v31, %v3074_v57 }
 0x188   : > { %v2283_v22 = vpop.eup %2282 }
 0x189   : > { %v2285_v20 = vpop.eup %2284  ;;  %v1175_v46 = vadd.f32 1.0, %v2283_v22  ;;  %2139 = vmatmul.mubr.msk.bf16.gmra.mxu1 %vm1362_vm2, %v1334_v56  ;;  %v1336_v61 = vpack.c.bf16 %v1302_v62, %v1301_v27 }
 0x18a   : > { %v2287_v38 = vpop.eup %2286  ;;  %2142 = vmatprep.mubr.msk.bf16.mxu1 %vm1362_vm2, %v1335_v3  ;;  %v1177_v19 = vadd.f32 1.0, %v2285_v20 }
 0x18b   : > { %v2289_v39 = vpop.eup %2288  ;;  %v1178_v6 = vadd.f32 1.0, %v2287_v38  ;;  %v1239_v21 = vmul.f32 0.5, %v1175_v46 }
 0x18c   : > { %v1176_v23 = vadd.f32 1.0, %v2289_v39  ;;  %v1241_v47 = vmul.f32 0.5, %v1177_v19 }
 0x18d   : > { %v1242_v49 = vmul.f32 0.5, %v1178_v6  ;;  %v1303_v0 = vmul.f32 %v1239_v21, %v3128_v59 }
 0x18e   : > { %v1240_v41 = vmul.f32 0.5, %v1176_v23  ;;  %v1305_v2 = vmul.f32 %v1241_v47, %v3119_v37 }
 0x18f   : > { %v1306_v43 = vmul.f32 %v1242_v49, %v3137_v17 }
 0x190   : > { %v1304_v42 = vmul.f32 %v1240_v41, %v3140_v4 }
 0x191   : > { %2143 = vmatmul.mubr.msk.bf16.gmra.mxu1 %vm1362_vm2, %v1336_v61  ;;  %v1338_v57 = vpack.c.bf16 %v1306_v43, %v1305_v2 }
 0x192   : > { %v1337_v13 = vpack.c.bf16 %v1304_v42, %v1303_v0 }
 0x194   : > { %2146 = vmatprep.mubr.msk.bf16.mxu1 %vm1362_vm2, %v1337_v13 }
 0x199   : > { %2147 = vmatmul.mubr.msk.bf16.gmra.mxu1 %vm1362_vm2, %v1338_v57 }
 0x1cc   : > { %v2088_v59 = vpop.f32.mrf.mxu1 }
 0x1cd   : > { %v1502_v37 = vadd.f32 %v2088_v59, %v3180_v26 }
 0x1ce   : > { %v1493_v17 = vpop.f32.mrf.mxu1 }
 0x1cf   : > { %1751 = vst.msk [vmem:[%s3187_s13 + $0x10] sm:$0xff] %vm1748_vm3, %v1502_v37  ;;  %v1494_v4 = vadd.f32 %v3180_v26, %v1493_v17 }
 0x1d0   : > { %v2089_v24 = vpop.f32.mrf.mxu1 }
 0x1d1   : > { %1749 = vst.msk [vmem:[%s3187_s13] sm:$0xff] %vm1748_vm3, %v1494_v4  ;;  %v1505_v55 = vadd.f32 %v2089_v24, %v3180_v26 }
 0x1d2   : > { %v1496_v9 = vpop.f32.mrf.mxu1 }
 0x1d3   : > { %1752 = vst.msk [vmem:[%s3187_s13 + $0x18] sm:$0xff] %vm1748_vm3, %v1505_v55  ;;  %v1497_v15 = vadd.f32 %v3180_v26, %v1496_v9 }
 0x1d4   : > { %v2092_v50 = vpop.f32.mrf.mxu1 }
 0x1d5   : > { %1750 = vst.msk [vmem:[%s3187_s13 + $0x8] sm:$0xff] %vm1748_vm3, %v1497_v15  ;;  %v1518_v34 = vadd.f32 %v2092_v50, %v3180_v26 }
 0x1d6   : > { %v1509_v63 = vpop.f32.mrf.mxu1 }
 0x1d7   : > { %1755 = vst.msk [vmem:[%s3187_s13 + $0x30] sm:$0xff] %vm1748_vm3, %v1518_v34  ;;  %v1510_v32 = vadd.f32 %v3180_v26, %v1509_v63 }
 0x1d8   : > { %v2093_v48 = vpop.f32.mrf.mxu1 }
 0x1d9   : > { %1753 = vst.msk [vmem:[%s3187_s13 + $0x20] sm:$0xff] %vm1748_vm3, %v1510_v32  ;;  %v1521_v11 = vadd.f32 %v2093_v48, %v3180_v26 }
 0x1da   : > { %v1512_v14 = vpop.f32.mrf.mxu1 }
 0x1db   : > { %1756 = vst.msk [vmem:[%s3187_s13 + $0x38] sm:$0xff] %vm1748_vm3, %v1521_v11  ;;  %v1513_v8 = vadd.f32 %v3180_v26, %v1512_v14 }
 0x1dd   : > { %1754 = vst.msk [vmem:[%s3187_s13 + $0x28] sm:$0xff] %vm1748_vm3, %v1513_v8 }
 0x1de   : > { %v2096_v60 = vpop.f32.mrf.mxu1 }
 0x1df   : > { %v1534_v16 = vadd.f32 %v2096_v60, %v3180_v26 }
 0x1e0   : > { %v1525_v58 = vpop.f32.mrf.mxu1 }
 0x1e1   : > { %1759 = vst.msk [vmem:[%s3187_s13 + $0x50] sm:$0xff] %vm1748_vm3, %v1534_v16  ;;  %v1526_v10 = vadd.f32 %v3180_v26, %v1525_v58 }
 0x1e2   : > { %v2097_v36 = vpop.f32.mrf.mxu1 }
 0x1e3   : > { %1757 = vst.msk [vmem:[%s3187_s13 + $0x40] sm:$0xff] %vm1748_vm3, %v1526_v10  ;;  %v1537_v29 = vadd.f32 %v2097_v36, %v3180_v26 }
 0x1e4   : > { %v1528_v33 = vpop.f32.mrf.mxu1 }
 0x1e5   : > { %1760 = vst.msk [vmem:[%s3187_s13 + $0x58] sm:$0xff] %vm1748_vm3, %v1537_v29  ;;  %v1529_v44 = vadd.f32 %v3180_v26, %v1528_v33 }
 0x1e6   : > { %v2100_v35 = vpop.f32.mrf.mxu1 }
 0x1e7   : > { %1758 = vst.msk [vmem:[%s3187_s13 + $0x48] sm:$0xff] %vm1748_vm3, %v1529_v44  ;;  %v1550_v30 = vadd.f32 %v2100_v35, %v3180_v26 }
 0x1e8   : > { %v1541_v40 = vpop.f32.mrf.mxu1 }
 0x1e9   : > { %1763 = vst.msk [vmem:[%s3187_s13 + $0x70] sm:$0xff] %vm1748_vm3, %v1550_v30  ;;  %v1542_v18 = vadd.f32 %v3180_v26, %v1541_v40 }
 0x1ea   : > { %v2101_v51 = vpop.f32.mrf.mxu1 }
 0x1eb   : > { %1761 = vst.msk [vmem:[%s3187_s13 + $0x60] sm:$0xff] %vm1748_vm3, %v1542_v18  ;;  %v1553_v5 = vadd.f32 %v2101_v51, %v3180_v26 }
 0x1ec   : > { %v1544_v7 = vpop.f32.mrf.mxu1 }
 0x1ed   : > { %1764 = vst.msk [vmem:[%s3187_s13 + $0x78] sm:$0xff] %vm1748_vm3, %v1553_v5  ;;  %v1545_v53 = vadd.f32 %v3180_v26, %v1544_v7 }
 0x1ef   : > { %1762 = vst.msk [vmem:[%s3187_s13 + $0x68] sm:$0xff] %vm1748_vm3, %v1545_v53 }
 0x1f0   : > { %v2104_v54 = vpop.f32.mrf.mxu1 }
 0x1f1   : > { %v1566_v25 = vadd.f32 %v2104_v54, %v3180_v26 }
 0x1f2   : > { %v1557_v52 = vpop.f32.mrf.mxu1 }
 0x1f3   : > { %1767 = vst.msk [vmem:[%s3187_s13 + $0x90] sm:$0xff] %vm1748_vm3, %v1566_v25  ;;  %v1558_v12 = vadd.f32 %v3180_v26, %v1557_v52 }
 0x1f4   : > { %v2105_v28 = vpop.f32.mrf.mxu1 }
 0x1f5   : > { %1765 = vst.msk [vmem:[%s3187_s13 + $0x80] sm:$0xff] %vm1748_vm3, %v1558_v12  ;;  %v1569_v45 = vadd.f32 %v2105_v28, %v3180_v26 }
 0x1f6   : > { %v1560_v1 = vpop.f32.mrf.mxu1 }
 0x1f7   : > { %1768 = vst.msk [vmem:[%s3187_s13 + $0x98] sm:$0xff] %vm1748_vm3, %v1569_v45  ;;  %v1561_v56 = vadd.f32 %v3180_v26, %v1560_v1 }
 0x1f9   : > { %1766 = vst.msk [vmem:[%s3187_s13 + $0x88] sm:$0xff] %vm1748_vm3, %v1561_v56 }
 0x1ff   : > { %v2108_v3 = vpop.f32.mrf.mxu1 }
 0x200   : > { %v1582_v22 = vadd.f32 %v2108_v3, %v3180_v26 }
 0x201   : > { %v1573_v20 = vpop.f32.mrf.mxu1 }
 0x202   : > { %1771 = vst.msk [vmem:[%s3187_s13 + $0xb0] sm:$0xff] %vm1748_vm3, %v1582_v22  ;;  %v1574_v31 = vadd.f32 %v3180_v26, %v1573_v20 }
 0x203   : > { %v2109_v46 = vpop.f32.mrf.mxu1 }
 0x204   : > { %1769 = vst.msk [vmem:[%s3187_s13 + $0xa0] sm:$0xff] %vm1748_vm3, %v1574_v31  ;;  %v1585_v38 = vadd.f32 %v2109_v46, %v3180_v26 }
 0x205   : > { %v1576_v39 = vpop.f32.mrf.mxu1 }
 0x206   : > { %1772 = vst.msk [vmem:[%s3187_s13 + $0xb8] sm:$0xff] %vm1748_vm3, %v1585_v38  ;;  %v1577_v62 = vadd.f32 %v3180_v26, %v1576_v39 }
 0x207   : > { %v2112_v6 = vpop.f32.mrf.mxu1 }
 0x208   : > { %1770 = vst.msk [vmem:[%s3187_s13 + $0xa8] sm:$0xff] %vm1748_vm3, %v1577_v62  ;;  %v1598_v21 = vadd.f32 %v2112_v6, %v3180_v26 }
 0x209   : > { %v1589_v23 = vpop.f32.mrf.mxu1 }
 0x20a   : > { %1775 = vst.msk [vmem:[%s3187_s13 + $0xd0] sm:$0xff] %vm1748_vm3, %v1598_v21  ;;  %v1590_v27 = vadd.f32 %v3180_v26, %v1589_v23 }
 0x20b   : > { %v2113_v19 = vpop.f32.mrf.mxu1 }
 0x20c   : > { %1773 = vst.msk [vmem:[%s3187_s13 + $0xc0] sm:$0xff] %vm1748_vm3, %v1590_v27  ;;  %v1601_v41 = vadd.f32 %v2113_v19, %v3180_v26 }
 0x20d   : > { %v1592_v49 = vpop.f32.mrf.mxu1 }
 0x20e   : > { %1776 = vst.msk [vmem:[%s3187_s13 + $0xd8] sm:$0xff] %vm1748_vm3, %v1601_v41  ;;  %v1593_v61 = vadd.f32 %v3180_v26, %v1592_v49 }
 0x210   : > { %1774 = vst.msk [vmem:[%s3187_s13 + $0xc8] sm:$0xff] %vm1748_vm3, %v1593_v61 }
 0x211   : > { %v2116_v0 = vpop.f32.mrf.mxu1 }
 0x212   : > { %v1614_v42 = vadd.f32 %v2116_v0, %v3180_v26 }
 0x213   : > { %v1605_v47 = vpop.f32.mrf.mxu1 }
 0x214   : > { %1779 = vst.msk [vmem:[%s3187_s13 + $0xf0] sm:$0xff] %vm1748_vm3, %v1614_v42  ;;  %v1606_v13 = vadd.f32 %v3180_v26, %v1605_v47 }
 0x215   : > { %v2117_v43 = vpop.f32.mrf.mxu1 }
 0x216   : > { %1777 = vst.msk [vmem:[%s3187_s13 + $0xe0] sm:$0xff] %vm1748_vm3, %v1606_v13  ;;  %v1617_v2 = vadd.f32 %v2117_v43, %v3180_v26 }
 0x217   : > { %v1608_v57 = vpop.f32.mrf.mxu1 }
 0x218   : > { %1780 = vst.msk [vmem:[%s3187_s13 + $0xf8] sm:$0xff] %vm1748_vm3, %v1617_v2  ;;  %v1609_v59 = vadd.f32 %v3180_v26, %v1608_v57 }
 0x21a   : > { %1778 = vst.msk [vmem:[%s3187_s13 + $0xe8] sm:$0xff] %vm1748_vm3, %v1609_v59 }
 0x21f   : > { %v2120_v37 = vpop.f32.mrf.mxu1 }
 0x220   : > { %v1630_v17 = vadd.f32 %v2120_v37, %v3180_v26 }
 0x221   : > { %v1621_v4 = vpop.f32.mrf.mxu1 }
 0x222   : > { %1783 = vst.msk [vmem:[%s3187_s13 + $0x110] sm:$0xff] %vm1748_vm3, %v1630_v17  ;;  %v1622_v24 = vadd.f32 %v3180_v26, %v1621_v4 }
 0x223   : > { %v2121_v55 = vpop.f32.mrf.mxu1 }
 0x224   : > { %1781 = vst.msk [vmem:[%s3187_s13 + $0x100] sm:$0xff] %vm1748_vm3, %v1622_v24  ;;  %v1633_v9 = vadd.f32 %v2121_v55, %v3180_v26 }
 0x225   : > { %v1624_v15 = vpop.f32.mrf.mxu1 }
 0x226   : > { %1784 = vst.msk [vmem:[%s3187_s13 + $0x118] sm:$0xff] %vm1748_vm3, %v1633_v9  ;;  %v1625_v50 = vadd.f32 %v3180_v26, %v1624_v15 }
 0x227   : > { %v2124_v34 = vpop.f32.mrf.mxu1 }
 0x228   : > { %1782 = vst.msk [vmem:[%s3187_s13 + $0x108] sm:$0xff] %vm1748_vm3, %v1625_v50  ;;  %v1646_v63 = vadd.f32 %v2124_v34, %v3180_v26 }
 0x229   : > { %v1637_v32 = vpop.f32.mrf.mxu1 }
 0x22a   : > { %1787 = vst.msk [vmem:[%s3187_s13 + $0x130] sm:$0xff] %vm1748_vm3, %v1646_v63  ;;  %v1638_v48 = vadd.f32 %v3180_v26, %v1637_v32 }
 0x22b   : > { %v2125_v11 = vpop.f32.mrf.mxu1 }
 0x22c   : > { %1785 = vst.msk [vmem:[%s3187_s13 + $0x120] sm:$0xff] %vm1748_vm3, %v1638_v48  ;;  %v1649_v14 = vadd.f32 %v2125_v11, %v3180_v26 }
 0x22d   : > { %v1640_v8 = vpop.f32.mrf.mxu1 }
 0x22e   : > { %1788 = vst.msk [vmem:[%s3187_s13 + $0x138] sm:$0xff] %vm1748_vm3, %v1649_v14  ;;  %v1641_v60 = vadd.f32 %v3180_v26, %v1640_v8 }
 0x230   : > { %1786 = vst.msk [vmem:[%s3187_s13 + $0x128] sm:$0xff] %vm1748_vm3, %v1641_v60 }
 0x231   : > { %v2128_v16 = vpop.f32.mrf.mxu1 }
 0x232   : > { %v1662_v58 = vadd.f32 %v2128_v16, %v3180_v26 }
 0x233   : > { %v1653_v10 = vpop.f32.mrf.mxu1 }
 0x234   : > { %1791 = vst.msk [vmem:[%s3187_s13 + $0x150] sm:$0xff] %vm1748_vm3, %v1662_v58  ;;  %v1654_v36 = vadd.f32 %v3180_v26, %v1653_v10 }
 0x235   : > { %v2129_v29 = vpop.f32.mrf.mxu1 }
 0x236   : > { %1789 = vst.msk [vmem:[%s3187_s13 + $0x140] sm:$0xff] %vm1748_vm3, %v1654_v36  ;;  %v1665_v33 = vadd.f32 %v2129_v29, %v3180_v26 }
 0x237   : > { %v1656_v44 = vpop.f32.mrf.mxu1 }
 0x238   : > { %1792 = vst.msk [vmem:[%s3187_s13 + $0x158] sm:$0xff] %vm1748_vm3, %v1665_v33  ;;  %v1657_v35 = vadd.f32 %v3180_v26, %v1656_v44 }
 0x239   : > { %v2132_v30 = vpop.f32.mrf.mxu1 }
 0x23a   : > { %1790 = vst.msk [vmem:[%s3187_s13 + $0x148] sm:$0xff] %vm1748_vm3, %v1657_v35  ;;  %v1678_v40 = vadd.f32 %v2132_v30, %v3180_v26 }
 0x23b   : > { %v1669_v18 = vpop.f32.mrf.mxu1 }
 0x23c   : > { %1795 = vst.msk [vmem:[%s3187_s13 + $0x170] sm:$0xff] %vm1748_vm3, %v1678_v40  ;;  %v1670_v51 = vadd.f32 %v3180_v26, %v1669_v18 }
 0x23d   : > { %v2133_v5 = vpop.f32.mrf.mxu1 }
 0x23e   : > { %1793 = vst.msk [vmem:[%s3187_s13 + $0x160] sm:$0xff] %vm1748_vm3, %v1670_v51  ;;  %v1681_v7 = vadd.f32 %v2133_v5, %v3180_v26 }
 0x23f   : > { %v1672_v53 = vpop.f32.mrf.mxu1 }
 0x240   : > { %1796 = vst.msk [vmem:[%s3187_s13 + $0x178] sm:$0xff] %vm1748_vm3, %v1681_v7  ;;  %v1673_v54 = vadd.f32 %v3180_v26, %v1672_v53 }
 0x241   : > { %v2136_v25 = vpop.f32.mrf.mxu1 }
 0x242   : > { %1794 = vst.msk [vmem:[%s3187_s13 + $0x168] sm:$0xff] %vm1748_vm3, %v1673_v54  ;;  %v1694_v52 = vadd.f32 %v2136_v25, %v3180_v26 }
 0x243   : > { %v1685_v12 = vpop.f32.mrf.mxu1 }
 0x244   : > { %1799 = vst.msk [vmem:[%s3187_s13 + $0x190] sm:$0xff] %vm1748_vm3, %v1694_v52  ;;  %v1686_v28 = vadd.f32 %v3180_v26, %v1685_v12 }
 0x245   : > { %v2137_v45 = vpop.f32.mrf.mxu1 }
 0x246   : > { %1797 = vst.msk [vmem:[%s3187_s13 + $0x180] sm:$0xff] %vm1748_vm3, %v1686_v28  ;;  %v1697_v1 = vadd.f32 %v2137_v45, %v3180_v26 }
 0x247   : > { %v1688_v56 = vpop.f32.mrf.mxu1 }
 0x248   : > { %1800 = vst.msk [vmem:[%s3187_s13 + $0x198] sm:$0xff] %vm1748_vm3, %v1697_v1  ;;  %v1689_v3 = vadd.f32 %v3180_v26, %v1688_v56 }
 0x249   : > { %v2140_v22 = vpop.f32.mrf.mxu1 }
 0x24a   : > { %1798 = vst.msk [vmem:[%s3187_s13 + $0x188] sm:$0xff] %vm1748_vm3, %v1689_v3  ;;  %v1710_v20 = vadd.f32 %v2140_v22, %v3180_v26 }
 0x24b   : > { %v1701_v31 = vpop.f32.mrf.mxu1 }
 0x24c   : > { %1803 = vst.msk [vmem:[%s3187_s13 + $0x1b0] sm:$0xff] %vm1748_vm3, %v1710_v20  ;;  %v1702_v46 = vadd.f32 %v3180_v26, %v1701_v31 }
 0x24d   : > { %v2141_v38 = vpop.f32.mrf.mxu1 }
 0x24e   : > { %1801 = vst.msk [vmem:[%s3187_s13 + $0x1a0] sm:$0xff] %vm1748_vm3, %v1702_v46  ;;  %v1713_v39 = vadd.f32 %v2141_v38, %v3180_v26 }
 0x24f   : > { %v1704_v62 = vpop.f32.mrf.mxu1 }
 0x250   : > { %1804 = vst.msk [vmem:[%s3187_s13 + $0x1b8] sm:$0xff] %vm1748_vm3, %v1713_v39  ;;  %v1705_v6 = vadd.f32 %v3180_v26, %v1704_v62 }
 0x251   : > { %v2144_v21 = vpop.f32.mrf.mxu1 }
 0x252   : > { %1802 = vst.msk [vmem:[%s3187_s13 + $0x1a8] sm:$0xff] %vm1748_vm3, %v1705_v6  ;;  %v1726_v23 = vadd.f32 %v2144_v21, %v3180_v26 }
 0x253   : > { %v1717_v27 = vpop.f32.mrf.mxu1 }
 0x254   : > { %1807 = vst.msk [vmem:[%s3187_s13 + $0x1d0] sm:$0xff] %vm1748_vm3, %v1726_v23  ;;  %v1718_v19 = vadd.f32 %v3180_v26, %v1717_v27 }
 0x255   : > { %v2145_v41 = vpop.f32.mrf.mxu1 }
 0x256   : > { %1805 = vst.msk [vmem:[%s3187_s13 + $0x1c0] sm:$0xff] %vm1748_vm3, %v1718_v19  ;;  %v1729_v49 = vadd.f32 %v2145_v41, %v3180_v26 }
 0x257   : > { %v1720_v61 = vpop.f32.mrf.mxu1 }
 0x258   : > { %1808 = vst.msk [vmem:[%s3187_s13 + $0x1d8] sm:$0xff] %vm1748_vm3, %v1729_v49  ;;  %v1721_v0 = vadd.f32 %v3180_v26, %v1720_v61 }
 0x259   : > { %v2148_v42 = vpop.f32.mrf.mxu1 }
 0x25a   : > { %1806 = vst.msk [vmem:[%s3187_s13 + $0x1c8] sm:$0xff] %vm1748_vm3, %v1721_v0  ;;  %v1742_v47 = vadd.f32 %v2148_v42, %v3180_v26 }
 0x25b   : > { %v1733_v13 = vpop.f32.mrf.mxu1 }
 0x25c   : > { %1811 = vst.msk [vmem:[%s3187_s13 + $0x1f0] sm:$0xff] %vm1748_vm3, %v1742_v47  ;;  %v1734_v43 = vadd.f32 %v3180_v26, %v1733_v13 }
 0x25d   : > { %v2149_v2 = vpop.f32.mrf.mxu1 }
 0x25e   : > { %1809 = vst.msk [vmem:[%s3187_s13 + $0x1e0] sm:$0xff] %vm1748_vm3, %v1734_v43  ;;  %v1745_v57 = vadd.f32 %v2149_v2, %v3180_v26 }
 0x25f   : > { %v1736_v59 = vpop.f32.mrf.mxu1 }
 0x260   : > { %1812 = vst.msk [vmem:[%s3187_s13 + $0x1f8] sm:$0xff] %vm1748_vm3, %v1745_v57  ;;  %v1737_v37 = vadd.f32 %v3180_v26, %v1736_v59 }
 0x262   : > { %1810 = vst.msk [vmem:[%s3187_s13 + $0x1e8] sm:$0xff] %vm1748_vm3, %v1737_v37 }
 0x263 PF: > { %s17_s20 = sadd.s32 1, %s2297_s20  }
 0x264   : > { %p14_p4 = scmp.ge.s32.totalorder %s17_s20, 6  }
 0x266   :  { %16 = sbr.rel (!%p14_p4) target bundleno = 3 (0x3), region = 70 }

</bundles_post_ra>
